<compile_context>
chip_gen: v6e
topology: v6e:2x2x1
jax: 0.10.0
libtpu: 0.0.40
codegen_flags: <defaults>
</compile_context>

<pallas_src>
import functools
import jax
import jax.numpy as jnp
from jax.experimental import pallas as pl
from jax.experimental.pallas import tpu as pltpu


def _round_up(x, m):
    return ((x + m - 1) // m) * m


# ---------------------------------------------------------------------------
# Pallas tiled matmul kernel with fused bias (+ optional ReLU) epilogue.
# A, B tiles are bf16 (MXU-native); accumulation and epilogue are f32.
# ---------------------------------------------------------------------------
def _matmul_bias_kernel(a_ref, b_ref, bias_ref, o_ref, acc_ref, *, apply_relu):
    k = pl.program_id(2)

    @pl.when(k == 0)
    def _():
        acc_ref[...] = jnp.zeros_like(acc_ref)

    acc_ref[...] += jnp.dot(a_ref[...], b_ref[...],
                            preferred_element_type=jnp.float32)

    @pl.when(k == pl.num_programs(2) - 1)
    def _():
        res = acc_ref[...] + bias_ref[...]          # fused bias epilogue (f32)
        if apply_relu:                              # fused ReLU (ASPP branches)
            res = jnp.maximum(res, 0.0)
        o_ref[...] = res.astype(o_ref.dtype)


def matmul_bias_act(a, wm, bias, apply_relu=False):
    """relu?(a @ wm + bias).  a:(M,K), wm:(K,N) bf16, bias:(N,) -> f32 (M,N)."""
    M, K = a.shape
    K2, N = wm.shape
    assert K == K2

    # Tiny problems (SE linears, 1x1 convs with N in {1,3,16}, bottleneck
    # stages with few output pixels): padding up to MXU tiles would be >90%
    # zero work plus a pallas_call launch; let XLA handle these directly.
    if M < 128 or N < 32:
        out = jnp.dot(a.astype(jnp.bfloat16), wm.astype(jnp.bfloat16),
                      preferred_element_type=jnp.float32) + bias[None, :]
        return jnp.maximum(out, 0.0) if apply_relu else out

    # ---- adaptive tile selection -------------------------------------------
    # N: single lane-dense block (Cout <= 256 everywhere in this network).
    Np_ = _round_up(N, 128)
    tn = Np_ if Np_ <= 512 else 256
    # K: collapse K axis when small; else 256/512-aligned blocks, picked to
    # minimise zero padding (matches 2x256 MXU on v6e/v7x, still fine on v5e).
    Kp_ = _round_up(K, 128)
    if Kp_ <= 512:
        tk = Kp_
    else:
        tk = 512 if _round_up(K, 512) == _round_up(K, 256) else 256
    # M: big tiles to amortize DMA / grid-step overhead, but >= 2 M blocks so
    # the "parallel" axis can feed both v7x TensorCores.
    Mp8 = _round_up(M, 8)
    tm = min(512, _round_up((Mp8 + 1) // 2, 8))

    Mp = _round_up(M, tm)
    Kp = _round_up(K, tk)
    Np = _round_up(N, tn)

    a_p = jnp.pad(a.astype(jnp.bfloat16), ((0, Mp - M), (0, Kp - K)))
    b_p = jnp.pad(wm.astype(jnp.bfloat16), ((0, Kp - K), (0, Np - N)))
    bias_p = jnp.pad(bias.astype(jnp.float32), (0, Np - N)).reshape(1, Np)

    out = pl.pallas_call(
        functools.partial(_matmul_bias_kernel, apply_relu=apply_relu),
        out_shape=jax.ShapeDtypeStruct((Mp, Np), jnp.float32),
        grid_spec=pltpu.PrefetchScalarGridSpec(
            num_scalar_prefetch=0,
            grid=(Mp // tm, Np // tn, Kp // tk),
            in_specs=[
                pl.BlockSpec((tm, tk), lambda i, j, k: (i, k)),
                pl.BlockSpec((tk, tn), lambda i, j, k: (k, j)),
                pl.BlockSpec((1, tn), lambda i, j, k: (0, j)),
            ],
            out_specs=pl.BlockSpec((tm, tn), lambda i, j, k: (i, j)),
            scratch_shapes=[pltpu.VMEM((tm, tn), jnp.float32)],
        ),
        compiler_params=pltpu.CompilerParams(
            dimension_semantics=("parallel", "parallel", "arbitrary"),
            vmem_limit_bytes=32 * 1024 * 1024),
    )(a_p, b_p, bias_p)
    return out[:M, :N]


# ---------------------------------------------------------------------------
# Conv2d = im2col (JAX glue, fused under jit) + Pallas matmul w/ fused epilogue
# ---------------------------------------------------------------------------
# TODO(synk): stream the kh*kw taps through BlockSpec index_maps (extra grid
# axis over taps into the padded NHWC input) instead of materializing im2col;
# not expressible with plain Blocked index_maps without Element-offset windows.
def conv2d(x, p, kh, kw, stride=1, padding=0, dilation=1, apply_relu=False):
    """x: (N, H, W, Cin) NHWC f32; p: {'wm': (kh*kw*Cin, Cout) bf16, 'b': (Cout,)}."""
    N, H, W, Cin = x.shape
    KC, Cout = p["wm"].shape
    assert KC == kh * kw * Cin

    xp = jnp.pad(x, ((0, 0), (padding, padding), (padding, padding), (0, 0))) \
        if padding else x
    Hp, Wp = H + 2 * padding, W + 2 * padding
    Hout = (Hp - dilation * (kh - 1) - 1) // stride + 1
    Wout = (Wp - dilation * (kw - 1) - 1) // stride + 1

    taps, kept = [], []
    for i in range(kh):
        for j in range(kw):
            hi, wj = i * dilation, j * dilation
            h_last = hi + stride * (Hout - 1)
            w_last = wj + stride * (Wout - 1)
            # Statically drop taps whose entire sampled window lies in the zero
            # padding (exact; matters for the dilated ASPP branches).
            if (h_last < padding or hi >= padding + H
                    or w_last < padding or wj >= padding + W):
                continue
            kept.append(i * kw + j)
            sl = xp[:, hi:hi + stride * (Hout - 1) + 1:stride,
                       wj:wj + stride * (Wout - 1) + 1:stride, :]
            taps.append(sl)

    patches = jnp.concatenate(taps, axis=-1).astype(jnp.bfloat16)
    A = patches.reshape(N * Hout * Wout, len(kept) * Cin)
    if len(kept) == kh * kw:
        Wm = p["wm"]
    else:
        Wm = jnp.concatenate([p["wm"][t * Cin:(t + 1) * Cin] for t in kept], axis=0)

    out = matmul_bias_act(A, Wm, p["b"], apply_relu=apply_relu)
    return out.reshape(N, Hout, Wout, Cout)


# ---------------------------------------------------------------------------
# Elementwise / pooling / resizing helpers (glue, fused by XLA under jit)
# ---------------------------------------------------------------------------
def batchnorm(x, p, eps=1e-5):
    mean = jnp.mean(x, axis=(0, 1, 2))
    var = jnp.mean(jnp.square(x - mean), axis=(0, 1, 2))
    return (x - mean) * jax.lax.rsqrt(var + eps) * p["gamma"] + p["beta"]


def relu(x):
    return jnp.maximum(x, 0.0)


def maxpool2(x):
    N, H, W, C = x.shape
    return jnp.max(x.reshape(N, H // 2, 2, W // 2, 2, C), axis=(2, 4))


def bilinear_upsample2(x):
    """nn.Upsample(scale_factor=2, mode='bilinear', align_corners=False)."""
    N, H, W, C = x.shape

    def idx(in_size, out_size):
        o = jnp.arange(out_size, dtype=jnp.float32)
        src = (o + 0.5) * (in_size / out_size) - 0.5
        src = jnp.maximum(src, 0.0)
        i0 = jnp.minimum(jnp.floor(src).astype(jnp.int32), in_size - 1)
        i1 = jnp.minimum(i0 + 1, in_size - 1)
        lam = src - i0.astype(jnp.float32)
        return i0, i1, lam

    h0, h1, lh = idx(H, 2 * H)
    w0, w1, lw = idx(W, 2 * W)
    top = (x[:, h0, :, :] * (1.0 - lh)[None, :, None, None]
           + x[:, h1, :, :] * lh[None, :, None, None])
    out = (top[:, :, w0, :] * (1.0 - lw)[None, None, :, None]
           + top[:, :, w1, :] * lw[None, None, :, None])
    return out


# ---------------------------------------------------------------------------
# Parameter construction (deterministic, kaiming-normal-ish).
# Conv weights are stored pre-transposed / pre-cast: (kh*kw*Cin, Cout) bf16.
# ---------------------------------------------------------------------------
class _KeyGen:
    def __init__(self, key):
        self.key = key
        self.count = 0

    def __call__(self):
        self.count += 1
        return jax.random.fold_in(self.key, self.count)


def conv_p(kg, cin, cout, k):
    std = (2.0 / (cin * k * k)) ** 0.5
    w = jax.random.normal(kg(), (cout, cin, k, k), jnp.float32) * std
    wm = jnp.transpose(w, (2, 3, 1, 0)).reshape(k * k * cin, cout).astype(jnp.bfloat16)
    return {"wm": wm, "b": jnp.zeros((cout,), jnp.float32)}


def bn_p(c):
    return {"gamma": jnp.ones((c,), jnp.float32),
            "beta": jnp.zeros((c,), jnp.float32)}


def se_p(kg, c, reduction=16):
    cr = c // reduction
    w1t = jax.random.normal(kg(), (c, cr), jnp.float32) * (2.0 / c) ** 0.5
    w2t = jax.random.normal(kg(), (cr, c), jnp.float32) * (2.0 / cr) ** 0.5
    return {"w1t": w1t, "w2t": w2t}


def aspp_p(kg, cin, cout):
    return {
        "conv0": conv_p(kg, cin, cout, 3), "bn0": bn_p(cout),
        "conv1": conv_p(kg, cin, cout, 3), "bn1": bn_p(cout),
        "conv2": conv_p(kg, cin, cout, 3), "bn2": bn_p(cout),
        "out": conv_p(kg, 3 * cout, cout, 1),
    }


def attn_p(kg, c_enc, c_dec, c_out):
    return {
        "bn_e": bn_p(c_enc), "conv_e": conv_p(kg, c_enc, c_out, 3),
        "bn_d": bn_p(c_dec), "conv_d": conv_p(kg, c_dec, c_out, 3),
        "bn_a": bn_p(c_out), "conv_a": conv_p(kg, c_out, 1, 1),
    }


def rescv_p(kg, cin, cout):
    return {
        "bn1": bn_p(cin), "conv1": conv_p(kg, cin, cout, 3),
        "bn2": bn_p(cout), "conv2": conv_p(kg, cout, cout, 3),
        "skip_conv": conv_p(kg, cin, cout, 3), "skip_bn": bn_p(cout),
    }


def init_params(key):
    kg = _KeyGen(key)
    f = [16, 32, 64, 128, 256]
    in_ch, n_classes = 3, 3
    return {
        "input_conv1": conv_p(kg, in_ch, f[0], 3),
        "input_bn": bn_p(f[0]),
        "input_conv2": conv_p(kg, f[0], f[0], 3),
        "input_skip": conv_p(kg, in_ch, f[0], 3),
        "se1": se_p(kg, f[0]), "res1": rescv_p(kg, f[0], f[1]),
        "se2": se_p(kg, f[1]), "res2": rescv_p(kg, f[1], f[2]),
        "se3": se_p(kg, f[2]), "res3": rescv_p(kg, f[2], f[3]),
        "aspp_bridge": aspp_p(kg, f[3], f[4]),
        "attn1": attn_p(kg, f[2], f[4], f[4]),
        "up_res1": rescv_p(kg, f[4] + f[2], f[3]),
        "attn2": attn_p(kg, f[1], f[3], f[3]),
        "up_res2": rescv_p(kg, f[3] + f[1], f[2]),
        "attn3": attn_p(kg, f[0], f[2], f[2]),
        "up_res3": rescv_p(kg, f[2] + f[0], f[1]),
        "aspp_out": aspp_p(kg, f[1], f[0]),
        "output": conv_p(kg, f[0], n_classes, 1),
    }


# ---------------------------------------------------------------------------
# Block forward functions
# ---------------------------------------------------------------------------
def aspp_fwd(p, x, rates=(6, 12, 18)):
    outs = []
    for i, r in enumerate(rates):
        # Conv -> ReLU is fused into the matmul epilogue; BN follows.
        y = conv2d(x, p[f"conv{i}"], 3, 3, padding=r, dilation=r, apply_relu=True)
        y = batchnorm(y, p[f"bn{i}"])
        outs.append(y)
    cat = jnp.concatenate(outs, axis=-1)
    return conv2d(cat, p["out"], 1, 1)


def attention_fwd(p, x1, x2):
    e = conv2d(relu(batchnorm(x1, p["bn_e"])), p["conv_e"], 3, 3, padding=1)
    e = maxpool2(e)
    d = conv2d(relu(batchnorm(x2, p["bn_d"])), p["conv_d"], 3, 3, padding=1)
    o = conv2d(relu(batchnorm(e + d, p["bn_a"])), p["conv_a"], 1, 1)
    return o * x2


def residual_conv_fwd(p, x, stride, padding):
    y = relu(batchnorm(x, p["bn1"]))
    y = conv2d(y, p["conv1"], 3, 3, stride=stride, padding=padding)
    y = relu(batchnorm(y, p["bn2"]))
    y = conv2d(y, p["conv2"], 3, 3, padding=1)
    s = conv2d(x, p["skip_conv"], 3, 3, stride=stride, padding=1)
    s = batchnorm(s, p["skip_bn"])
    return y + s


def squeeze_excite_fwd(p, x):
    # M = batch (tiny): deliberately not routed through pallas_call.
    y = jnp.mean(x, axis=(1, 2))
    y = relu(jnp.dot(y, p["w1t"], preferred_element_type=jnp.float32))
    y = jax.nn.sigmoid(jnp.dot(y, p["w2t"], preferred_element_type=jnp.float32))
    return x * y[:, None, None, :]


# ---------------------------------------------------------------------------
# Full ResUnetPlusPlus forward
# ---------------------------------------------------------------------------
def resunet_plusplus_forward(params, x_nchw):
    x = jnp.transpose(x_nchw, (0, 2, 3, 1)).astype(jnp.float32)   # NCHW -> NHWC

    # input layer + input skip
    y = conv2d(x, params["input_conv1"], 3, 3, padding=1)
    y = relu(batchnorm(y, params["input_bn"]))
    y = conv2d(y, params["input_conv2"], 3, 3, padding=1)
    skip = conv2d(x, params["input_skip"], 3, 3, padding=1)
    x1 = y + skip

    x2 = squeeze_excite_fwd(params["se1"], x1)
    x2 = residual_conv_fwd(params["res1"], x2, stride=2, padding=1)

    x3 = squeeze_excite_fwd(params["se2"], x2)
    x3 = residual_conv_fwd(params["res2"], x3, stride=2, padding=1)

    x4 = squeeze_excite_fwd(params["se3"], x3)
    x4 = residual_conv_fwd(params["res3"], x4, stride=2, padding=1)

    x5 = aspp_fwd(params["aspp_bridge"], x4)

    x6 = attention_fwd(params["attn1"], x3, x5)
    x6 = bilinear_upsample2(x6)
    x6 = jnp.concatenate([x6, x3], axis=-1)
    x6 = residual_conv_fwd(params["up_res1"], x6, stride=1, padding=1)

    x7 = attention_fwd(params["attn2"], x2, x6)
    x7 = bilinear_upsample2(x7)
    x7 = jnp.concatenate([x7, x2], axis=-1)
    x7 = residual_conv_fwd(params["up_res2"], x7, stride=1, padding=1)

    x8 = attention_fwd(params["attn3"], x1, x7)
    x8 = bilinear_upsample2(x8)
    x8 = jnp.concatenate([x8, x1], axis=-1)
    x8 = residual_conv_fwd(params["up_res3"], x8, stride=1, padding=1)

    x9 = aspp_fwd(params["aspp_out"], x8)
    out = conv2d(x9, params["output"], 1, 1)        # 1x1 conv, Cout=3

    return jnp.transpose(out, (0, 3, 1, 2))          # NHWC -> NCHW


if __name__ == "__main__":
    key = jax.random.PRNGKey(0)
    pkey, xkey = jax.random.split(key)
    params = init_params(pkey)

    # Small input consistent with the module (in_channels=3, spatial div by 8).
    x = jax.random.normal(xkey, (2, 3, 16, 16), jnp.float32)   # NCHW

    fwd = jax.jit(resunet_plusplus_forward)
    out = jax.block_until_ready(fwd(params, x))
    assert out.shape == (2, 3, 16, 16), out.shape
    assert jnp.all(jnp.isfinite(out))
    print("KERNEL_OK")
</pallas_src>

<mosaic_0001>
module attributes {stable_mosaic.version = 11 : i64} {
  func.func @_matmul_bias_kernel(%arg0: i32, %arg1: i32, %arg2: i32, %arg3: memref<256x256xbf16, #tpu.memory_space<vmem>>, %arg4: memref<256x128xbf16, #tpu.memory_space<vmem>>, %arg5: memref<1x128xf32, #tpu.memory_space<vmem>>, %arg6: memref<256x128xf32, #tpu.memory_space<vmem>>, %arg7: memref<256x128xf32, #tpu.memory_space<vmem>>) attributes {dimension_semantics = [#tpu.dimension_semantics<parallel>, #tpu.dimension_semantics<parallel>, #tpu.dimension_semantics<arbitrary>], iteration_bounds = array<i64: 2, 1, 1>, scalar_prefetch = 0 : i64, scratch_operands = 1 : i64, tpu.core_type = #tpu.core_type<tc>, window_params = [{transform_indices = @transform_0, window_bounds = array<i64: 256, 256>}, {transform_indices = @transform_1, window_bounds = array<i64: 256, 128>}, {transform_indices = @transform_2, window_bounds = array<i64: 1, 128>}, {transform_indices = @transform_3, window_bounds = array<i64: 256, 128>}]} {
    %c0_i32 = arith.constant 0 : i32
    %0 = arith.cmpi eq, %arg2, %c0_i32 : i32
    %1 = arith.extui %0 : i1 to i32
    %c0_i32_0 = arith.constant 0 : i32
    %2 = arith.cmpi ne, %1, %c0_i32_0 : i32
    scf.if %2 {
      %cst_10 = arith.constant 0.000000e+00 : f32
      %12 = vector.broadcast %cst_10 : f32 to vector<256x128xf32>
      %c0_11 = arith.constant 0 : index
      %c0_12 = arith.constant 0 : index
      %13 = vector.load %arg7[%c0_11, %c0_12] : memref<256x128xf32, #tpu.memory_space<vmem>>, vector<256x128xf32>
      tpu.vector_store %arg7[%c0_11, %c0_12], %12 {strides = array<i32>} : memref<256x128xf32, #tpu.memory_space<vmem>>, vector<256x128xf32>,
    } else {
    }
    %c0 = arith.constant 0 : index
    %c0_1 = arith.constant 0 : index
    %3 = vector.load %arg7[%c0, %c0_1] : memref<256x128xf32, #tpu.memory_space<vmem>>, vector<256x128xf32>
    %c0_2 = arith.constant 0 : index
    %c0_3 = arith.constant 0 : index
    %4 = vector.load %arg3[%c0_2, %c0_3] : memref<256x256xbf16, #tpu.memory_space<vmem>>, vector<256x256xbf16>
    %c0_4 = arith.constant 0 : index
    %c0_5 = arith.constant 0 : index
    %5 = vector.load %arg4[%c0_4, %c0_5] : memref<256x128xbf16, #tpu.memory_space<vmem>>, vector<256x128xbf16>
    %cst = arith.constant dense<0.000000e+00> : vector<256x128xf32>
    %6 = tpu.matmul %4, %5, %cst {dimension_numbers = #tpu.dot_dimension_numbers<[1], [0], [0], [1], [0, 0, 1, 1], [], []>} : vector<256x256xbf16>, vector<256x128xbf16>, vector<256x128xf32> -> vector<256x128xf32>
    %7 = arith.addf %3, %6 : vector<256x128xf32>
    %c0_6 = arith.constant 0 : index
    %c0_7 = arith.constant 0 : index
    %8 = vector.load %arg7[%c0_6, %c0_7] : memref<256x128xf32, #tpu.memory_space<vmem>>, vector<256x128xf32>
    tpu.vector_store %arg7[%c0_6, %c0_7], %7 {strides = array<i32>} : memref<256x128xf32, #tpu.memory_space<vmem>>, vector<256x128xf32>,
    %c0_i32_8 = arith.constant 0 : i32
    %9 = arith.cmpi eq, %arg2, %c0_i32_8 : i32
    %10 = arith.extui %9 : i1 to i32
    %c0_i32_9 = arith.constant 0 : i32
    %11 = arith.cmpi ne, %10, %c0_i32_9 : i32
    scf.if %11 {
      %c0_10 = arith.constant 0 : index
      %c0_11 = arith.constant 0 : index
      %12 = vector.load %arg7[%c0_10, %c0_11] : memref<256x128xf32, #tpu.memory_space<vmem>>, vector<256x128xf32>
      %c0_12 = arith.constant 0 : index
      %c0_13 = arith.constant 0 : index
      %13 = vector.load %arg5[%c0_12, %c0_13] : memref<1x128xf32, #tpu.memory_space<vmem>>, vector<1x128xf32>
      %14 = vector.broadcast %13 : vector<1x128xf32> to vector<256x128xf32>
      %15 = arith.addf %12, %14 : vector<256x128xf32>
      %c0_14 = arith.constant 0 : index
      %c0_15 = arith.constant 0 : index
      %16 = vector.load %arg6[%c0_14, %c0_15] : memref<256x128xf32, #tpu.memory_space<vmem>>, vector<256x128xf32>
      tpu.vector_store %arg6[%c0_14, %c0_15], %15 {strides = array<i32>} : memref<256x128xf32, #tpu.memory_space<vmem>>, vector<256x128xf32>,
    } else {
    }
    return
  }
  func.func @transform_0(%arg0: i32, %arg1: i32, %arg2: i32) -> (i32, i32) {
    %c0_i32 = arith.constant 0 : i32
    return %arg0, %arg2 : i32, i32
  }
  func.func @transform_1(%arg0: i32, %arg1: i32, %arg2: i32) -> (i32, i32) {
    %c0_i32 = arith.constant 0 : i32
    return %arg2, %arg1 : i32, i32
  }
  func.func @transform_2(%arg0: i32, %arg1: i32, %arg2: i32) -> (i32, i32) {
    %c0_i32 = arith.constant 0 : i32
    %c0_i32_0 = arith.constant 0 : i32
    return %c0_i32, %arg1 : i32, i32
  }
  func.func @transform_3(%arg0: i32, %arg1: i32, %arg2: i32) -> (i32, i32) {
    %c0_i32 = arith.constant 0 : i32
    return %arg0, %arg1 : i32, i32
  }
}

module attributes {stable_mosaic.version = 11 : i64} {
  func.func @_matmul_bias_kernel(%arg0: i32, %arg1: i32, %arg2: i32, %arg3: memref<64x256xbf16, #tpu.memory_space<vmem>>, %arg4: memref<256x128xbf16, #tpu.memory_space<vmem>>, %arg5: memref<1x128xf32, #tpu.memory_space<vmem>>, %arg6: memref<64x128xf32, #tpu.memory_space<vmem>>, %arg7: memref<64x128xf32, #tpu.memory_space<vmem>>) attributes {dimension_semantics = [#tpu.dimension_semantics<parallel>, #tpu.dimension_semantics<parallel>, #tpu.dimension_semantics<arbitrary>], iteration_bounds = array<i64: 2, 1, 1>, scalar_prefetch = 0 : i64, scratch_operands = 1 : i64, tpu.core_type = #tpu.core_type<tc>, window_params = [{transform_indices = @transform_0, window_bounds = array<i64: 64, 256>}, {transform_indices = @transform_1, window_bounds = array<i64: 256, 128>}, {transform_indices = @transform_2, window_bounds = array<i64: 1, 128>}, {transform_indices = @transform_3, window_bounds = array<i64: 64, 128>}]} {
    %c0_i32 = arith.constant 0 : i32
    %0 = arith.cmpi eq, %arg2, %c0_i32 : i32
    %1 = arith.extui %0 : i1 to i32
    %c0_i32_0 = arith.constant 0 : i32
    %2 = arith.cmpi ne, %1, %c0_i32_0 : i32
    scf.if %2 {
      %cst_10 = arith.constant 0.000000e+00 : f32
      %12 = vector.broadcast %cst_10 : f32 to vector<64x128xf32>
      %c0_11 = arith.constant 0 : index
      %c0_12 = arith.constant 0 : index
      %13 = vector.load %arg7[%c0_11, %c0_12] : memref<64x128xf32, #tpu.memory_space<vmem>>, vector<64x128xf32>
      tpu.vector_store %arg7[%c0_11, %c0_12], %12 {strides = array<i32>} : memref<64x128xf32, #tpu.memory_space<vmem>>, vector<64x128xf32>,
    } else {
    }
    %c0 = arith.constant 0 : index
    %c0_1 = arith.constant 0 : index
    %3 = vector.load %arg7[%c0, %c0_1] : memref<64x128xf32, #tpu.memory_space<vmem>>, vector<64x128xf32>
    %c0_2 = arith.constant 0 : index
    %c0_3 = arith.constant 0 : index
    %4 = vector.load %arg3[%c0_2, %c0_3] : memref<64x256xbf16, #tpu.memory_space<vmem>>, vector<64x256xbf16>
    %c0_4 = arith.constant 0 : index
    %c0_5 = arith.constant 0 : index
    %5 = vector.load %arg4[%c0_4, %c0_5] : memref<256x128xbf16, #tpu.memory_space<vmem>>, vector<256x128xbf16>
    %cst = arith.constant dense<0.000000e+00> : vector<64x128xf32>
    %6 = tpu.matmul %4, %5, %cst {dimension_numbers = #tpu.dot_dimension_numbers<[1], [0], [0], [1], [0, 0, 1, 1], [], []>} : vector<64x256xbf16>, vector<256x128xbf16>, vector<64x128xf32> -> vector<64x128xf32>
    %7 = arith.addf %3, %6 : vector<64x128xf32>
    %c0_6 = arith.constant 0 : index
    %c0_7 = arith.constant 0 : index
    %8 = vector.load %arg7[%c0_6, %c0_7] : memref<64x128xf32, #tpu.memory_space<vmem>>, vector<64x128xf32>
    tpu.vector_store %arg7[%c0_6, %c0_7], %7 {strides = array<i32>} : memref<64x128xf32, #tpu.memory_space<vmem>>, vector<64x128xf32>,
    %c0_i32_8 = arith.constant 0 : i32
    %9 = arith.cmpi eq, %arg2, %c0_i32_8 : i32
    %10 = arith.extui %9 : i1 to i32
    %c0_i32_9 = arith.constant 0 : i32
    %11 = arith.cmpi ne, %10, %c0_i32_9 : i32
    scf.if %11 {
      %c0_10 = arith.constant 0 : index
      %c0_11 = arith.constant 0 : index
      %12 = vector.load %arg7[%c0_10, %c0_11] : memref<64x128xf32, #tpu.memory_space<vmem>>, vector<64x128xf32>
      %c0_12 = arith.constant 0 : index
      %c0_13 = arith.constant 0 : index
      %13 = vector.load %arg5[%c0_12, %c0_13] : memref<1x128xf32, #tpu.memory_space<vmem>>, vector<1x128xf32>
      %14 = vector.broadcast %13 : vector<1x128xf32> to vector<64x128xf32>
      %15 = arith.addf %12, %14 : vector<64x128xf32>
      %c0_14 = arith.constant 0 : index
      %c0_15 = arith.constant 0 : index
      %16 = vector.load %arg6[%c0_14, %c0_15] : memref<64x128xf32, #tpu.memory_space<vmem>>, vector<64x128xf32>
      tpu.vector_store %arg6[%c0_14, %c0_15], %15 {strides = array<i32>} : memref<64x128xf32, #tpu.memory_space<vmem>>, vector<64x128xf32>,
    } else {
    }
    return
  }
  func.func @transform_0(%arg0: i32, %arg1: i32, %arg2: i32) -> (i32, i32) {
    %c0_i32 = arith.constant 0 : i32
    return %arg0, %arg2 : i32, i32
  }
  func.func @transform_1(%arg0: i32, %arg1: i32, %arg2: i32) -> (i32, i32) {
    %c0_i32 = arith.constant 0 : i32
    return %arg2, %arg1 : i32, i32
  }
  func.func @transform_2(%arg0: i32, %arg1: i32, %arg2: i32) -> (i32, i32) {
    %c0_i32 = arith.constant 0 : i32
    %c0_i32_0 = arith.constant 0 : i32
    return %c0_i32, %arg1 : i32, i32
  }
  func.func @transform_3(%arg0: i32, %arg1: i32, %arg2: i32) -> (i32, i32) {
    %c0_i32 = arith.constant 0 : i32
    return %arg0, %arg1 : i32, i32
  }
}

module attributes {stable_mosaic.version = 11 : i64} {
  func.func @_matmul_bias_kernel(%arg0: i32, %arg1: i32, %arg2: i32, %arg3: memref<64x384xbf16, #tpu.memory_space<vmem>>, %arg4: memref<384x128xbf16, #tpu.memory_space<vmem>>, %arg5: memref<1x128xf32, #tpu.memory_space<vmem>>, %arg6: memref<64x128xf32, #tpu.memory_space<vmem>>, %arg7: memref<64x128xf32, #tpu.memory_space<vmem>>) attributes {dimension_semantics = [#tpu.dimension_semantics<parallel>, #tpu.dimension_semantics<parallel>, #tpu.dimension_semantics<arbitrary>], iteration_bounds = array<i64: 2, 1, 1>, scalar_prefetch = 0 : i64, scratch_operands = 1 : i64, tpu.core_type = #tpu.core_type<tc>, window_params = [{transform_indices = @transform_0, window_bounds = array<i64: 64, 384>}, {transform_indices = @transform_1, window_bounds = array<i64: 384, 128>}, {transform_indices = @transform_2, window_bounds = array<i64: 1, 128>}, {transform_indices = @transform_3, window_bounds = array<i64: 64, 128>}]} {
    %c0_i32 = arith.constant 0 : i32
    %0 = arith.cmpi eq, %arg2, %c0_i32 : i32
    %1 = arith.extui %0 : i1 to i32
    %c0_i32_0 = arith.constant 0 : i32
    %2 = arith.cmpi ne, %1, %c0_i32_0 : i32
    scf.if %2 {
      %cst_10 = arith.constant 0.000000e+00 : f32
      %12 = vector.broadcast %cst_10 : f32 to vector<64x128xf32>
      %c0_11 = arith.constant 0 : index
      %c0_12 = arith.constant 0 : index
      %13 = vector.load %arg7[%c0_11, %c0_12] : memref<64x128xf32, #tpu.memory_space<vmem>>, vector<64x128xf32>
      tpu.vector_store %arg7[%c0_11, %c0_12], %12 {strides = array<i32>} : memref<64x128xf32, #tpu.memory_space<vmem>>, vector<64x128xf32>,
    } else {
    }
    %c0 = arith.constant 0 : index
    %c0_1 = arith.constant 0 : index
    %3 = vector.load %arg7[%c0, %c0_1] : memref<64x128xf32, #tpu.memory_space<vmem>>, vector<64x128xf32>
    %c0_2 = arith.constant 0 : index
    %c0_3 = arith.constant 0 : index
    %4 = vector.load %arg3[%c0_2, %c0_3] : memref<64x384xbf16, #tpu.memory_space<vmem>>, vector<64x384xbf16>
    %c0_4 = arith.constant 0 : index
    %c0_5 = arith.constant 0 : index
    %5 = vector.load %arg4[%c0_4, %c0_5] : memref<384x128xbf16, #tpu.memory_space<vmem>>, vector<384x128xbf16>
    %cst = arith.constant dense<0.000000e+00> : vector<64x128xf32>
    %6 = tpu.matmul %4, %5, %cst {dimension_numbers = #tpu.dot_dimension_numbers<[1], [0], [0], [1], [0, 0, 1, 1], [], []>} : vector<64x384xbf16>, vector<384x128xbf16>, vector<64x128xf32> -> vector<64x128xf32>
    %7 = arith.addf %3, %6 : vector<64x128xf32>
    %c0_6 = arith.constant 0 : index
    %c0_7 = arith.constant 0 : index
    %8 = vector.load %arg7[%c0_6, %c0_7] : memref<64x128xf32, #tpu.memory_space<vmem>>, vector<64x128xf32>
    tpu.vector_store %arg7[%c0_6, %c0_7], %7 {strides = array<i32>} : memref<64x128xf32, #tpu.memory_space<vmem>>, vector<64x128xf32>,
    %c0_i32_8 = arith.constant 0 : i32
    %9 = arith.cmpi eq, %arg2, %c0_i32_8 : i32
    %10 = arith.extui %9 : i1 to i32
    %c0_i32_9 = arith.constant 0 : i32
    %11 = arith.cmpi ne, %10, %c0_i32_9 : i32
    scf.if %11 {
      %c0_10 = arith.constant 0 : index
      %c0_11 = arith.constant 0 : index
      %12 = vector.load %arg7[%c0_10, %c0_11] : memref<64x128xf32, #tpu.memory_space<vmem>>, vector<64x128xf32>
      %c0_12 = arith.constant 0 : index
      %c0_13 = arith.constant 0 : index
      %13 = vector.load %arg5[%c0_12, %c0_13] : memref<1x128xf32, #tpu.memory_space<vmem>>, vector<1x128xf32>
      %14 = vector.broadcast %13 : vector<1x128xf32> to vector<64x128xf32>
      %15 = arith.addf %12, %14 : vector<64x128xf32>
      %c0_14 = arith.constant 0 : index
      %c0_15 = arith.constant 0 : index
      %16 = vector.load %arg6[%c0_14, %c0_15] : memref<64x128xf32, #tpu.memory_space<vmem>>, vector<64x128xf32>
      tpu.vector_store %arg6[%c0_14, %c0_15], %15 {strides = array<i32>} : memref<64x128xf32, #tpu.memory_space<vmem>>, vector<64x128xf32>,
    } else {
    }
    return
  }
  func.func @transform_0(%arg0: i32, %arg1: i32, %arg2: i32) -> (i32, i32) {
    %c0_i32 = arith.constant 0 : i32
    return %arg0, %arg2 : i32, i32
  }
  func.func @transform_1(%arg0: i32, %arg1: i32, %arg2: i32) -> (i32, i32) {
    %c0_i32 = arith.constant 0 : i32
    return %arg2, %arg1 : i32, i32
  }
  func.func @transform_2(%arg0: i32, %arg1: i32, %arg2: i32) -> (i32, i32) {
    %c0_i32 = arith.constant 0 : i32
    %c0_i32_0 = arith.constant 0 : i32
    return %c0_i32, %arg1 : i32, i32
  }
  func.func @transform_3(%arg0: i32, %arg1: i32, %arg2: i32) -> (i32, i32) {
    %c0_i32 = arith.constant 0 : i32
    return %arg0, %arg1 : i32, i32
  }
}

module attributes {stable_mosaic.version = 11 : i64} {
  func.func @_matmul_bias_kernel(%arg0: i32, %arg1: i32, %arg2: i32, %arg3: memref<64x512xbf16, #tpu.memory_space<vmem>>, %arg4: memref<512x128xbf16, #tpu.memory_space<vmem>>, %arg5: memref<1x128xf32, #tpu.memory_space<vmem>>, %arg6: memref<64x128xf32, #tpu.memory_space<vmem>>, %arg7: memref<64x128xf32, #tpu.memory_space<vmem>>) attributes {dimension_semantics = [#tpu.dimension_semantics<parallel>, #tpu.dimension_semantics<parallel>, #tpu.dimension_semantics<arbitrary>], iteration_bounds = array<i64: 2, 1, 3>, scalar_prefetch = 0 : i64, scratch_operands = 1 : i64, tpu.core_type = #tpu.core_type<tc>, window_params = [{transform_indices = @transform_0, window_bounds = array<i64: 64, 512>}, {transform_indices = @transform_1, window_bounds = array<i64: 512, 128>}, {transform_indices = @transform_2, window_bounds = array<i64: 1, 128>}, {transform_indices = @transform_3, window_bounds = array<i64: 64, 128>}]} {
    %c0_i32 = arith.constant 0 : i32
    %0 = arith.cmpi eq, %arg2, %c0_i32 : i32
    %1 = arith.extui %0 : i1 to i32
    %c0_i32_0 = arith.constant 0 : i32
    %2 = arith.cmpi ne, %1, %c0_i32_0 : i32
    scf.if %2 {
      %cst_9 = arith.constant 0.000000e+00 : f32
      %12 = vector.broadcast %cst_9 : f32 to vector<64x128xf32>
      %c0_10 = arith.constant 0 : index
      %c0_11 = arith.constant 0 : index
      %13 = vector.load %arg7[%c0_10, %c0_11] : memref<64x128xf32, #tpu.memory_space<vmem>>, vector<64x128xf32>
      tpu.vector_store %arg7[%c0_10, %c0_11], %12 {strides = array<i32>} : memref<64x128xf32, #tpu.memory_space<vmem>>, vector<64x128xf32>,
    } else {
    }
    %c0 = arith.constant 0 : index
    %c0_1 = arith.constant 0 : index
    %3 = vector.load %arg7[%c0, %c0_1] : memref<64x128xf32, #tpu.memory_space<vmem>>, vector<64x128xf32>
    %c0_2 = arith.constant 0 : index
    %c0_3 = arith.constant 0 : index
    %4 = vector.load %arg3[%c0_2, %c0_3] : memref<64x512xbf16, #tpu.memory_space<vmem>>, vector<64x512xbf16>
    %c0_4 = arith.constant 0 : index
    %c0_5 = arith.constant 0 : index
    %5 = vector.load %arg4[%c0_4, %c0_5] : memref<512x128xbf16, #tpu.memory_space<vmem>>, vector<512x128xbf16>
    %cst = arith.constant dense<0.000000e+00> : vector<64x128xf32>
    %6 = tpu.matmul %4, %5, %cst {dimension_numbers = #tpu.dot_dimension_numbers<[1], [0], [0], [1], [0, 0, 1, 1], [], []>} : vector<64x512xbf16>, vector<512x128xbf16>, vector<64x128xf32> -> vector<64x128xf32>
    %7 = arith.addf %3, %6 : vector<64x128xf32>
    %c0_6 = arith.constant 0 : index
    %c0_7 = arith.constant 0 : index
    %8 = vector.load %arg7[%c0_6, %c0_7] : memref<64x128xf32, #tpu.memory_space<vmem>>, vector<64x128xf32>
    tpu.vector_store %arg7[%c0_6, %c0_7], %7 {strides = array<i32>} : memref<64x128xf32, #tpu.memory_space<vmem>>, vector<64x128xf32>,
    %c2_i32 = arith.constant 2 : i32
    %9 = arith.cmpi eq, %arg2, %c2_i32 : i32
    %10 = arith.extui %9 : i1 to i32
    %c0_i32_8 = arith.constant 0 : i32
    %11 = arith.cmpi ne, %10, %c0_i32_8 : i32
    scf.if %11 {
      %c0_9 = arith.constant 0 : index
      %c0_10 = arith.constant 0 : index
      %12 = vector.load %arg7[%c0_9, %c0_10] : memref<64x128xf32, #tpu.memory_space<vmem>>, vector<64x128xf32>
      %c0_11 = arith.constant 0 : index
      %c0_12 = arith.constant 0 : index
      %13 = vector.load %arg5[%c0_11, %c0_12] : memref<1x128xf32, #tpu.memory_space<vmem>>, vector<1x128xf32>
      %14 = vector.broadcast %13 : vector<1x128xf32> to vector<64x128xf32>
      %15 = arith.addf %12, %14 : vector<64x128xf32>
      %c0_13 = arith.constant 0 : index
      %c0_14 = arith.constant 0 : index
      %16 = vector.load %arg6[%c0_13, %c0_14] : memref<64x128xf32, #tpu.memory_space<vmem>>, vector<64x128xf32>
      tpu.vector_store %arg6[%c0_13, %c0_14], %15 {strides = array<i32>} : memref<64x128xf32, #tpu.memory_space<vmem>>, vector<64x128xf32>,
    } else {
    }
    return
  }
  func.func @transform_0(%arg0: i32, %arg1: i32, %arg2: i32) -> (i32, i32) {
    %c0_i32 = arith.constant 0 : i32
    return %arg0, %arg2 : i32, i32
  }
  func.func @transform_1(%arg0: i32, %arg1: i32, %arg2: i32) -> (i32, i32) {
    %c0_i32 = arith.constant 0 : i32
    return %arg2, %arg1 : i32, i32
  }
  func.func @transform_2(%arg0: i32, %arg1: i32, %arg2: i32) -> (i32, i32) {
    %c0_i32 = arith.constant 0 : i32
    %c0_i32_0 = arith.constant 0 : i32
    return %c0_i32, %arg1 : i32, i32
  }
  func.func @transform_3(%arg0: i32, %arg1: i32, %arg2: i32) -> (i32, i32) {
    %c0_i32 = arith.constant 0 : i32
    return %arg0, %arg1 : i32, i32
  }
}

module attributes {stable_mosaic.version = 11 : i64} {
  func.func @_matmul_bias_kernel(%arg0: i32, %arg1: i32, %arg2: i32, %arg3: memref<64x256xbf16, #tpu.memory_space<vmem>>, %arg4: memref<256x128xbf16, #tpu.memory_space<vmem>>, %arg5: memref<1x128xf32, #tpu.memory_space<vmem>>, %arg6: memref<64x128xf32, #tpu.memory_space<vmem>>, %arg7: memref<64x128xf32, #tpu.memory_space<vmem>>) attributes {dimension_semantics = [#tpu.dimension_semantics<parallel>, #tpu.dimension_semantics<parallel>, #tpu.dimension_semantics<arbitrary>], iteration_bounds = array<i64: 2, 1, 3>, scalar_prefetch = 0 : i64, scratch_operands = 1 : i64, tpu.core_type = #tpu.core_type<tc>, window_params = [{transform_indices = @transform_0, window_bounds = array<i64: 64, 256>}, {transform_indices = @transform_1, window_bounds = array<i64: 256, 128>}, {transform_indices = @transform_2, window_bounds = array<i64: 1, 128>}, {transform_indices = @transform_3, window_bounds = array<i64: 64, 128>}]} {
    %c0_i32 = arith.constant 0 : i32
    %0 = arith.cmpi eq, %arg2, %c0_i32 : i32
    %1 = arith.extui %0 : i1 to i32
    %c0_i32_0 = arith.constant 0 : i32
    %2 = arith.cmpi ne, %1, %c0_i32_0 : i32
    scf.if %2 {
      %cst_9 = arith.constant 0.000000e+00 : f32
      %12 = vector.broadcast %cst_9 : f32 to vector<64x128xf32>
      %c0_10 = arith.constant 0 : index
      %c0_11 = arith.constant 0 : index
      %13 = vector.load %arg7[%c0_10, %c0_11] : memref<64x128xf32, #tpu.memory_space<vmem>>, vector<64x128xf32>
      tpu.vector_store %arg7[%c0_10, %c0_11], %12 {strides = array<i32>} : memref<64x128xf32, #tpu.memory_space<vmem>>, vector<64x128xf32>,
    } else {
    }
    %c0 = arith.constant 0 : index
    %c0_1 = arith.constant 0 : index
    %3 = vector.load %arg7[%c0, %c0_1] : memref<64x128xf32, #tpu.memory_space<vmem>>, vector<64x128xf32>
    %c0_2 = arith.constant 0 : index
    %c0_3 = arith.constant 0 : index
    %4 = vector.load %arg3[%c0_2, %c0_3] : memref<64x256xbf16, #tpu.memory_space<vmem>>, vector<64x256xbf16>
    %c0_4 = arith.constant 0 : index
    %c0_5 = arith.constant 0 : index
    %5 = vector.load %arg4[%c0_4, %c0_5] : memref<256x128xbf16, #tpu.memory_space<vmem>>, vector<256x128xbf16>
    %cst = arith.constant dense<0.000000e+00> : vector<64x128xf32>
    %6 = tpu.matmul %4, %5, %cst {dimension_numbers = #tpu.dot_dimension_numbers<[1], [0], [0], [1], [0, 0, 1, 1], [], []>} : vector<64x256xbf16>, vector<256x128xbf16>, vector<64x128xf32> -> vector<64x128xf32>
    %7 = arith.addf %3, %6 : vector<64x128xf32>
    %c0_6 = arith.constant 0 : index
    %c0_7 = arith.constant 0 : index
    %8 = vector.load %arg7[%c0_6, %c0_7] : memref<64x128xf32, #tpu.memory_space<vmem>>, vector<64x128xf32>
    tpu.vector_store %arg7[%c0_6, %c0_7], %7 {strides = array<i32>} : memref<64x128xf32, #tpu.memory_space<vmem>>, vector<64x128xf32>,
    %c2_i32 = arith.constant 2 : i32
    %9 = arith.cmpi eq, %arg2, %c2_i32 : i32
    %10 = arith.extui %9 : i1 to i32
    %c0_i32_8 = arith.constant 0 : i32
    %11 = arith.cmpi ne, %10, %c0_i32_8 : i32
    scf.if %11 {
      %c0_9 = arith.constant 0 : index
      %c0_10 = arith.constant 0 : index
      %12 = vector.load %arg7[%c0_9, %c0_10] : memref<64x128xf32, #tpu.memory_space<vmem>>, vector<64x128xf32>
      %c0_11 = arith.constant 0 : index
      %c0_12 = arith.constant 0 : index
      %13 = vector.load %arg5[%c0_11, %c0_12] : memref<1x128xf32, #tpu.memory_space<vmem>>, vector<1x128xf32>
      %14 = vector.broadcast %13 : vector<1x128xf32> to vector<64x128xf32>
      %15 = arith.addf %12, %14 : vector<64x128xf32>
      %c0_13 = arith.constant 0 : index
      %c0_14 = arith.constant 0 : index
      %16 = vector.load %arg6[%c0_13, %c0_14] : memref<64x128xf32, #tpu.memory_space<vmem>>, vector<64x128xf32>
      tpu.vector_store %arg6[%c0_13, %c0_14], %15 {strides = array<i32>} : memref<64x128xf32, #tpu.memory_space<vmem>>, vector<64x128xf32>,
    } else {
    }
    return
  }
  func.func @transform_0(%arg0: i32, %arg1: i32, %arg2: i32) -> (i32, i32) {
    %c0_i32 = arith.constant 0 : i32
    return %arg0, %arg2 : i32, i32
  }
  func.func @transform_1(%arg0: i32, %arg1: i32, %arg2: i32) -> (i32, i32) {
    %c0_i32 = arith.constant 0 : i32
    return %arg2, %arg1 : i32, i32
  }
  func.func @transform_2(%arg0: i32, %arg1: i32, %arg2: i32) -> (i32, i32) {
    %c0_i32 = arith.constant 0 : i32
    %c0_i32_0 = arith.constant 0 : i32
    return %c0_i32, %arg1 : i32, i32
  }
  func.func @transform_3(%arg0: i32, %arg1: i32, %arg2: i32) -> (i32, i32) {
    %c0_i32 = arith.constant 0 : i32
    return %arg0, %arg1 : i32, i32
  }
}

module attributes {stable_mosaic.version = 11 : i64} {
  func.func @_matmul_bias_kernel(%arg0: i32, %arg1: i32, %arg2: i32, %arg3: memref<256x256xbf16, #tpu.memory_space<vmem>>, %arg4: memref<256x128xbf16, #tpu.memory_space<vmem>>, %arg5: memref<1x128xf32, #tpu.memory_space<vmem>>, %arg6: memref<256x128xf32, #tpu.memory_space<vmem>>, %arg7: memref<256x128xf32, #tpu.memory_space<vmem>>) attributes {dimension_semantics = [#tpu.dimension_semantics<parallel>, #tpu.dimension_semantics<parallel>, #tpu.dimension_semantics<arbitrary>], iteration_bounds = array<i64: 2, 1, 3>, scalar_prefetch = 0 : i64, scratch_operands = 1 : i64, tpu.core_type = #tpu.core_type<tc>, window_params = [{transform_indices = @transform_0, window_bounds = array<i64: 256, 256>}, {transform_indices = @transform_1, window_bounds = array<i64: 256, 128>}, {transform_indices = @transform_2, window_bounds = array<i64: 1, 128>}, {transform_indices = @transform_3, window_bounds = array<i64: 256, 128>}]} {
    %c0_i32 = arith.constant 0 : i32
    %0 = arith.cmpi eq, %arg2, %c0_i32 : i32
    %1 = arith.extui %0 : i1 to i32
    %c0_i32_0 = arith.constant 0 : i32
    %2 = arith.cmpi ne, %1, %c0_i32_0 : i32
    scf.if %2 {
      %cst_9 = arith.constant 0.000000e+00 : f32
      %12 = vector.broadcast %cst_9 : f32 to vector<256x128xf32>
      %c0_10 = arith.constant 0 : index
      %c0_11 = arith.constant 0 : index
      %13 = vector.load %arg7[%c0_10, %c0_11] : memref<256x128xf32, #tpu.memory_space<vmem>>, vector<256x128xf32>
      tpu.vector_store %arg7[%c0_10, %c0_11], %12 {strides = array<i32>} : memref<256x128xf32, #tpu.memory_space<vmem>>, vector<256x128xf32>,
    } else {
    }
    %c0 = arith.constant 0 : index
    %c0_1 = arith.constant 0 : index
    %3 = vector.load %arg7[%c0, %c0_1] : memref<256x128xf32, #tpu.memory_space<vmem>>, vector<256x128xf32>
    %c0_2 = arith.constant 0 : index
    %c0_3 = arith.constant 0 : index
    %4 = vector.load %arg3[%c0_2, %c0_3] : memref<256x256xbf16, #tpu.memory_space<vmem>>, vector<256x256xbf16>
    %c0_4 = arith.constant 0 : index
    %c0_5 = arith.constant 0 : index
    %5 = vector.load %arg4[%c0_4, %c0_5] : memref<256x128xbf16, #tpu.memory_space<vmem>>, vector<256x128xbf16>
    %cst = arith.constant dense<0.000000e+00> : vector<256x128xf32>
    %6 = tpu.matmul %4, %5, %cst {dimension_numbers = #tpu.dot_dimension_numbers<[1], [0], [0], [1], [0, 0, 1, 1], [], []>} : vector<256x256xbf16>, vector<256x128xbf16>, vector<256x128xf32> -> vector<256x128xf32>
    %7 = arith.addf %3, %6 : vector<256x128xf32>
    %c0_6 = arith.constant 0 : index
    %c0_7 = arith.constant 0 : index
    %8 = vector.load %arg7[%c0_6, %c0_7] : memref<256x128xf32, #tpu.memory_space<vmem>>, vector<256x128xf32>
    tpu.vector_store %arg7[%c0_6, %c0_7], %7 {strides = array<i32>} : memref<256x128xf32, #tpu.memory_space<vmem>>, vector<256x128xf32>,
    %c2_i32 = arith.constant 2 : i32
    %9 = arith.cmpi eq, %arg2, %c2_i32 : i32
    %10 = arith.extui %9 : i1 to i32
    %c0_i32_8 = arith.constant 0 : i32
    %11 = arith.cmpi ne, %10, %c0_i32_8 : i32
    scf.if %11 {
      %c0_9 = arith.constant 0 : index
      %c0_10 = arith.constant 0 : index
      %12 = vector.load %arg7[%c0_9, %c0_10] : memref<256x128xf32, #tpu.memory_space<vmem>>, vector<256x128xf32>
      %c0_11 = arith.constant 0 : index
      %c0_12 = arith.constant 0 : index
      %13 = vector.load %arg5[%c0_11, %c0_12] : memref<1x128xf32, #tpu.memory_space<vmem>>, vector<1x128xf32>
      %14 = vector.broadcast %13 : vector<1x128xf32> to vector<256x128xf32>
      %15 = arith.addf %12, %14 : vector<256x128xf32>
      %c0_13 = arith.constant 0 : index
      %c0_14 = arith.constant 0 : index
      %16 = vector.load %arg6[%c0_13, %c0_14] : memref<256x128xf32, #tpu.memory_space<vmem>>, vector<256x128xf32>
      tpu.vector_store %arg6[%c0_13, %c0_14], %15 {strides = array<i32>} : memref<256x128xf32, #tpu.memory_space<vmem>>, vector<256x128xf32>,
    } else {
    }
    return
  }
  func.func @transform_0(%arg0: i32, %arg1: i32, %arg2: i32) -> (i32, i32) {
    %c0_i32 = arith.constant 0 : i32
    return %arg0, %arg2 : i32, i32
  }
  func.func @transform_1(%arg0: i32, %arg1: i32, %arg2: i32) -> (i32, i32) {
    %c0_i32 = arith.constant 0 : i32
    return %arg2, %arg1 : i32, i32
  }
  func.func @transform_2(%arg0: i32, %arg1: i32, %arg2: i32) -> (i32, i32) {
    %c0_i32 = arith.constant 0 : i32
    %c0_i32_0 = arith.constant 0 : i32
    return %c0_i32, %arg1 : i32, i32
  }
  func.func @transform_3(%arg0: i32, %arg1: i32, %arg2: i32) -> (i32, i32) {
    %c0_i32 = arith.constant 0 : i32
    return %arg0, %arg1 : i32, i32
  }
}

module attributes {stable_mosaic.version = 11 : i64} {
  func.func @_matmul_bias_kernel(%arg0: i32, %arg1: i32, %arg2: i32, %arg3: memref<256x384xbf16, #tpu.memory_space<vmem>>, %arg4: memref<384x128xbf16, #tpu.memory_space<vmem>>, %arg5: memref<1x128xf32, #tpu.memory_space<vmem>>, %arg6: memref<256x128xf32, #tpu.memory_space<vmem>>, %arg7: memref<256x128xf32, #tpu.memory_space<vmem>>) attributes {dimension_semantics = [#tpu.dimension_semantics<parallel>, #tpu.dimension_semantics<parallel>, #tpu.dimension_semantics<arbitrary>], iteration_bounds = array<i64: 2, 1, 1>, scalar_prefetch = 0 : i64, scratch_operands = 1 : i64, tpu.core_type = #tpu.core_type<tc>, window_params = [{transform_indices = @transform_0, window_bounds = array<i64: 256, 384>}, {transform_indices = @transform_1, window_bounds = array<i64: 384, 128>}, {transform_indices = @transform_2, window_bounds = array<i64: 1, 128>}, {transform_indices = @transform_3, window_bounds = array<i64: 256, 128>}]} {
    %c0_i32 = arith.constant 0 : i32
    %0 = arith.cmpi eq, %arg2, %c0_i32 : i32
    %1 = arith.extui %0 : i1 to i32
    %c0_i32_0 = arith.constant 0 : i32
    %2 = arith.cmpi ne, %1, %c0_i32_0 : i32
    scf.if %2 {
      %cst_10 = arith.constant 0.000000e+00 : f32
      %12 = vector.broadcast %cst_10 : f32 to vector<256x128xf32>
      %c0_11 = arith.constant 0 : index
      %c0_12 = arith.constant 0 : index
      %13 = vector.load %arg7[%c0_11, %c0_12] : memref<256x128xf32, #tpu.memory_space<vmem>>, vector<256x128xf32>
      tpu.vector_store %arg7[%c0_11, %c0_12], %12 {strides = array<i32>} : memref<256x128xf32, #tpu.memory_space<vmem>>, vector<256x128xf32>,
    } else {
    }
    %c0 = arith.constant 0 : index
    %c0_1 = arith.constant 0 : index
    %3 = vector.load %arg7[%c0, %c0_1] : memref<256x128xf32, #tpu.memory_space<vmem>>, vector<256x128xf32>
    %c0_2 = arith.constant 0 : index
    %c0_3 = arith.constant 0 : index
    %4 = vector.load %arg3[%c0_2, %c0_3] : memref<256x384xbf16, #tpu.memory_space<vmem>>, vector<256x384xbf16>
    %c0_4 = arith.constant 0 : index
    %c0_5 = arith.constant 0 : index
    %5 = vector.load %arg4[%c0_4, %c0_5] : memref<384x128xbf16, #tpu.memory_space<vmem>>, vector<384x128xbf16>
    %cst = arith.constant dense<0.000000e+00> : vector<256x128xf32>
    %6 = tpu.matmul %4, %5, %cst {dimension_numbers = #tpu.dot_dimension_numbers<[1], [0], [0], [1], [0, 0, 1, 1], [], []>} : vector<256x384xbf16>, vector<384x128xbf16>, vector<256x128xf32> -> vector<256x128xf32>
    %7 = arith.addf %3, %6 : vector<256x128xf32>
    %c0_6 = arith.constant 0 : index
    %c0_7 = arith.constant 0 : index
    %8 = vector.load %arg7[%c0_6, %c0_7] : memref<256x128xf32, #tpu.memory_space<vmem>>, vector<256x128xf32>
    tpu.vector_store %arg7[%c0_6, %c0_7], %7 {strides = array<i32>} : memref<256x128xf32, #tpu.memory_space<vmem>>, vector<256x128xf32>,
    %c0_i32_8 = arith.constant 0 : i32
    %9 = arith.cmpi eq, %arg2, %c0_i32_8 : i32
    %10 = arith.extui %9 : i1 to i32
    %c0_i32_9 = arith.constant 0 : i32
    %11 = arith.cmpi ne, %10, %c0_i32_9 : i32
    scf.if %11 {
      %c0_10 = arith.constant 0 : index
      %c0_11 = arith.constant 0 : index
      %12 = vector.load %arg7[%c0_10, %c0_11] : memref<256x128xf32, #tpu.memory_space<vmem>>, vector<256x128xf32>
      %c0_12 = arith.constant 0 : index
      %c0_13 = arith.constant 0 : index
      %13 = vector.load %arg5[%c0_12, %c0_13] : memref<1x128xf32, #tpu.memory_space<vmem>>, vector<1x128xf32>
      %14 = vector.broadcast %13 : vector<1x128xf32> to vector<256x128xf32>
      %15 = arith.addf %12, %14 : vector<256x128xf32>
      %c0_14 = arith.constant 0 : index
      %c0_15 = arith.constant 0 : index
      %16 = vector.load %arg6[%c0_14, %c0_15] : memref<256x128xf32, #tpu.memory_space<vmem>>, vector<256x128xf32>
      tpu.vector_store %arg6[%c0_14, %c0_15], %15 {strides = array<i32>} : memref<256x128xf32, #tpu.memory_space<vmem>>, vector<256x128xf32>,
    } else {
    }
    return
  }
  func.func @transform_0(%arg0: i32, %arg1: i32, %arg2: i32) -> (i32, i32) {
    %c0_i32 = arith.constant 0 : i32
    return %arg0, %arg2 : i32, i32
  }
  func.func @transform_1(%arg0: i32, %arg1: i32, %arg2: i32) -> (i32, i32) {
    %c0_i32 = arith.constant 0 : i32
    return %arg2, %arg1 : i32, i32
  }
  func.func @transform_2(%arg0: i32, %arg1: i32, %arg2: i32) -> (i32, i32) {
    %c0_i32 = arith.constant 0 : i32
    %c0_i32_0 = arith.constant 0 : i32
    return %c0_i32, %arg1 : i32, i32
  }
  func.func @transform_3(%arg0: i32, %arg1: i32, %arg2: i32) -> (i32, i32) {
    %c0_i32 = arith.constant 0 : i32
    return %arg0, %arg1 : i32, i32
  }
}

</mosaic_0001>

<bundles_post_ra>
// kernel: mul.360
= control target key start
LH: loop header
LB: loop body
LE: loop exit
PB: predicated region body
PF: predicated region fallthrough
CT: control target
= control target key end

     0   :  { %s474_s0 = inlined_call_operand.vmem [shape: f32[2,16], index: 0, kind: input, shape index: {}]   ;;  %s475_s1 = inlined_call_operand.vmem [shape: f32[2,16,16,16], index: 1, kind: output, shape index: {}]  }
   0x1   :  { %v211_v0 = vld [vmem:[%s474_s0] ss:$0 sm:$0xff]  ;;  %v216_v1 = vld [vmem:[%s474_s0 + $0x1] ss:$0 sm:$0xff] }
   0x2   :  { %5 = vst [vmem:[%s475_s1] sm:$0xff] %v211_v0  ;;  %135 = vst [vmem:[%s475_s1 + $0x100] sm:$0xff] %v216_v1 }
   0x3   :  { %136 = vst [vmem:[%s475_s1 + $0x10] sm:$0xff] %v211_v0  ;;  %137 = vst [vmem:[%s475_s1 + $0x110] sm:$0xff] %v216_v1 }
   0x4   :  { %138 = vst [vmem:[%s475_s1 + $0x20] sm:$0xff] %v211_v0  ;;  %139 = vst [vmem:[%s475_s1 + $0x120] sm:$0xff] %v216_v1 }
   0x5   :  { %140 = vst [vmem:[%s475_s1 + $0x30] sm:$0xff] %v211_v0  ;;  %141 = vst [vmem:[%s475_s1 + $0x130] sm:$0xff] %v216_v1 }
   0x6   :  { %142 = vst [vmem:[%s475_s1 + $0x40] sm:$0xff] %v211_v0  ;;  %143 = vst [vmem:[%s475_s1 + $0x140] sm:$0xff] %v216_v1 }
   0x7   :  { %144 = vst [vmem:[%s475_s1 + $0x50] sm:$0xff] %v211_v0  ;;  %145 = vst [vmem:[%s475_s1 + $0x150] sm:$0xff] %v216_v1 }
   0x8   :  { %146 = vst [vmem:[%s475_s1 + $0x60] sm:$0xff] %v211_v0  ;;  %147 = vst [vmem:[%s475_s1 + $0x160] sm:$0xff] %v216_v1 }
   0x9   :  { %148 = vst [vmem:[%s475_s1 + $0x70] sm:$0xff] %v211_v0  ;;  %149 = vst [vmem:[%s475_s1 + $0x170] sm:$0xff] %v216_v1 }
   0xa   :  { %150 = vst [vmem:[%s475_s1 + $0x80] sm:$0xff] %v211_v0  ;;  %151 = vst [vmem:[%s475_s1 + $0x180] sm:$0xff] %v216_v1 }
   0xb   :  { %152 = vst [vmem:[%s475_s1 + $0x90] sm:$0xff] %v211_v0  ;;  %153 = vst [vmem:[%s475_s1 + $0x190] sm:$0xff] %v216_v1 }
   0xc   :  { %154 = vst [vmem:[%s475_s1 + $0xa0] sm:$0xff] %v211_v0  ;;  %155 = vst [vmem:[%s475_s1 + $0x1a0] sm:$0xff] %v216_v1 }
   0xd   :  { %156 = vst [vmem:[%s475_s1 + $0xb0] sm:$0xff] %v211_v0  ;;  %157 = vst [vmem:[%s475_s1 + $0x1b0] sm:$0xff] %v216_v1 }
   0xe   :  { %158 = vst [vmem:[%s475_s1 + $0xc0] sm:$0xff] %v211_v0  ;;  %159 = vst [vmem:[%s475_s1 + $0x1c0] sm:$0xff] %v216_v1 }
   0xf   :  { %160 = vst [vmem:[%s475_s1 + $0xd0] sm:$0xff] %v211_v0  ;;  %161 = vst [vmem:[%s475_s1 + $0x1d0] sm:$0xff] %v216_v1 }
  0x10   :  { %162 = vst [vmem:[%s475_s1 + $0xe0] sm:$0xff] %v211_v0  ;;  %163 = vst [vmem:[%s475_s1 + $0x1e0] sm:$0xff] %v216_v1 }
  0x11   :  { %164 = vst [vmem:[%s475_s1 + $0xf0] sm:$0xff] %v211_v0  ;;  %165 = vst [vmem:[%s475_s1 + $0x1f0] sm:$0xff] %v216_v1 }
  0x12   :  { %166 = vst [vmem:[%s475_s1 + $0x8] sm:$0xff] %v211_v0  ;;  %167 = vst [vmem:[%s475_s1 + $0x108] sm:$0xff] %v216_v1 }
  0x13   :  { %168 = vst [vmem:[%s475_s1 + $0x18] sm:$0xff] %v211_v0  ;;  %169 = vst [vmem:[%s475_s1 + $0x118] sm:$0xff] %v216_v1 }
  0x14   :  { %170 = vst [vmem:[%s475_s1 + $0x28] sm:$0xff] %v211_v0  ;;  %171 = vst [vmem:[%s475_s1 + $0x128] sm:$0xff] %v216_v1 }
  0x15   :  { %172 = vst [vmem:[%s475_s1 + $0x38] sm:$0xff] %v211_v0  ;;  %173 = vst [vmem:[%s475_s1 + $0x138] sm:$0xff] %v216_v1 }
  0x16   :  { %174 = vst [vmem:[%s475_s1 + $0x48] sm:$0xff] %v211_v0  ;;  %175 = vst [vmem:[%s475_s1 + $0x148] sm:$0xff] %v216_v1 }
  0x17   :  { %176 = vst [vmem:[%s475_s1 + $0x58] sm:$0xff] %v211_v0  ;;  %177 = vst [vmem:[%s475_s1 + $0x158] sm:$0xff] %v216_v1 }
  0x18   :  { %178 = vst [vmem:[%s475_s1 + $0x68] sm:$0xff] %v211_v0  ;;  %179 = vst [vmem:[%s475_s1 + $0x168] sm:$0xff] %v216_v1 }
  0x19   :  { %180 = vst [vmem:[%s475_s1 + $0x78] sm:$0xff] %v211_v0  ;;  %181 = vst [vmem:[%s475_s1 + $0x178] sm:$0xff] %v216_v1 }
  0x1a   :  { %182 = vst [vmem:[%s475_s1 + $0x88] sm:$0xff] %v211_v0  ;;  %183 = vst [vmem:[%s475_s1 + $0x188] sm:$0xff] %v216_v1 }
  0x1b   :  { %184 = vst [vmem:[%s475_s1 + $0x98] sm:$0xff] %v211_v0  ;;  %185 = vst [vmem:[%s475_s1 + $0x198] sm:$0xff] %v216_v1 }
  0x1c   :  { %186 = vst [vmem:[%s475_s1 + $0xa8] sm:$0xff] %v211_v0  ;;  %187 = vst [vmem:[%s475_s1 + $0x1a8] sm:$0xff] %v216_v1 }
  0x1d   :  { %188 = vst [vmem:[%s475_s1 + $0xb8] sm:$0xff] %v211_v0  ;;  %189 = vst [vmem:[%s475_s1 + $0x1b8] sm:$0xff] %v216_v1 }
  0x1e   :  { %190 = vst [vmem:[%s475_s1 + $0xc8] sm:$0xff] %v211_v0  ;;  %191 = vst [vmem:[%s475_s1 + $0x1c8] sm:$0xff] %v216_v1 }
  0x1f   :  { %192 = vst [vmem:[%s475_s1 + $0xd8] sm:$0xff] %v211_v0  ;;  %193 = vst [vmem:[%s475_s1 + $0x1d8] sm:$0xff] %v216_v1 }
  0x20   :  { %194 = vst [vmem:[%s475_s1 + $0xe8] sm:$0xff] %v211_v0  ;;  %195 = vst [vmem:[%s475_s1 + $0x1e8] sm:$0xff] %v216_v1 }
  0x21   :  { %196 = vst [vmem:[%s475_s1 + $0xf8] sm:$0xff] %v211_v0  ;;  %197 = vst [vmem:[%s475_s1 + $0x1f8] sm:$0xff] %v216_v1 }

// kernel: resunet_plusplus_forward.19
= control target key start
LH: loop header
LB: loop body
LE: loop exit
PB: predicated region body
PF: predicated region fallthrough
CT: control target
= control target key end

     0   :  { %s1425_s12 = smov 0   ;;  %s1427_s13 = smov 0   ;;  %s1618_s0 = inlined_call_operand.vmem [shape: bf16[512,256], index: 0, kind: input, shape index: {}]   ;;  %s1619_s1 = inlined_call_operand.vmem [shape: bf16[256,128], index: 1, kind: input, shape index: {}]   ;;  %s1620_s2 = inlined_call_operand.vmem [shape: f32[1,128], index: 2, kind: input, shape index: {}]   ;;  %s1621_s3 = inlined_call_operand.vmem [shape: f32[512,128], index: 3, kind: output, shape index: {}]  }
   0x1   :  { %s1429_s14 = smov 0  }
   0x2 LB: > { %s32_s15 = sadd.s32 1, %s1399_s13  ;;  %p1107_p0 = scmp.ge.s32.totalorder %s1403_s14, 1  ;;  %s1403_s14 = sphi %s1429_s14, %s13_s14   ;;  %s1399_s13 = sphi %s1427_s13, %s1623_s13   ;;  %s1395_s12 = sphi %s1425_s12, %s1622_s12  }
   0x3   : > { %p34_p1 = scmp.ge.s32.totalorder %s32_s15, 2  ;;  %p191_p2 = scmp.lt.s32.totalorder %s1403_s14, 3 }
   0x5   : > { %s1625_s15 = smov (%p34_p1, %s32_s15), 0  ;;  %p192_p3 = pnand %p1107_p0, %p191_p2 }
   0x6   : > { %s1108_s18 = sshll.u32 (!%p192_p3), %s1395_s12, 5 }
   0x7   : > { %195 = sbr.rel (%p192_p3) target bundleno = 305 (0x131), region = 32  ;;  %p236_p4 = scmp.lt.s32.totalorder (!%p192_p3), %s1108_s18, 63 }
   0xc   : > { %v1317_v0 = vld [vmem:[%s1619_s1 + $0x78] sm:$0xff]   ;;  %v1319_v2 = vld [vmem:[%s1619_s1 + $0x70] sm:$0xff]   ;;  %v1321_v4 = vld [vmem:[%s1619_s1 + $0x68] sm:$0xff]   ;;  %s1627_s18 = smov (!%p236_p4, %s1108_s18), 63 }
   0xd   : > { %v1318_v1 = vld [vmem:[%s1619_s1 + $0x38] sm:$0xff]   ;;  %1165 = vmatprep.subr.bf16.mxu0 %v1317_v0  ;;  %1277 = vmatprep.subr.bf16.mxu1 %v1317_v0  ;;  %v1320_v3 = vld [vmem:[%s1619_s1 + $0x30] sm:$0xff]   ;;  %v1322_v5 = vld [vmem:[%s1619_s1 + $0x28] sm:$0xff]   ;;  %s1164_s6 = sshll.u32 %s1627_s18, 3 }
   0xe   : > { %1166 = vmatpush3.bf16.msra.mxu0 %v1318_v1  ;;  %1285 = vmatpush3.bf16.msra.mxu1 %v1318_v1  ;;  %v1323_v6 = vld [vmem:[%s1619_s1 + $0x60] sm:$0xff]   ;;  %v1325_v8 = vld [vmem:[%s1619_s1 + $0x58] sm:$0xff]   ;;  %s1478_s11 = scalar_lea.vmem %s1618_s0, %s1164_s6  ;;  %v1327_v10 = vld [vmem:[%s1619_s1 + $0x50] sm:$0xff]   ;;  %s1543_s8 = scalar_lea.vmem %s1621_s3, %s1164_s6 }
   0xf   : > { %1167 = vmatprep.subr.bf16.mxu0 %v1319_v2  ;;  %1278 = vmatprep.subr.bf16.mxu1 %v1319_v2  ;;  %v1324_v7 = vld [vmem:[%s1619_s1 + $0x20] sm:$0xff]   ;;  %v1326_v9 = vld [vmem:[%s1619_s1 + $0x18] sm:$0xff]   ;;  %v1328_v13 = vld [vmem:[%s1619_s1 + $0x10] sm:$0xff]  }
  0x10   : > { %v1335_v11 = vld [vmem:[%s1478_s11 + $0x4] ss:$8 sps:$4 sm:$0xff]   ;;  %v1333_v18 = vld [vmem:[%s1478_s11] ss:$8 sps:$4 sm:$0xff]   ;;  %v1339_v20 = vld [vmem:[%s1478_s11 + $0x14] ss:$8 sps:$4 sm:$0xff]  }
  0x11   : > { %v1338_v12 = vld [vmem:[%s1478_s11 + $0x84] ss:$8 sps:$4 sm:$0xff]   ;;  %688 = vmatprep.mubr.bf16.mxu0 %v1335_v11  ;;  %v1336_v19 = vld [vmem:[%s1478_s11 + $0x80] ss:$8 sps:$4 sm:$0xff]   ;;  %v1341_v21 = vld [vmem:[%s1478_s11 + $0x94] ss:$8 sps:$4 sm:$0xff]  }
  0x12   : > { %1168 = vmatpush3.bf16.msra.mxu0 %v1320_v3  ;;  %1286 = vmatpush3.bf16.msra.mxu1 %v1320_v3  ;;  %v1329_v14 = vld [vmem:[%s1619_s1 + $0x48] sm:$0xff]   ;;  %v1331_v16 = vld [vmem:[%s1619_s1 + $0x40] sm:$0xff]   ;;  %v1343_v22 = vld [vmem:[%s1478_s11 + $0x10] ss:$8 sps:$4 sm:$0xff]  }
  0x13   : > { %1169 = vmatprep.subr.bf16.mxu0 %v1321_v4  ;;  %1279 = vmatprep.subr.bf16.mxu1 %v1321_v4  ;;  %v1330_v15 = vld [vmem:[%s1619_s1 + $0x8] sm:$0xff]   ;;  %v1332_v17 = vld [vmem:[%s1619_s1] sm:$0xff]   ;;  %v1344_v23 = vld [vmem:[%s1478_s11 + $0x90] ss:$8 sps:$4 sm:$0xff]  }
  0x14   : > { %752 = vmatprep.mubr.bf16.mxu1 %v1338_v12  ;;  %v1345_v24 = vld [vmem:[%s1478_s11 + $0x24] ss:$8 sps:$4 sm:$0xff]   ;;  %v1349_v26 = vld [vmem:[%s1478_s11 + $0x20] ss:$8 sps:$4 sm:$0xff]   ;;  %v1351_v28 = vld [vmem:[%s1478_s11 + $0x34] ss:$8 sps:$4 sm:$0xff]  }
  0x15   : > { %v1347_v25 = vld [vmem:[%s1478_s11 + $0xa4] ss:$8 sps:$4 sm:$0xff]   ;;  %v1350_v27 = vld [vmem:[%s1478_s11 + $0xa0] ss:$8 sps:$4 sm:$0xff]   ;;  %v1353_v29 = vld [vmem:[%s1478_s11 + $0xb4] ss:$8 sps:$4 sm:$0xff]  }
  0x16   : > { %1170 = vmatpush3.bf16.msra.mxu0 %v1322_v5  ;;  %1287 = vmatpush3.bf16.msra.mxu1 %v1322_v5  ;;  %v1355_v30 = vld [vmem:[%s1478_s11 + $0x30] ss:$8 sps:$4 sm:$0xff]   ;;  %v1357_v32 = vld [vmem:[%s1478_s11 + $0x44] ss:$8 sps:$4 sm:$0xff]   ;;  %v1361_v34 = vld [vmem:[%s1478_s11 + $0x40] ss:$8 sps:$4 sm:$0xff]  }
  0x17   : > { %1171 = vmatprep.subr.bf16.mxu0 %v1323_v6  ;;  %1280 = vmatprep.subr.bf16.mxu1 %v1323_v6  ;;  %v1356_v31 = vld [vmem:[%s1478_s11 + $0xb0] ss:$8 sps:$4 sm:$0xff]   ;;  %v1359_v33 = vld [vmem:[%s1478_s11 + $0xc4] ss:$8 sps:$4 sm:$0xff]   ;;  %v1362_v35 = vld [vmem:[%s1478_s11 + $0xc0] ss:$8 sps:$4 sm:$0xff]  }
  0x18   : > { %v1363_v36 = vld [vmem:[%s1478_s11 + $0x54] ss:$8 sps:$4 sm:$0xff]   ;;  %v1367_v38 = vld [vmem:[%s1478_s11 + $0x50] ss:$8 sps:$4 sm:$0xff]   ;;  %v1369_v40 = vld [vmem:[%s1478_s11 + $0x64] ss:$8 sps:$4 sm:$0xff]  }
  0x19   : > { %v1365_v37 = vld [vmem:[%s1478_s11 + $0xd4] ss:$8 sps:$4 sm:$0xff]   ;;  %v1368_v39 = vld [vmem:[%s1478_s11 + $0xd0] ss:$8 sps:$4 sm:$0xff]   ;;  %v1371_v41 = vld [vmem:[%s1478_s11 + $0xe4] ss:$8 sps:$4 sm:$0xff]  }
  0x1a   : > { %1172 = vmatpush3.bf16.msra.mxu0 %v1324_v7  ;;  %1288 = vmatpush3.bf16.msra.mxu1 %v1324_v7  ;;  %v1373_v42 = vld [vmem:[%s1478_s11 + $0x60] ss:$8 sps:$4 sm:$0xff]   ;;  %v1375_v44 = vld [vmem:[%s1478_s11 + $0x74] ss:$8 sps:$4 sm:$0xff]   ;;  %v1379_v46 = vld [vmem:[%s1478_s11 + $0x70] ss:$8 sps:$4 sm:$0xff]  }
  0x1b   : > { %1173 = vmatprep.subr.bf16.mxu0 %v1325_v8  ;;  %1281 = vmatprep.subr.bf16.mxu1 %v1325_v8  ;;  %v1374_v43 = vld [vmem:[%s1478_s11 + $0xe0] ss:$8 sps:$4 sm:$0xff]   ;;  %v1377_v45 = vld [vmem:[%s1478_s11 + $0xf4] ss:$8 sps:$4 sm:$0xff]   ;;  %v1380_v47 = vld [vmem:[%s1478_s11 + $0xf0] ss:$8 sps:$4 sm:$0xff]  }
  0x1c   : > { %v1536_v51 = vld [vmem:[%s1620_s2] ss:$0 sm:$0xff] }
  0x1e   : > { %1174 = vmatpush3.bf16.msra.mxu0 %v1326_v9  ;;  %1289 = vmatpush3.bf16.msra.mxu1 %v1326_v9 }
  0x1f   : > { %1175 = vmatprep.subr.bf16.mxu0 %v1327_v10  ;;  %1282 = vmatprep.subr.bf16.mxu1 %v1327_v10 }
  0x22   : > { %1176 = vmatpush3.bf16.msra.mxu0 %v1328_v13  ;;  %1290 = vmatpush3.bf16.msra.mxu1 %v1328_v13 }
  0x23   : > { %1177 = vmatprep.subr.bf16.mxu0 %v1329_v14  ;;  %1283 = vmatprep.subr.bf16.mxu1 %v1329_v14 }
  0x26   : > { %1178 = vmatpush3.bf16.msra.mxu0 %v1330_v15  ;;  %1291 = vmatpush3.bf16.msra.mxu1 %v1330_v15 }
  0x27   : > { %1179 = vmatprep.subr.bf16.mxu0 %v1331_v16  ;;  %1284 = vmatprep.subr.bf16.mxu1 %v1331_v16 }
  0x2a   : > { %1180 = vmatpush3.bf16.msra.mxu0 %v1332_v17  ;;  %1292 = vmatpush3.bf16.msra.mxu1 %v1332_v17 }
  0x2d   : > { %689 = vmatmul.mubr.bf16.vlgmr.msra.gmra.mxu0 %v1333_v18  ;;  %753 = vmatmul.mubr.bf16.vlgmr.msra.gmra.mxu1 %v1336_v19 }
  0x2e   : > { %696 = vmatprep.mubr.bf16.mxu0 %v1339_v20  ;;  %760 = vmatprep.mubr.bf16.mxu1 %v1341_v21 }
  0x35   : > { %697 = vmatmul.mubr.bf16.gmra.mxu0 %v1343_v22  ;;  %761 = vmatmul.mubr.bf16.gmra.mxu1 %v1344_v23 }
  0x36   : > { %704 = vmatprep.mubr.bf16.mxu0 %v1345_v24  ;;  %768 = vmatprep.mubr.bf16.mxu1 %v1347_v25 }
  0x3d   : > { %705 = vmatmul.mubr.bf16.gmra.mxu0 %v1349_v26  ;;  %769 = vmatmul.mubr.bf16.gmra.mxu1 %v1350_v27 }
  0x3e   : > { %712 = vmatprep.mubr.bf16.mxu0 %v1351_v28  ;;  %776 = vmatprep.mubr.bf16.mxu1 %v1353_v29 }
  0x45   : > { %713 = vmatmul.mubr.bf16.gmra.mxu0 %v1355_v30  ;;  %777 = vmatmul.mubr.bf16.gmra.mxu1 %v1356_v31 }
  0x46   : > { %720 = vmatprep.mubr.bf16.mxu0 %v1357_v32  ;;  %784 = vmatprep.mubr.bf16.mxu1 %v1359_v33 }
  0x4d   : > { %721 = vmatmul.mubr.bf16.gmra.mxu0 %v1361_v34  ;;  %785 = vmatmul.mubr.bf16.gmra.mxu1 %v1362_v35 }
  0x4e   : > { %728 = vmatprep.mubr.bf16.mxu0 %v1363_v36  ;;  %792 = vmatprep.mubr.bf16.mxu1 %v1365_v37 }
  0x55   : > { %729 = vmatmul.mubr.bf16.gmra.mxu0 %v1367_v38  ;;  %793 = vmatmul.mubr.bf16.gmra.mxu1 %v1368_v39 }
  0x56   : > { %736 = vmatprep.mubr.bf16.mxu0 %v1369_v40  ;;  %800 = vmatprep.mubr.bf16.mxu1 %v1371_v41 }
  0x5d   : > { %737 = vmatmul.mubr.bf16.gmra.mxu0 %v1373_v42  ;;  %801 = vmatmul.mubr.bf16.gmra.mxu1 %v1374_v43 }
  0x5e   : > { %744 = vmatprep.mubr.bf16.mxu0 %v1375_v44  ;;  %808 = vmatprep.mubr.bf16.mxu1 %v1377_v45 }
  0x65   : > { %745 = vmatmul.mubr.bf16.gmra.mxu0 %v1379_v46  ;;  %809 = vmatmul.mubr.bf16.gmra.mxu1 %v1380_v47 }
  0xed   : > { %v1181_v48 = vpop.f32.mrf.mxu0  ;;  %v1229_v49 = vpop.f32.mrf.mxu1 }
  0xef   : > { %v1182_v50 = vpop.f32.mrf.mxu0  ;;  %v1230_v52 = vpop.f32.mrf.mxu1 }
  0xf0   : > { %v1183_v53 = vadd.f32 %v1182_v50, %v1181_v48  ;;  %v1231_v54 = vadd.f32 %v1230_v52, %v1229_v49 }
  0xf1   : > { %v1184_v55 = vpop.f32.mrf.mxu0  ;;  %v1232_v56 = vpop.f32.mrf.mxu1 }
  0xf2   : > { %v923_v57 = vadd.f32 %v1183_v53, %v1536_v51  ;;  %v939_v58 = vadd.f32 %v1231_v54, %v1536_v51 }
  0xf3   : > { %v1185_v59 = vpop.f32.mrf.mxu0  ;;  %v1233_v60 = vpop.f32.mrf.mxu1 }
  0xf4   : > { %955 = vst [vmem:[%s1543_s8] sm:$0xff] %v923_v57  ;;  %971 = vst [vmem:[%s1543_s8 + $0x80] sm:$0xff] %v939_v58  ;;  %v1186_v61 = vadd.f32 %v1185_v59, %v1184_v55  ;;  %v1234_v62 = vadd.f32 %v1233_v60, %v1232_v56 }
  0xf5   : > { %v1187_v63 = vpop.f32.mrf.mxu0  ;;  %v1235_v0 = vpop.f32.mrf.mxu1 }
  0xf6   : > { %v924_v1 = vadd.f32 %v1186_v61, %v1536_v51  ;;  %v940_v2 = vadd.f32 %v1234_v62, %v1536_v51 }
  0xf7   : > { %v1188_v3 = vpop.f32.mrf.mxu0  ;;  %v1236_v4 = vpop.f32.mrf.mxu1 }
  0xf8   : > { %956 = vst [vmem:[%s1543_s8 + $0x8] sm:$0xff] %v924_v1  ;;  %972 = vst [vmem:[%s1543_s8 + $0x88] sm:$0xff] %v940_v2  ;;  %v1189_v5 = vadd.f32 %v1188_v3, %v1187_v63  ;;  %v1237_v6 = vadd.f32 %v1236_v4, %v1235_v0 }
  0xf9   : > { %v1190_v7 = vpop.f32.mrf.mxu0  ;;  %v1238_v8 = vpop.f32.mrf.mxu1 }
  0xfa   : > { %v925_v9 = vadd.f32 %v1189_v5, %v1536_v51  ;;  %v941_v10 = vadd.f32 %v1237_v6, %v1536_v51 }
  0xfb   : > { %v1191_v11 = vpop.f32.mrf.mxu0  ;;  %v1239_v12 = vpop.f32.mrf.mxu1 }
  0xfc   : > { %957 = vst [vmem:[%s1543_s8 + $0x10] sm:$0xff] %v925_v9  ;;  %973 = vst [vmem:[%s1543_s8 + $0x90] sm:$0xff] %v941_v10  ;;  %v1192_v13 = vadd.f32 %v1191_v11, %v1190_v7  ;;  %v1240_v14 = vadd.f32 %v1239_v12, %v1238_v8 }
  0xfd   : > { %v1193_v15 = vpop.f32.mrf.mxu0  ;;  %v1241_v16 = vpop.f32.mrf.mxu1 }
  0xfe   : > { %v926_v17 = vadd.f32 %v1192_v13, %v1536_v51  ;;  %v942_v18 = vadd.f32 %v1240_v14, %v1536_v51 }
  0xff   : > { %v1194_v19 = vpop.f32.mrf.mxu0  ;;  %v1242_v20 = vpop.f32.mrf.mxu1 }
 0x100   : > { %958 = vst [vmem:[%s1543_s8 + $0x18] sm:$0xff] %v926_v17  ;;  %974 = vst [vmem:[%s1543_s8 + $0x98] sm:$0xff] %v942_v18  ;;  %v1195_v21 = vadd.f32 %v1194_v19, %v1193_v15  ;;  %v1243_v22 = vadd.f32 %v1242_v20, %v1241_v16 }
 0x101   : > { %v1196_v23 = vpop.f32.mrf.mxu0  ;;  %v1244_v24 = vpop.f32.mrf.mxu1 }
 0x102   : > { %v927_v25 = vadd.f32 %v1195_v21, %v1536_v51  ;;  %v943_v26 = vadd.f32 %v1243_v22, %v1536_v51 }
 0x103   : > { %v1197_v27 = vpop.f32.mrf.mxu0  ;;  %v1245_v28 = vpop.f32.mrf.mxu1 }
 0x104   : > { %959 = vst [vmem:[%s1543_s8 + $0x20] sm:$0xff] %v927_v25  ;;  %975 = vst [vmem:[%s1543_s8 + $0xa0] sm:$0xff] %v943_v26  ;;  %v1198_v29 = vadd.f32 %v1197_v27, %v1196_v23  ;;  %v1246_v30 = vadd.f32 %v1245_v28, %v1244_v24 }
 0x105   : > { %v1199_v31 = vpop.f32.mrf.mxu0  ;;  %v1247_v32 = vpop.f32.mrf.mxu1 }
 0x106   : > { %v928_v33 = vadd.f32 %v1198_v29, %v1536_v51  ;;  %v944_v34 = vadd.f32 %v1246_v30, %v1536_v51 }
 0x107   : > { %v1200_v35 = vpop.f32.mrf.mxu0  ;;  %v1248_v36 = vpop.f32.mrf.mxu1 }
 0x108   : > { %960 = vst [vmem:[%s1543_s8 + $0x28] sm:$0xff] %v928_v33  ;;  %976 = vst [vmem:[%s1543_s8 + $0xa8] sm:$0xff] %v944_v34  ;;  %v1201_v37 = vadd.f32 %v1200_v35, %v1199_v31  ;;  %v1249_v38 = vadd.f32 %v1248_v36, %v1247_v32 }
 0x109   : > { %v1202_v39 = vpop.f32.mrf.mxu0  ;;  %v1250_v40 = vpop.f32.mrf.mxu1 }
 0x10a   : > { %v929_v41 = vadd.f32 %v1201_v37, %v1536_v51  ;;  %v945_v42 = vadd.f32 %v1249_v38, %v1536_v51 }
 0x10b   : > { %v1203_v43 = vpop.f32.mrf.mxu0  ;;  %v1251_v44 = vpop.f32.mrf.mxu1 }
 0x10c   : > { %961 = vst [vmem:[%s1543_s8 + $0x30] sm:$0xff] %v929_v41  ;;  %977 = vst [vmem:[%s1543_s8 + $0xb0] sm:$0xff] %v945_v42  ;;  %v1204_v45 = vadd.f32 %v1203_v43, %v1202_v39  ;;  %v1252_v46 = vadd.f32 %v1251_v44, %v1250_v40 }
 0x10d   : > { %v1205_v47 = vpop.f32.mrf.mxu0  ;;  %v1253_v48 = vpop.f32.mrf.mxu1 }
 0x10e   : > { %v930_v49 = vadd.f32 %v1204_v45, %v1536_v51  ;;  %v946_v50 = vadd.f32 %v1252_v46, %v1536_v51 }
 0x10f   : > { %v1206_v52 = vpop.f32.mrf.mxu0  ;;  %v1254_v53 = vpop.f32.mrf.mxu1 }
 0x110   : > { %962 = vst [vmem:[%s1543_s8 + $0x38] sm:$0xff] %v930_v49  ;;  %978 = vst [vmem:[%s1543_s8 + $0xb8] sm:$0xff] %v946_v50  ;;  %v1207_v54 = vadd.f32 %v1206_v52, %v1205_v47  ;;  %v1255_v55 = vadd.f32 %v1254_v53, %v1253_v48 }
 0x111   : > { %v1208_v56 = vpop.f32.mrf.mxu0  ;;  %v1256_v57 = vpop.f32.mrf.mxu1 }
 0x112   : > { %v931_v58 = vadd.f32 %v1207_v54, %v1536_v51  ;;  %v947_v59 = vadd.f32 %v1255_v55, %v1536_v51 }
 0x113   : > { %v1209_v60 = vpop.f32.mrf.mxu0  ;;  %v1257_v61 = vpop.f32.mrf.mxu1 }
 0x114   : > { %963 = vst [vmem:[%s1543_s8 + $0x40] sm:$0xff] %v931_v58  ;;  %979 = vst [vmem:[%s1543_s8 + $0xc0] sm:$0xff] %v947_v59  ;;  %v1210_v62 = vadd.f32 %v1209_v60, %v1208_v56  ;;  %v1258_v63 = vadd.f32 %v1257_v61, %v1256_v57 }
 0x115   : > { %v1211_v0 = vpop.f32.mrf.mxu0  ;;  %v1259_v1 = vpop.f32.mrf.mxu1 }
 0x116   : > { %v932_v2 = vadd.f32 %v1210_v62, %v1536_v51  ;;  %v948_v3 = vadd.f32 %v1258_v63, %v1536_v51 }
 0x117   : > { %v1212_v4 = vpop.f32.mrf.mxu0  ;;  %v1260_v5 = vpop.f32.mrf.mxu1 }
 0x118   : > { %964 = vst [vmem:[%s1543_s8 + $0x48] sm:$0xff] %v932_v2  ;;  %980 = vst [vmem:[%s1543_s8 + $0xc8] sm:$0xff] %v948_v3  ;;  %v1213_v6 = vadd.f32 %v1212_v4, %v1211_v0  ;;  %v1261_v7 = vadd.f32 %v1260_v5, %v1259_v1 }
 0x119   : > { %v1214_v8 = vpop.f32.mrf.mxu0  ;;  %v1262_v9 = vpop.f32.mrf.mxu1 }
 0x11a   : > { %v933_v10 = vadd.f32 %v1213_v6, %v1536_v51  ;;  %v949_v11 = vadd.f32 %v1261_v7, %v1536_v51 }
 0x11b   : > { %v1215_v12 = vpop.f32.mrf.mxu0  ;;  %v1263_v13 = vpop.f32.mrf.mxu1 }
 0x11c   : > { %965 = vst [vmem:[%s1543_s8 + $0x50] sm:$0xff] %v933_v10  ;;  %981 = vst [vmem:[%s1543_s8 + $0xd0] sm:$0xff] %v949_v11  ;;  %v1216_v14 = vadd.f32 %v1215_v12, %v1214_v8  ;;  %v1264_v15 = vadd.f32 %v1263_v13, %v1262_v9 }
 0x11d   : > { %v1217_v16 = vpop.f32.mrf.mxu0  ;;  %v1265_v17 = vpop.f32.mrf.mxu1 }
 0x11e   : > { %v934_v18 = vadd.f32 %v1216_v14, %v1536_v51  ;;  %v950_v19 = vadd.f32 %v1264_v15, %v1536_v51 }
 0x11f   : > { %v1218_v20 = vpop.f32.mrf.mxu0  ;;  %v1266_v21 = vpop.f32.mrf.mxu1 }
 0x120   : > { %966 = vst [vmem:[%s1543_s8 + $0x58] sm:$0xff] %v934_v18  ;;  %982 = vst [vmem:[%s1543_s8 + $0xd8] sm:$0xff] %v950_v19  ;;  %v1219_v22 = vadd.f32 %v1218_v20, %v1217_v16  ;;  %v1267_v23 = vadd.f32 %v1266_v21, %v1265_v17 }
 0x121   : > { %v1220_v24 = vpop.f32.mrf.mxu0  ;;  %v1268_v25 = vpop.f32.mrf.mxu1 }
 0x122   : > { %v935_v26 = vadd.f32 %v1219_v22, %v1536_v51  ;;  %v951_v27 = vadd.f32 %v1267_v23, %v1536_v51 }
 0x123   : > { %v1221_v28 = vpop.f32.mrf.mxu0  ;;  %v1269_v29 = vpop.f32.mrf.mxu1 }
 0x124   : > { %967 = vst [vmem:[%s1543_s8 + $0x60] sm:$0xff] %v935_v26  ;;  %983 = vst [vmem:[%s1543_s8 + $0xe0] sm:$0xff] %v951_v27  ;;  %v1222_v30 = vadd.f32 %v1221_v28, %v1220_v24  ;;  %v1270_v31 = vadd.f32 %v1269_v29, %v1268_v25 }
 0x125   : > { %v1223_v32 = vpop.f32.mrf.mxu0  ;;  %v1271_v33 = vpop.f32.mrf.mxu1 }
 0x126   : > { %v936_v34 = vadd.f32 %v1222_v30, %v1536_v51  ;;  %v952_v35 = vadd.f32 %v1270_v31, %v1536_v51 }
 0x127   : > { %v1224_v36 = vpop.f32.mrf.mxu0  ;;  %v1272_v37 = vpop.f32.mrf.mxu1 }
 0x128   : > { %968 = vst [vmem:[%s1543_s8 + $0x68] sm:$0xff] %v936_v34  ;;  %984 = vst [vmem:[%s1543_s8 + $0xe8] sm:$0xff] %v952_v35  ;;  %v1225_v38 = vadd.f32 %v1224_v36, %v1223_v32  ;;  %v1273_v39 = vadd.f32 %v1272_v37, %v1271_v33 }
 0x129   : > { %v1226_v40 = vpop.f32.mrf.mxu0  ;;  %v1274_v41 = vpop.f32.mrf.mxu1 }
 0x12a   : > { %v937_v42 = vadd.f32 %v1225_v38, %v1536_v51  ;;  %v953_v43 = vadd.f32 %v1273_v39, %v1536_v51 }
 0x12b   : > { %v1227_v44 = vpop.f32.mrf.mxu0  ;;  %v1275_v45 = vpop.f32.mrf.mxu1 }
 0x12c   : > { %969 = vst [vmem:[%s1543_s8 + $0x70] sm:$0xff] %v937_v42  ;;  %985 = vst [vmem:[%s1543_s8 + $0xf0] sm:$0xff] %v953_v43  ;;  %v1228_v46 = vadd.f32 %v1227_v44, %v1226_v40  ;;  %v1276_v47 = vadd.f32 %v1275_v45, %v1274_v41 }
 0x12e   : > { %v938_v48 = vadd.f32 %v1228_v46, %v1536_v51  ;;  %v954_v49 = vadd.f32 %v1276_v47, %v1536_v51 }
 0x130   : > { %970 = vst [vmem:[%s1543_s8 + $0x78] sm:$0xff] %v938_v48  ;;  %986 = vst [vmem:[%s1543_s8 + $0xf8] sm:$0xff] %v954_v49 }
 0x131 PF: > { %s13_s14 = sadd.s32 1, %s1403_s14   ;;  %s1622_s12 = smov %s1399_s13 }
 0x132   : > { %p10_p5 = scmp.ge.s32.totalorder %s13_s14, 4   ;;  %s1623_s13 = smov %s1625_s15 }
 0x134   :  { %12 = sbr.rel (!%p10_p5) target bundleno = 2 (0x2), region = 76 }

// kernel: resunet_plusplus_forward.14
= control target key start
LH: loop header
LB: loop body
LE: loop exit
PB: predicated region body
PF: predicated region fallthrough
CT: control target
= control target key end

     0   :  { %s885_s12 = smov 0   ;;  %s887_s13 = smov 0   ;;  %s996_s0 = inlined_call_operand.vmem [shape: bf16[128,256], index: 0, kind: input, shape index: {}]   ;;  %s997_s1 = inlined_call_operand.vmem [shape: bf16[256,128], index: 1, kind: input, shape index: {}]   ;;  %s998_s2 = inlined_call_operand.vmem [shape: f32[1,128], index: 2, kind: input, shape index: {}]   ;;  %s999_s3 = inlined_call_operand.vmem [shape: f32[128,128], index: 3, kind: output, shape index: {}]  }
   0x1   :  { %s889_s14 = smov 0  }
   0x2 LB: > { %s32_s15 = sadd.s32 1, %s859_s13  ;;  %p699_p0 = scmp.ge.s32.totalorder %s863_s14, 1  ;;  %s863_s14 = sphi %s889_s14, %s13_s14   ;;  %s859_s13 = sphi %s887_s13, %s1001_s13   ;;  %s855_s12 = sphi %s885_s12, %s1000_s12  }
   0x3   : > { %p34_p1 = scmp.ge.s32.totalorder %s32_s15, 2  ;;  %p191_p2 = scmp.lt.s32.totalorder %s863_s14, 3 }
   0x5   : > { %s1003_s15 = smov (%p34_p1, %s32_s15), 0  ;;  %p192_p3 = pnand %p699_p0, %p191_p2 }
   0x6   : > { %s700_s18 = sshll.u32 (!%p192_p3), %s855_s12, 3 }
   0x7   : > { %195 = sbr.rel (%p192_p3) target bundleno = 257 (0x101), region = 32  ;;  %p236_p4 = scmp.lt.s32.totalorder (!%p192_p3), %s700_s18, 15 }
   0xc   : > { %v813_v0 = vld [vmem:[%s997_s1 + $0x78] sm:$0xff]   ;;  %v815_v2 = vld [vmem:[%s997_s1 + $0x70] sm:$0xff]   ;;  %v817_v4 = vld [vmem:[%s997_s1 + $0x68] sm:$0xff]   ;;  %s1005_s18 = smov (!%p236_p4, %s700_s18), 15 }
   0xd   : > { %v814_v1 = vld [vmem:[%s997_s1 + $0x38] sm:$0xff]   ;;  %733 = vmatprep.subr.bf16.mxu0 %v813_v0  ;;  %773 = vmatprep.subr.bf16.mxu1 %v813_v0  ;;  %v816_v3 = vld [vmem:[%s997_s1 + $0x30] sm:$0xff]   ;;  %v818_v5 = vld [vmem:[%s997_s1 + $0x28] sm:$0xff]   ;;  %s732_s6 = sshll.u32 %s1005_s18, 3 }
   0xe   : > { %734 = vmatpush3.bf16.msra.mxu0 %v814_v1  ;;  %781 = vmatpush3.bf16.msra.mxu1 %v814_v1  ;;  %v819_v6 = vld [vmem:[%s997_s1 + $0x60] sm:$0xff]   ;;  %v821_v8 = vld [vmem:[%s997_s1 + $0x58] sm:$0xff]   ;;  %s938_s11 = scalar_lea.vmem %s996_s0, %s732_s6  ;;  %v823_v10 = vld [vmem:[%s997_s1 + $0x50] sm:$0xff]   ;;  %s977_s8 = scalar_lea.vmem %s999_s3, %s732_s6 }
   0xf   : > { %735 = vmatprep.subr.bf16.mxu0 %v815_v2  ;;  %774 = vmatprep.subr.bf16.mxu1 %v815_v2  ;;  %v820_v7 = vld [vmem:[%s997_s1 + $0x20] sm:$0xff]   ;;  %v822_v9 = vld [vmem:[%s997_s1 + $0x18] sm:$0xff]   ;;  %v824_v13 = vld [vmem:[%s997_s1 + $0x10] sm:$0xff]  }
  0x10   : > { %v831_v11 = vld [vmem:[%s938_s11 + $0x4] ss:$8 sps:$4 sm:$0xff]   ;;  %v829_v18 = vld [vmem:[%s938_s11] ss:$8 sps:$4 sm:$0xff]   ;;  %v835_v20 = vld [vmem:[%s938_s11 + $0x14] ss:$8 sps:$4 sm:$0xff]  }
  0x11   : > { %v834_v12 = vld [vmem:[%s938_s11 + $0x24] ss:$8 sps:$4 sm:$0xff]   ;;  %496 = vmatprep.mubr.bf16.mxu0 %v831_v11  ;;  %v832_v19 = vld [vmem:[%s938_s11 + $0x20] ss:$8 sps:$4 sm:$0xff]   ;;  %v837_v21 = vld [vmem:[%s938_s11 + $0x34] ss:$8 sps:$4 sm:$0xff]  }
  0x12   : > { %736 = vmatpush3.bf16.msra.mxu0 %v816_v3  ;;  %782 = vmatpush3.bf16.msra.mxu1 %v816_v3  ;;  %v825_v14 = vld [vmem:[%s997_s1 + $0x48] sm:$0xff]   ;;  %v827_v16 = vld [vmem:[%s997_s1 + $0x40] sm:$0xff]   ;;  %v839_v22 = vld [vmem:[%s938_s11 + $0x10] ss:$8 sps:$4 sm:$0xff]  }
  0x13   : > { %737 = vmatprep.subr.bf16.mxu0 %v817_v4  ;;  %775 = vmatprep.subr.bf16.mxu1 %v817_v4  ;;  %v826_v15 = vld [vmem:[%s997_s1 + $0x8] sm:$0xff]   ;;  %v828_v17 = vld [vmem:[%s997_s1] sm:$0xff]   ;;  %v840_v23 = vld [vmem:[%s938_s11 + $0x30] ss:$8 sps:$4 sm:$0xff]  }
  0x14   : > { %512 = vmatprep.mubr.bf16.mxu1 %v834_v12  ;;  %v729_v27 = vld [vmem:[%s998_s2] ss:$0 sm:$0xff] }
  0x16   : > { %738 = vmatpush3.bf16.msra.mxu0 %v818_v5  ;;  %783 = vmatpush3.bf16.msra.mxu1 %v818_v5 }
  0x17   : > { %739 = vmatprep.subr.bf16.mxu0 %v819_v6  ;;  %776 = vmatprep.subr.bf16.mxu1 %v819_v6 }
  0x1a   : > { %740 = vmatpush3.bf16.msra.mxu0 %v820_v7  ;;  %784 = vmatpush3.bf16.msra.mxu1 %v820_v7 }
  0x1b   : > { %741 = vmatprep.subr.bf16.mxu0 %v821_v8  ;;  %777 = vmatprep.subr.bf16.mxu1 %v821_v8 }
  0x1e   : > { %742 = vmatpush3.bf16.msra.mxu0 %v822_v9  ;;  %785 = vmatpush3.bf16.msra.mxu1 %v822_v9 }
  0x1f   : > { %743 = vmatprep.subr.bf16.mxu0 %v823_v10  ;;  %778 = vmatprep.subr.bf16.mxu1 %v823_v10 }
  0x22   : > { %744 = vmatpush3.bf16.msra.mxu0 %v824_v13  ;;  %786 = vmatpush3.bf16.msra.mxu1 %v824_v13 }
  0x23   : > { %745 = vmatprep.subr.bf16.mxu0 %v825_v14  ;;  %779 = vmatprep.subr.bf16.mxu1 %v825_v14 }
  0x26   : > { %746 = vmatpush3.bf16.msra.mxu0 %v826_v15  ;;  %787 = vmatpush3.bf16.msra.mxu1 %v826_v15 }
  0x27   : > { %747 = vmatprep.subr.bf16.mxu0 %v827_v16  ;;  %780 = vmatprep.subr.bf16.mxu1 %v827_v16 }
  0x2a   : > { %748 = vmatpush3.bf16.msra.mxu0 %v828_v17  ;;  %788 = vmatpush3.bf16.msra.mxu1 %v828_v17 }
  0x2d   : > { %497 = vmatmul.mubr.bf16.vlgmr.msra.gmra.mxu0 %v829_v18  ;;  %513 = vmatmul.mubr.bf16.vlgmr.msra.gmra.mxu1 %v832_v19 }
  0x2e   : > { %504 = vmatprep.mubr.bf16.mxu0 %v835_v20  ;;  %520 = vmatprep.mubr.bf16.mxu1 %v837_v21 }
  0x35   : > { %505 = vmatmul.mubr.bf16.gmra.mxu0 %v839_v22  ;;  %521 = vmatmul.mubr.bf16.gmra.mxu1 %v840_v23 }
  0xed   : > { %v749_v24 = vpop.f32.mrf.mxu0  ;;  %v761_v25 = vpop.f32.mrf.mxu1 }
  0xef   : > { %v750_v26 = vpop.f32.mrf.mxu0  ;;  %v762_v28 = vpop.f32.mrf.mxu1 }
  0xf0   : > { %v751_v29 = vadd.f32 %v750_v26, %v749_v24  ;;  %v763_v30 = vadd.f32 %v762_v28, %v761_v25 }
  0xf1   : > { %v752_v31 = vpop.f32.mrf.mxu0  ;;  %v764_v32 = vpop.f32.mrf.mxu1 }
  0xf2   : > { %v563_v33 = vadd.f32 %v751_v29, %v729_v27  ;;  %v567_v34 = vadd.f32 %v763_v30, %v729_v27 }
  0xf3   : > { %v753_v35 = vpop.f32.mrf.mxu0  ;;  %v765_v36 = vpop.f32.mrf.mxu1 }
  0xf4   : > { %571 = vst [vmem:[%s977_s8] sm:$0xff] %v563_v33  ;;  %575 = vst [vmem:[%s977_s8 + $0x20] sm:$0xff] %v567_v34  ;;  %v754_v37 = vadd.f32 %v753_v35, %v752_v31  ;;  %v766_v38 = vadd.f32 %v765_v36, %v764_v32 }
  0xf5   : > { %v755_v39 = vpop.f32.mrf.mxu0  ;;  %v767_v40 = vpop.f32.mrf.mxu1 }
  0xf6   : > { %v564_v41 = vadd.f32 %v754_v37, %v729_v27  ;;  %v568_v42 = vadd.f32 %v766_v38, %v729_v27 }
  0xf7   : > { %v756_v43 = vpop.f32.mrf.mxu0  ;;  %v768_v44 = vpop.f32.mrf.mxu1 }
  0xf8   : > { %572 = vst [vmem:[%s977_s8 + $0x8] sm:$0xff] %v564_v41  ;;  %576 = vst [vmem:[%s977_s8 + $0x28] sm:$0xff] %v568_v42  ;;  %v757_v45 = vadd.f32 %v756_v43, %v755_v39  ;;  %v769_v46 = vadd.f32 %v768_v44, %v767_v40 }
  0xf9   : > { %v758_v47 = vpop.f32.mrf.mxu0  ;;  %v770_v48 = vpop.f32.mrf.mxu1 }
  0xfa   : > { %v565_v49 = vadd.f32 %v757_v45, %v729_v27  ;;  %v569_v50 = vadd.f32 %v769_v46, %v729_v27 }
  0xfb   : > { %v759_v51 = vpop.f32.mrf.mxu0  ;;  %v771_v52 = vpop.f32.mrf.mxu1 }
  0xfc   : > { %573 = vst [vmem:[%s977_s8 + $0x10] sm:$0xff] %v565_v49  ;;  %577 = vst [vmem:[%s977_s8 + $0x30] sm:$0xff] %v569_v50  ;;  %v760_v53 = vadd.f32 %v759_v51, %v758_v47  ;;  %v772_v54 = vadd.f32 %v771_v52, %v770_v48 }
  0xfe   : > { %v566_v55 = vadd.f32 %v760_v53, %v729_v27  ;;  %v570_v56 = vadd.f32 %v772_v54, %v729_v27 }
 0x100   : > { %574 = vst [vmem:[%s977_s8 + $0x18] sm:$0xff] %v566_v55  ;;  %578 = vst [vmem:[%s977_s8 + $0x38] sm:$0xff] %v570_v56 }
 0x101 PF: > { %s13_s14 = sadd.s32 1, %s863_s14   ;;  %s1000_s12 = smov %s859_s13 }
 0x102   : > { %p10_p5 = scmp.ge.s32.totalorder %s13_s14, 4   ;;  %s1001_s13 = smov %s1003_s15 }
 0x104   :  { %12 = sbr.rel (!%p10_p5) target bundleno = 2 (0x2), region = 76 }

// kernel: mul.388.clone
= control target key start
LH: loop header
LB: loop body
LE: loop exit
PB: predicated region body
PF: predicated region fallthrough
CT: control target
= control target key end

     0   :  { %s118_s0 = inlined_call_operand.vmem [shape: f32[2,32], index: 0, kind: input, shape index: {}]   ;;  %s119_s1 = inlined_call_operand.vmem [shape: f32[2,8,8,32], index: 1, kind: output, shape index: {}]  }
   0x1   :  { %v4_v0 = vld [vmem:[%s118_s0] ss:$0 sm:$0xff]  ;;  %v38_v1 = vld [vmem:[%s118_s0 + $0x1] ss:$0 sm:$0xff] }
   0x2   :  { %5 = vst [vmem:[%s119_s1] sm:$0xff] %v4_v0  ;;  %39 = vst [vmem:[%s119_s1 + $0x40] sm:$0xff] %v38_v1 }
   0x3   :  { %40 = vst [vmem:[%s119_s1 + $0x8] sm:$0xff] %v4_v0  ;;  %41 = vst [vmem:[%s119_s1 + $0x48] sm:$0xff] %v38_v1 }
   0x4   :  { %42 = vst [vmem:[%s119_s1 + $0x10] sm:$0xff] %v4_v0  ;;  %43 = vst [vmem:[%s119_s1 + $0x50] sm:$0xff] %v38_v1 }
   0x5   :  { %44 = vst [vmem:[%s119_s1 + $0x18] sm:$0xff] %v4_v0  ;;  %45 = vst [vmem:[%s119_s1 + $0x58] sm:$0xff] %v38_v1 }
   0x6   :  { %46 = vst [vmem:[%s119_s1 + $0x20] sm:$0xff] %v4_v0  ;;  %47 = vst [vmem:[%s119_s1 + $0x60] sm:$0xff] %v38_v1 }
   0x7   :  { %48 = vst [vmem:[%s119_s1 + $0x28] sm:$0xff] %v4_v0  ;;  %49 = vst [vmem:[%s119_s1 + $0x68] sm:$0xff] %v38_v1 }
   0x8   :  { %50 = vst [vmem:[%s119_s1 + $0x30] sm:$0xff] %v4_v0  ;;  %51 = vst [vmem:[%s119_s1 + $0x70] sm:$0xff] %v38_v1 }
   0x9   :  { %52 = vst [vmem:[%s119_s1 + $0x38] sm:$0xff] %v4_v0  ;;  %53 = vst [vmem:[%s119_s1 + $0x78] sm:$0xff] %v38_v1 }

// kernel: resunet_plusplus_forward.13
= control target key start
LH: loop header
LB: loop body
LE: loop exit
PB: predicated region body
PF: predicated region fallthrough
CT: control target
= control target key end

     0   :  { %s1089_s12 = smov 0   ;;  %s1091_s13 = smov 0   ;;  %s1228_s0 = inlined_call_operand.vmem [shape: bf16[128,384], index: 0, kind: input, shape index: {}]   ;;  %s1229_s1 = inlined_call_operand.vmem [shape: bf16[384,128], index: 1, kind: input, shape index: {}]   ;;  %s1230_s2 = inlined_call_operand.vmem [shape: f32[1,128], index: 2, kind: input, shape index: {}]   ;;  %s1231_s3 = inlined_call_operand.vmem [shape: f32[128,128], index: 3, kind: output, shape index: {}]  }
   0x1   :  { %s1093_s14 = smov 0  }
   0x2 LB: > { %s32_s15 = sadd.s32 1, %s1063_s13  ;;  %p860_p0 = scmp.ge.s32.totalorder %s1067_s14, 1  ;;  %s1067_s14 = sphi %s1093_s14, %s13_s14   ;;  %s1063_s13 = sphi %s1091_s13, %s1233_s13   ;;  %s1059_s12 = sphi %s1089_s12, %s1232_s12  }
   0x3   : > { %p34_p1 = scmp.ge.s32.totalorder %s32_s15, 2  ;;  %p191_p2 = scmp.lt.s32.totalorder %s1067_s14, 3 }
   0x5   : > { %s1235_s15 = smov (%p34_p1, %s32_s15), 0  ;;  %p192_p3 = pnand %p860_p0, %p191_p2 }
   0x6   : > { %s861_s5 = sshll.u32 (!%p192_p3), %s1059_s12, 3 }
   0x7   : > { %195 = sbr.rel (%p192_p3) target bundleno = 275 (0x113), region = 32  ;;  %p236_p4 = scmp.lt.s32.totalorder (!%p192_p3), %s861_s5, 15 }
   0xc   : > { %v1005_v0 = vld [vmem:[%s1229_s1 + $0x78] sm:$0xff]   ;;  %v1008_v3 = vld [vmem:[%s1229_s1 + $0x70] sm:$0xff]   ;;  %v1011_v6 = vld [vmem:[%s1229_s1 + $0x68] sm:$0xff]   ;;  %s1237_s5 = smov (!%p236_p4, %s861_s5), 15 }
   0xd   : > { %v1006_v1 = vld [vmem:[%s1229_s1 + $0x38] sm:$0xff]   ;;  %904 = vmatprep.subr.bf16.mxu0 %v1005_v0  ;;  %v1009_v4 = vld [vmem:[%s1229_s1 + $0x30] sm:$0xff]   ;;  %v1012_v7 = vld [vmem:[%s1229_s1 + $0x28] sm:$0xff]   ;;  %s980_s27 = smul.u32 12, %s1237_s5  ;;  %s864_s22 = sshll.u32 %s1237_s5, 3 }
   0xe   : > { %v1007_v2 = vld [vmem:[%s1229_s1 + $0xb8] sm:$0xff]   ;;  %905 = vmatpush3.bf16.msra.mxu0 %v1006_v1  ;;  %v1010_v5 = vld [vmem:[%s1229_s1 + $0xb0] sm:$0xff]   ;;  %v1013_v8 = vld [vmem:[%s1229_s1 + $0xa8] sm:$0xff]  }
   0xf   : > { %956 = vmatprep.subr.bf16.mxu1 %v1007_v2  ;;  %906 = vmatprep.subr.bf16.mxu0 %v1008_v3  ;;  %v1014_v9 = vld [vmem:[%s1229_s1 + $0x60] sm:$0xff]   ;;  %v1017_v12 = vld [vmem:[%s1229_s1 + $0x58] sm:$0xff]   ;;  %v1020_v15 = vld [vmem:[%s1229_s1 + $0x50] sm:$0xff]   ;;  %s1179_s16 = scalar_lea.vmem %s1228_s0, %s980_s27  ;;  %s1209_s27 = scalar_lea.vmem %s1231_s3, %s864_s22 }
  0x10   : > { %957 = vmatpush3.bf16.msra.mxu1 %v1007_v2  ;;  %v1015_v10 = vld [vmem:[%s1229_s1 + $0x20] sm:$0xff]   ;;  %v1019_v13 = vld [vmem:[%s1229_s1 + $0x98] sm:$0xff]   ;;  %v1022_v16 = vld [vmem:[%s1229_s1 + $0x90] sm:$0xff]  }
  0x11   : > { %958 = vmatprep.subr.bf16.mxu1 %v1010_v5  ;;  %v1016_v11 = vld [vmem:[%s1229_s1 + $0xa0] sm:$0xff]   ;;  %v1018_v14 = vld [vmem:[%s1229_s1 + $0x18] sm:$0xff]   ;;  %v1021_v17 = vld [vmem:[%s1229_s1 + $0x10] sm:$0xff]  }
  0x12   : > { %907 = vmatpush3.bf16.msra.mxu0 %v1009_v4  ;;  %v1023_v18 = vld [vmem:[%s1229_s1 + $0x48] sm:$0xff]   ;;  %v1026_v21 = vld [vmem:[%s1229_s1 + $0x40] sm:$0xff]   ;;  %v1041_v32 = vld [vmem:[%s1179_s16 + $0x50] ss:$12 sps:$4 sm:$0xff]  }
  0x13   : > { %908 = vmatprep.subr.bf16.mxu0 %v1011_v6  ;;  %v1024_v19 = vld [vmem:[%s1229_s1 + $0x8] sm:$0xff]   ;;  %v1028_v22 = vld [vmem:[%s1229_s1 + $0x80] sm:$0xff]   ;;  %v1039_v33 = vld [vmem:[%s1179_s16 + $0x30] ss:$12 sps:$4 sm:$0xff]  }
  0x14   : > { %959 = vmatpush3.bf16.msra.mxu1 %v1010_v5  ;;  %v1025_v20 = vld [vmem:[%s1229_s1 + $0x88] sm:$0xff]   ;;  %v1031_v23 = vld [vmem:[%s1179_s16 + $0x4] ss:$12 sps:$4 sm:$0xff]   ;;  %v1037_v31 = vld [vmem:[%s1179_s16 + $0x34] ss:$12 sps:$4 sm:$0xff]  }
  0x15   : > { %960 = vmatprep.subr.bf16.mxu1 %v1013_v8  ;;  %v1032_v24 = vld [vmem:[%s1179_s16 + $0x8] ss:$12 sps:$4 sm:$0xff]   ;;  %v1027_v25 = vld [vmem:[%s1229_s1] sm:$0xff]   ;;  %592 = vmatprep.mubr.bf16.mxu0 %v1031_v23  ;;  %v1042_v34 = vld [vmem:[%s1179_s16 + $0x4c] ss:$12 sps:$4 sm:$0xff]  }
  0x16   : > { %909 = vmatpush3.bf16.msra.mxu0 %v1012_v7  ;;  %972 = vmatprep.mubr.bf16.mxu1 %v1032_v24  ;;  %v1029_v26 = vld [vmem:[%s1179_s16] ss:$12 sps:$4 sm:$0xff]   ;;  %v1034_v27 = vld [vmem:[%s1179_s16 + $0x1c] ss:$12 sps:$4 sm:$0xff]   ;;  %v1040_v29 = vld [vmem:[%s1179_s16 + $0x38] ss:$12 sps:$4 sm:$0xff]  }
  0x17   : > { %910 = vmatprep.subr.bf16.mxu0 %v1014_v9  ;;  %v1033_v28 = vld [vmem:[%s1179_s16 + $0x20] ss:$12 sps:$4 sm:$0xff]   ;;  %v1036_v30 = vld [vmem:[%s1179_s16 + $0x18] ss:$12 sps:$4 sm:$0xff]   ;;  %v1044_v35 = vld [vmem:[%s1179_s16 + $0x48] ss:$12 sps:$4 sm:$0xff]  }
  0x18   : > { %961 = vmatpush3.bf16.msra.mxu1 %v1013_v8  ;;  %v901_v42 = vld [vmem:[%s1230_s2] ss:$0 sm:$0xff] }
  0x19   : > { %962 = vmatprep.subr.bf16.mxu1 %v1016_v11 }
  0x1a   : > { %911 = vmatpush3.bf16.msra.mxu0 %v1015_v10 }
  0x1b   : > { %912 = vmatprep.subr.bf16.mxu0 %v1017_v12 }
  0x1c   : > { %963 = vmatpush3.bf16.msra.mxu1 %v1016_v11 }
  0x1d   : > { %964 = vmatprep.subr.bf16.mxu1 %v1019_v13 }
  0x1e   : > { %913 = vmatpush3.bf16.msra.mxu0 %v1018_v14 }
  0x1f   : > { %914 = vmatprep.subr.bf16.mxu0 %v1020_v15 }
  0x20   : > { %965 = vmatpush3.bf16.msra.mxu1 %v1019_v13 }
  0x21   : > { %966 = vmatprep.subr.bf16.mxu1 %v1022_v16 }
  0x22   : > { %915 = vmatpush3.bf16.msra.mxu0 %v1021_v17 }
  0x23   : > { %916 = vmatprep.subr.bf16.mxu0 %v1023_v18 }
  0x24   : > { %967 = vmatpush3.bf16.msra.mxu1 %v1022_v16 }
  0x25   : > { %968 = vmatprep.subr.bf16.mxu1 %v1025_v20 }
  0x26   : > { %917 = vmatpush3.bf16.msra.mxu0 %v1024_v19 }
  0x27   : > { %918 = vmatprep.subr.bf16.mxu0 %v1026_v21 }
  0x28   : > { %969 = vmatpush3.bf16.msra.mxu1 %v1025_v20 }
  0x29   : > { %970 = vmatprep.subr.bf16.mxu1 %v1028_v22 }
  0x2a   : > { %919 = vmatpush3.bf16.msra.mxu0 %v1027_v25 }
  0x2c   : > { %971 = vmatpush3.bf16.msra.mxu1 %v1028_v22 }
  0x2d   : > { %593 = vmatmul.mubr.bf16.vlgmr.msra.gmra.mxu0 %v1029_v26 }
  0x2e   : > { %600 = vmatprep.mubr.bf16.mxu0 %v1034_v27 }
  0x2f   : > { %973 = vmatmul.mubr.bf16.vlgmr.msra.gmra.mxu1 %v1033_v28 }
  0x30   : > { %976 = vmatprep.mubr.bf16.mxu1 %v1040_v29 }
  0x35   : > { %601 = vmatmul.mubr.bf16.gmra.mxu0 %v1036_v30 }
  0x36   : > { %608 = vmatprep.mubr.bf16.mxu0 %v1037_v31 }
  0x37   : > { %977 = vmatmul.mubr.bf16.gmra.mxu1 %v1041_v32 }
  0x3d   : > { %609 = vmatmul.mubr.bf16.gmra.mxu0 %v1039_v33 }
  0x3e   : > { %616 = vmatprep.mubr.bf16.mxu0 %v1042_v34 }
  0x45   : > { %617 = vmatmul.mubr.bf16.gmra.mxu0 %v1044_v35 }
  0xed   : > { %v920_v36 = vpop.f32.mrf.mxu0 }
  0xef   : > { %v921_v37 = vpop.f32.mrf.mxu0  ;;  %v974_v38 = vpop.f32.mrf.mxu1 }
  0xf0   : > { %v922_v39 = vadd.f32 %v921_v37, %v920_v36 }
  0xf1   : > { %v923_v40 = vpop.f32.mrf.mxu0  ;;  %v659_v41 = vpop.f32.mrf.mxu1 }
  0xf2   : > { %v660_v43 = vadd.f32 %v922_v39, %v659_v41 }
  0xf3   : > { %v924_v44 = vpop.f32.mrf.mxu0  ;;  %v975_v45 = vpop.f32.mrf.mxu1 }
  0xf4   : > { %v724_v46 = vadd.f32 %v901_v42, %v660_v43  ;;  %v925_v47 = vadd.f32 %v924_v44, %v923_v40 }
  0xf5   : > { %v926_v48 = vpop.f32.mrf.mxu0  ;;  %v662_v49 = vpop.f32.mrf.mxu1 }
  0xf6   : > { %732 = vst [vmem:[%s1209_s27] sm:$0xff] %v724_v46  ;;  %v663_v50 = vadd.f32 %v925_v47, %v662_v49 }
  0xf7   : > { %v927_v51 = vpop.f32.mrf.mxu0  ;;  %v978_v52 = vpop.f32.mrf.mxu1 }
  0xf8   : > { %v725_v53 = vadd.f32 %v901_v42, %v663_v50  ;;  %v928_v54 = vadd.f32 %v927_v51, %v926_v48 }
  0xf9   : > { %v929_v55 = vpop.f32.mrf.mxu0  ;;  %v675_v58 = vpop.f32.mrf.mxu1 }
  0xfa   : > { %733 = vst [vmem:[%s1209_s27 + $0x8] sm:$0xff] %v725_v53  ;;  %v668_v56 = vadd.f32 %v974_v38, %v928_v54 }
  0xfb   : > { %v930_v57 = vpop.f32.mrf.mxu0  ;;  %v979_v0 = vpop.f32.mrf.mxu1 }
  0xfc   : > { %v726_v59 = vadd.f32 %v901_v42, %v668_v56  ;;  %v931_v60 = vadd.f32 %v930_v57, %v929_v55 }
  0xfd   : > { %v932_v61 = vpop.f32.mrf.mxu0  ;;  %v678_v6 = vpop.f32.mrf.mxu1 }
  0xfe   : > { %734 = vst [vmem:[%s1209_s27 + $0x10] sm:$0xff] %v726_v59  ;;  %v671_v62 = vadd.f32 %v975_v45, %v931_v60 }
  0xff   : > { %v933_v63 = vpop.f32.mrf.mxu0 }
 0x100   : > { %v727_v1 = vadd.f32 %v901_v42, %v671_v62  ;;  %v934_v2 = vadd.f32 %v933_v63, %v932_v61 }
 0x101   : > { %v935_v3 = vpop.f32.mrf.mxu0 }
 0x102   : > { %735 = vst [vmem:[%s1209_s27 + $0x18] sm:$0xff] %v727_v1  ;;  %v676_v4 = vadd.f32 %v934_v2, %v675_v58 }
 0x103   : > { %v936_v5 = vpop.f32.mrf.mxu0 }
 0x104   : > { %v728_v7 = vadd.f32 %v901_v42, %v676_v4  ;;  %v937_v8 = vadd.f32 %v936_v5, %v935_v3 }
 0x105   : > { %v938_v9 = vpop.f32.mrf.mxu0 }
 0x106   : > { %736 = vst [vmem:[%s1209_s27 + $0x20] sm:$0xff] %v728_v7  ;;  %v679_v10 = vadd.f32 %v937_v8, %v678_v6 }
 0x107   : > { %v939_v11 = vpop.f32.mrf.mxu0 }
 0x108   : > { %v729_v12 = vadd.f32 %v901_v42, %v679_v10  ;;  %v940_v13 = vadd.f32 %v939_v11, %v938_v9 }
 0x109   : > { %v941_v14 = vpop.f32.mrf.mxu0 }
 0x10a   : > { %737 = vst [vmem:[%s1209_s27 + $0x28] sm:$0xff] %v729_v12  ;;  %v684_v15 = vadd.f32 %v978_v52, %v940_v13 }
 0x10b   : > { %v942_v16 = vpop.f32.mrf.mxu0 }
 0x10c   : > { %v730_v17 = vadd.f32 %v901_v42, %v684_v15  ;;  %v943_v18 = vadd.f32 %v942_v16, %v941_v14 }
 0x10e   : > { %738 = vst [vmem:[%s1209_s27 + $0x30] sm:$0xff] %v730_v17  ;;  %v687_v19 = vadd.f32 %v979_v0, %v943_v18 }
 0x110   : > { %v731_v20 = vadd.f32 %v901_v42, %v687_v19 }
 0x112   : > { %739 = vst [vmem:[%s1209_s27 + $0x38] sm:$0xff] %v731_v20 }
 0x113 PF: > { %s13_s14 = sadd.s32 1, %s1067_s14   ;;  %s1232_s12 = smov %s1063_s13 }
 0x114   : > { %p10_p5 = scmp.ge.s32.totalorder %s13_s14, 4   ;;  %s1233_s13 = smov %s1235_s15 }
 0x116   :  { %12 = sbr.rel (!%p10_p5) target bundleno = 2 (0x2), region = 76 }

// kernel: mul.416.clone
= control target key start
LH: loop header
LB: loop body
LE: loop exit
PB: predicated region body
PF: predicated region fallthrough
CT: control target
= control target key end

     0   :  { %s70_s0 = inlined_call_operand.vmem [shape: f32[2,64], index: 0, kind: input, shape index: {}]   ;;  %s71_s1 = inlined_call_operand.vmem [shape: f32[2,4,4,64], index: 1, kind: output, shape index: {}]  }
   0x1   :  { %v4_v0 = vld [vmem:[%s70_s0] ss:$0 sm:$0xff]  ;;  %v22_v1 = vld [vmem:[%s70_s0 + $0x1] ss:$0 sm:$0xff] }
   0x2   :  { %5 = vst [vmem:[%s71_s1] sm:$0xf] %v4_v0  ;;  %23 = vst [vmem:[%s71_s1 + $0x10] sm:$0xf] %v22_v1 }
   0x3   :  { %24 = vst [vmem:[%s71_s1 + $0x4] sm:$0xf] %v4_v0  ;;  %25 = vst [vmem:[%s71_s1 + $0x14] sm:$0xf] %v22_v1 }
   0x4   :  { %26 = vst [vmem:[%s71_s1 + $0x8] sm:$0xf] %v4_v0  ;;  %27 = vst [vmem:[%s71_s1 + $0x18] sm:$0xf] %v22_v1 }
   0x5   :  { %28 = vst [vmem:[%s71_s1 + $0xc] sm:$0xf] %v4_v0  ;;  %29 = vst [vmem:[%s71_s1 + $0x1c] sm:$0xf] %v22_v1 }

// kernel: resunet_plusplus_forward.18
= control target key start
LH: loop header
LB: loop body
LE: loop exit
PB: predicated region body
PF: predicated region fallthrough
CT: control target
= control target key end

     0   :  { %s1314_s12 = smov 0   ;;  %s1316_s13 = smov 0   ;;  %s1491_s0 = inlined_call_operand.vmem [shape: bf16[128,1536], index: 0, kind: input, shape index: {}]   ;;  %s1492_s1 = inlined_call_operand.vmem [shape: bf16[1536,128], index: 1, kind: input, shape index: {}]   ;;  %s1493_s2 = inlined_call_operand.vmem [shape: f32[1,128], index: 2, kind: input, shape index: {}]   ;;  %s1494_s3 = inlined_call_operand.vmem [shape: f32[128,128], index: 3, kind: output, shape index: {}]  }
   0x1   :  { %s1318_s14 = smov 0   ;;  %s1320_s15 = smov 0  }
   0x2   :  { %s1322_s16 = smov 0   ;;  %s1324_s17 = smov 0  }
   0x3   :  { %s1326_s18 = smov 0  }
   0x4 LB: > { %s25_s19 = sadd.s32 1, %s1283_s16  ;;  %s32_s20 = sadd.s32 1, %s1287_s17  ;;  %s1291_s18 = sphi %s1326_s18, %s13_s18   ;;  %s1287_s17 = sphi %s1324_s17, %s1500_s17   ;;  %s1283_s16 = sphi %s1322_s16, %s1499_s16   ;;  %s1279_s15 = sphi %s1320_s15, %s1498_s15   ;;  %s1275_s14 = sphi %s1318_s14, %s1497_s14   ;;  %s1271_s13 = sphi %s1316_s13, %s1496_s13   ;;  %s1267_s12 = sphi %s1314_s12, %s1495_s12  }
   0x5   : > { %p26_p0 = scmp.ge.s32.totalorder %s25_s19, 3  ;;  %p48_p1 = scmp.ne.s32.totalorder %s1271_s13, %s1267_s12 }
   0x6   : > { %p49_p2 = scmp.eq.s32.totalorder %s1291_s18, 0  ;;  %s41_s24 = sadd.s32 1, %s1271_s13 }
   0x7   : > { %s1502_s19 = smov (%p26_p0, %s25_s19), 0  ;;  %s1504_s20 = smov (!%p26_p0, %s32_s20), %s1287_s17 }
   0x8   : > { %p50_p3 = por %p49_p2, %p48_p1  ;;  %p34_p4 = scmp.ge.s32.totalorder %s1504_s20, 2 }
   0x9   : > { %s37_s21 = ssub.s32 %s1283_s16, %s1502_s19  ;;  %p978_p6 = scmp.ge.s32.totalorder %s1291_s18, 6 }
   0xa   : > { %s1506_s20 = smov (%p34_p4, %s1504_s20), 0 }
   0xb   : > { %s36_s22 = ssub.s32 %s1287_s17, %s1506_s20  ;;  %162 = sbr.rel (%p978_p6) target bundleno = 32 (0x20), region = 20 }
   0xc   : > { %s38_s23 = sor.u32 %s37_s21, %s36_s22 }
   0xd   : > { %p39_p5 = scmp.eq.s32.totalorder %s38_s23, 0 }
   0xf   : > { %s1365_s25 = scalar_select %p39_p5, %s1271_s13, %s41_s24  }
  0x10   : > { %165 = sbr.rel (!%p50_p3) target bundleno = 32 (0x20), region = 24  ;;  %s167_s26 = sand.u32 (%p50_p3), 1, %s1271_s13  }
  0x11   : > { %s981_s27 = sshll.u32 (%p50_p3), %s1283_s16, 2  ;;  %s979_s28 = sshll.u32 (%p50_p3), %s167_s26, 7 }
  0x12   : > { %s1123_s29 = smul.u32 (%p50_p3), 96, %s1287_s17  ;;  %s169_s8 = scalar_lea.vmem (%p50_p3), [#allocation3], %s979_s28 }
  0x14   : > { %s173_s30 = sadd.s32 (%p50_p3), %s1123_s29, %s981_s27 }
  0x15   : > { %s983_s4 = sshll.u32 %s173_s30, 2 }
  0x16   : > { %s1374_s7 = scalar_lea.vmem %s1491_s0, %s983_s4 }
  0x17   : > { %v188_v0 = vld [vmem:[%s1374_s7] sm:$0xff]  ;;  %v190_v1 = vld [vmem:[%s1374_s7 + $0x8] sm:$0xff]  ;;  %v192_v2 = vld [vmem:[%s1374_s7 + $0x30] sm:$0xff] }
  0x18   : > { %189 = vst [vmem:[%s169_s8] sm:$0xff] %v188_v0  ;;  %191 = vst [vmem:[%s169_s8 + $0x8] sm:$0xff] %v190_v1  ;;  %v194_v3 = vld [vmem:[%s1374_s7 + $0x38] sm:$0xff]  ;;  %v196_v4 = vld [vmem:[%s1374_s7 + $0x60] sm:$0xff] }
  0x19   : > { %193 = vst [vmem:[%s169_s8 + $0x10] sm:$0xff] %v192_v2  ;;  %v198_v5 = vld [vmem:[%s1374_s7 + $0x68] sm:$0xff]  ;;  %195 = vst [vmem:[%s169_s8 + $0x18] sm:$0xff] %v194_v3  ;;  %v200_v6 = vld [vmem:[%s1374_s7 + $0x90] sm:$0xff] }
  0x1a   : > { %197 = vst [vmem:[%s169_s8 + $0x20] sm:$0xff] %v196_v4  ;;  %199 = vst [vmem:[%s169_s8 + $0x28] sm:$0xff] %v198_v5  ;;  %v202_v7 = vld [vmem:[%s1374_s7 + $0x98] sm:$0xff]  ;;  %v204_v8 = vld [vmem:[%s1374_s7 + $0xc0] sm:$0xff] }
  0x1b   : > { %201 = vst [vmem:[%s169_s8 + $0x30] sm:$0xff] %v200_v6  ;;  %203 = vst [vmem:[%s169_s8 + $0x38] sm:$0xff] %v202_v7  ;;  %v206_v9 = vld [vmem:[%s1374_s7 + $0xc8] sm:$0xff]  ;;  %v208_v10 = vld [vmem:[%s1374_s7 + $0xf0] sm:$0xff] }
  0x1c   : > { %205 = vst [vmem:[%s169_s8 + $0x40] sm:$0xff] %v204_v8  ;;  %v210_v11 = vld [vmem:[%s1374_s7 + $0xf8] sm:$0xff]  ;;  %207 = vst [vmem:[%s169_s8 + $0x48] sm:$0xff] %v206_v9  ;;  %v212_v12 = vld [vmem:[%s1374_s7 + $0x120] sm:$0xff] }
  0x1d   : > { %209 = vst [vmem:[%s169_s8 + $0x50] sm:$0xff] %v208_v10  ;;  %211 = vst [vmem:[%s169_s8 + $0x58] sm:$0xff] %v210_v11  ;;  %v214_v13 = vld [vmem:[%s1374_s7 + $0x128] sm:$0xff]  ;;  %v216_v14 = vld [vmem:[%s1374_s7 + $0x150] sm:$0xff] }
  0x1e   : > { %213 = vst [vmem:[%s169_s8 + $0x60] sm:$0xff] %v212_v12  ;;  %215 = vst [vmem:[%s169_s8 + $0x68] sm:$0xff] %v214_v13  ;;  %v218_v15 = vld [vmem:[%s1374_s7 + $0x158] sm:$0xff] }
  0x1f   : > { %217 = vst [vmem:[%s169_s8 + $0x70] sm:$0xff] %v216_v14  ;;  %219 = vst [vmem:[%s169_s8 + $0x78] sm:$0xff] %v218_v15 }
  0x20 PF: > { %p984_p7 = scmp.ge.s32.totalorder %s1291_s18, 1  ;;  %p236_p8 = scmp.lt.s32.totalorder %s1291_s18, 7 }
  0x22   : > { %p237_p9 = pnand %p984_p7, %p236_p8 }
  0x23   : > { %s243_s9 = sand.u32 (!%p237_p9), 1, %s1267_s12   ;;  %s986_s10 = sshll.u32 (!%p237_p9), %s1275_s14, 6 }
  0x24   : > { %240 = sbr.rel (%p237_p9) target bundleno = 329 (0x149), region = 51  ;;  %s985_s11 = sshll.u32 (!%p237_p9), %s243_s9, 7 }
  0x25   : > { %p283_p10 = scmp.lt.s32.totalorder (!%p237_p9), %s986_s10, 191  ;;  %s988_s21 = sshll.u32 (!%p237_p9), %s1279_s15, 3 }
  0x26   : > { %p295_p11 = scmp.lt.s32.totalorder (!%p237_p9), %s988_s21, 15  ;;  %s1407_s12 = scalar_lea.vmem (!%p237_p9), [#allocation3], %s985_s11 }
  0x27   : > { %p990_p12 = scmp.ne.s32.totalorder (!%p237_p9), %s1275_s14, 0 }
  0x29   : > { %s1508_s10 = smov (!%p283_p10, %s986_s10), 191  ;;  %s1510_s21 = smov (!%p295_p11, %s988_s21), 15 }
  0x2a   : > { %s987_s22 = sshll.u32 %s1508_s10, 2  ;;  %s989_s27 = sshll.u32 %s1510_s21, 3 }
  0x2b   : > { %s1400_s26 = scalar_lea.vmem %s1492_s1, %s987_s22  ;;  %s1405_s30 = scalar_lea.vmem %s1494_s3, %s989_s27 }
  0x2c   : > { %307 = sbr.rel (%p990_p12) target bundleno = 54 (0x36), region = 59 }
  0x31   : > { %v1293_v16 = vmov 0.0  }
  0x32   : > { %308 = vst [vmem:[#allocation2 + $0x30] sm:$0xff] %v1293_v16  ;;  %309 = vst [vmem:[#allocation2] sm:$0xff] %v1293_v16 }
  0x33   : > { %310 = vst [vmem:[#allocation2 + $0x18] sm:$0xff] %v1293_v16  ;;  %311 = vst [vmem:[#allocation2 + $0x10] sm:$0xff] %v1293_v16 }
  0x34   : > { %312 = vst [vmem:[#allocation2 + $0x8] sm:$0xff] %v1293_v16  ;;  %313 = vst [vmem:[#allocation2 + $0x20] sm:$0xff] %v1293_v16 }
  0x35   : > { %314 = vst [vmem:[#allocation2 + $0x28] sm:$0xff] %v1293_v16  ;;  %315 = vst [vmem:[#allocation2 + $0x38] sm:$0xff] %v1293_v16 }
  0x36 PF: > { %v1181_v17 = vld [vmem:[%s1400_s26 + $0x78] sm:$0xff]   ;;  %v1185_v21 = vld [vmem:[%s1400_s26 + $0x70] sm:$0xff]   ;;  %v1189_v25 = vld [vmem:[%s1400_s26 + $0x68] sm:$0xff]   ;;  %p1039_p13 = scmp.ne.s32.totalorder %s1275_s14, 2 }
  0x37   : > { %v1182_v18 = vld [vmem:[%s1400_s26 + $0xf8] sm:$0xff]   ;;  %1043 = vmatprep.subr.bf16.mxu0 %v1181_v17  ;;  %v1186_v22 = vld [vmem:[%s1400_s26 + $0xf0] sm:$0xff]   ;;  %v1190_v26 = vld [vmem:[%s1400_s26 + $0xe8] sm:$0xff]  }
  0x38   : > { %v1183_v19 = vld [vmem:[%s1400_s26 + $0x38] sm:$0xff]   ;;  %1083 = vmatprep.subr.bf16.mxu1 %v1182_v18  ;;  %v1187_v23 = vld [vmem:[%s1400_s26 + $0x30] sm:$0xff]   ;;  %v1191_v27 = vld [vmem:[%s1400_s26 + $0x28] sm:$0xff]  }
  0x39   : > { %v1184_v20 = vld [vmem:[%s1400_s26 + $0xb8] sm:$0xff]   ;;  %1044 = vmatpush3.bf16.msra.mxu0 %v1183_v19  ;;  %v1188_v24 = vld [vmem:[%s1400_s26 + $0xb0] sm:$0xff]   ;;  %v1192_v28 = vld [vmem:[%s1400_s26 + $0xa8] sm:$0xff]  }
  0x3a   : > { %1084 = vmatpush3.bf16.msra.mxu1 %v1184_v20  ;;  %1045 = vmatprep.subr.bf16.mxu0 %v1185_v21  ;;  %v1193_v29 = vld [vmem:[%s1400_s26 + $0x60] sm:$0xff]   ;;  %v1197_v33 = vld [vmem:[%s1400_s26 + $0x58] sm:$0xff]   ;;  %v1201_v37 = vld [vmem:[%s1400_s26 + $0x50] sm:$0xff]  }
  0x3b   : > { %1085 = vmatprep.subr.bf16.mxu1 %v1186_v22  ;;  %v1194_v30 = vld [vmem:[%s1400_s26 + $0xe0] sm:$0xff]   ;;  %v1198_v34 = vld [vmem:[%s1400_s26 + $0xd8] sm:$0xff]   ;;  %v1202_v38 = vld [vmem:[%s1400_s26 + $0xd0] sm:$0xff]  }
  0x3c   : > { %v1195_v31 = vld [vmem:[%s1400_s26 + $0x20] sm:$0xff]   ;;  %v1199_v35 = vld [vmem:[%s1400_s26 + $0x18] sm:$0xff]   ;;  %v1203_v39 = vld [vmem:[%s1400_s26 + $0x10] sm:$0xff]  }
  0x3d   : > { %1046 = vmatpush3.bf16.msra.mxu0 %v1187_v23  ;;  %v1196_v32 = vld [vmem:[%s1400_s26 + $0xa0] sm:$0xff]   ;;  %v1200_v36 = vld [vmem:[%s1400_s26 + $0x98] sm:$0xff]   ;;  %v1204_v40 = vld [vmem:[%s1400_s26 + $0x90] sm:$0xff]  }
  0x3e   : > { %1086 = vmatpush3.bf16.msra.mxu1 %v1188_v24  ;;  %1047 = vmatprep.subr.bf16.mxu0 %v1189_v25  ;;  %v1205_v41 = vld [vmem:[%s1400_s26 + $0x48] sm:$0xff]   ;;  %v1209_v45 = vld [vmem:[%s1400_s26 + $0x40] sm:$0xff]   ;;  %v316_v8 = vld [vmem:[#allocation2 + $0x30] sm:$0xff] }
  0x3f   : > { %1087 = vmatprep.subr.bf16.mxu1 %v1190_v26  ;;  %v1206_v42 = vld [vmem:[%s1400_s26 + $0xc8] sm:$0xff]   ;;  %v1210_v46 = vld [vmem:[%s1400_s26 + $0xc0] sm:$0xff]   ;;  %v318_v26 = vld [vmem:[#allocation2 + $0x18] sm:$0xff] }
  0x40   : > { %v1207_v43 = vld [vmem:[%s1400_s26 + $0x8] sm:$0xff]   ;;  %v1211_v47 = vld [vmem:[%s1400_s26] sm:$0xff]  }
  0x41   : > { %1048 = vmatpush3.bf16.msra.mxu0 %v1191_v27  ;;  %v1208_v44 = vld [vmem:[%s1400_s26 + $0x88] sm:$0xff]   ;;  %v1212_v48 = vld [vmem:[%s1400_s26 + $0x80] sm:$0xff]  }
  0x42   : > { %1088 = vmatpush3.bf16.msra.mxu1 %v1192_v28  ;;  %1049 = vmatprep.subr.bf16.mxu0 %v1193_v29  ;;  %v1213_v49 = vld [vmem:[%s1407_s12] ss:$16 sps:$4 sm:$0xff]   ;;  %v1215_v50 = vld [vmem:[%s1407_s12 + $0x4] ss:$16 sps:$4 sm:$0xff]   ;;  %v1216_v51 = vld [vmem:[%s1407_s12 + $0x8] ss:$16 sps:$4 sm:$0xff]  }
  0x43   : > { %1089 = vmatprep.subr.bf16.mxu1 %v1194_v30  ;;  %v1218_v52 = vld [vmem:[%s1407_s12 + $0xc] ss:$16 sps:$4 sm:$0xff]   ;;  %708 = vmatprep.mubr.bf16.mxu0 %v1215_v50  ;;  %v1219_v53 = vld [vmem:[%s1407_s12 + $0x24] ss:$16 sps:$4 sm:$0xff]   ;;  %v1223_v55 = vld [vmem:[%s1407_s12 + $0x20] ss:$16 sps:$4 sm:$0xff]  }
  0x44   : > { %773 = vmatprep.mubr.bf16.mxu1 %v1218_v52  ;;  %v1221_v54 = vld [vmem:[%s1407_s12 + $0x2c] ss:$16 sps:$4 sm:$0xff]   ;;  %v1224_v56 = vld [vmem:[%s1407_s12 + $0x28] ss:$16 sps:$4 sm:$0xff]   ;;  %v1225_v57 = vld [vmem:[%s1407_s12 + $0x44] ss:$16 sps:$4 sm:$0xff]  }
  0x45   : > { %1050 = vmatpush3.bf16.msra.mxu0 %v1195_v31  ;;  %v1227_v58 = vld [vmem:[%s1407_s12 + $0x4c] ss:$16 sps:$4 sm:$0xff]   ;;  %v1229_v59 = vld [vmem:[%s1407_s12 + $0x40] ss:$16 sps:$4 sm:$0xff]   ;;  %v1230_v60 = vld [vmem:[%s1407_s12 + $0x48] ss:$16 sps:$4 sm:$0xff]  }
  0x46   : > { %1090 = vmatpush3.bf16.msra.mxu1 %v1196_v32  ;;  %1051 = vmatprep.subr.bf16.mxu0 %v1197_v33  ;;  %v1231_v61 = vld [vmem:[%s1407_s12 + $0x64] ss:$16 sps:$4 sm:$0xff]   ;;  %v1233_v62 = vld [vmem:[%s1407_s12 + $0x6c] ss:$16 sps:$4 sm:$0xff]   ;;  %v1235_v63 = vld [vmem:[%s1407_s12 + $0x60] ss:$16 sps:$4 sm:$0xff]  }
  0x47   : > { %1091 = vmatprep.subr.bf16.mxu1 %v1198_v34  ;;  %v1236_v0 = vld [vmem:[%s1407_s12 + $0x68] ss:$16 sps:$4 sm:$0xff]   ;;  %v317_v17 = vld [vmem:[#allocation2] sm:$0xff] }
  0x49   : > { %1052 = vmatpush3.bf16.msra.mxu0 %v1199_v35  ;;  %v319_v35 = vld [vmem:[#allocation2 + $0x10] sm:$0xff] }
  0x4a   : > { %1092 = vmatpush3.bf16.msra.mxu1 %v1200_v36  ;;  %1053 = vmatprep.subr.bf16.mxu0 %v1201_v37 }
  0x4b   : > { %1093 = vmatprep.subr.bf16.mxu1 %v1202_v38 }
  0x4d   : > { %1054 = vmatpush3.bf16.msra.mxu0 %v1203_v39 }
  0x4e   : > { %1094 = vmatpush3.bf16.msra.mxu1 %v1204_v40  ;;  %1055 = vmatprep.subr.bf16.mxu0 %v1205_v41 }
  0x4f   : > { %1095 = vmatprep.subr.bf16.mxu1 %v1206_v42 }
  0x51   : > { %1056 = vmatpush3.bf16.msra.mxu0 %v1207_v43 }
  0x52   : > { %1096 = vmatpush3.bf16.msra.mxu1 %v1208_v44  ;;  %1057 = vmatprep.subr.bf16.mxu0 %v1209_v45  ;;  %v320_v44 = vld [vmem:[#allocation2 + $0x8] sm:$0xff] }
  0x53   : > { %1097 = vmatprep.subr.bf16.mxu1 %v1210_v46 }
  0x55   : > { %1058 = vmatpush3.bf16.msra.mxu0 %v1211_v47 }
  0x56   : > { %1098 = vmatpush3.bf16.msra.mxu1 %v1212_v48 }
  0x58   : > { %709 = vmatmul.mubr.bf16.vlgmr.msra.gmra.mxu0 %v1213_v49 }
  0x59   : > { %774 = vmatmul.mubr.bf16.vlgmr.msra.gmra.mxu1 %v1216_v51  ;;  %716 = vmatprep.mubr.bf16.mxu0 %v1219_v53  ;;  %v321_v53 = vld [vmem:[#allocation2 + $0x20] sm:$0xff] }
  0x5a   : > { %781 = vmatprep.mubr.bf16.mxu1 %v1221_v54 }
  0x60   : > { %717 = vmatmul.mubr.bf16.gmra.mxu0 %v1223_v55 }
  0x61   : > { %782 = vmatmul.mubr.bf16.gmra.mxu1 %v1224_v56  ;;  %724 = vmatprep.mubr.bf16.mxu0 %v1225_v57 }
  0x62   : > { %789 = vmatprep.mubr.bf16.mxu1 %v1227_v58 }
  0x68   : > { %725 = vmatmul.mubr.bf16.gmra.mxu0 %v1229_v59 }
  0x69   : > { %790 = vmatmul.mubr.bf16.gmra.mxu1 %v1230_v60  ;;  %732 = vmatprep.mubr.bf16.mxu0 %v1231_v61 }
  0x6a   : > { %797 = vmatprep.mubr.bf16.mxu1 %v1233_v62  ;;  %v322_v62 = vld [vmem:[#allocation2 + $0x28] sm:$0xff] }
  0x70   : > { %733 = vmatmul.mubr.bf16.gmra.mxu0 %v1235_v63 }
  0x71   : > { %798 = vmatmul.mubr.bf16.gmra.mxu1 %v1236_v0 }
 0x118   : > { %v1059_v1 = vpop.f32.mrf.mxu0 }
 0x119   : > { %v1099_v2 = vpop.f32.mrf.mxu1 }
 0x11a   : > { %v1060_v3 = vpop.f32.mrf.mxu0 }
 0x11b   : > { %v1061_v4 = vadd.f32 %v1060_v3, %v1059_v1  ;;  %v1100_v5 = vpop.f32.mrf.mxu1 }
 0x11c   : > { %v1101_v6 = vadd.f32 %v1100_v5, %v1099_v2  ;;  %v1062_v7 = vpop.f32.mrf.mxu0 }
 0x11d   : > { %v1102_v9 = vpop.f32.mrf.mxu1 }
 0x11e   : > { %v776_v10 = vadd.f32 %v1101_v6, %v1061_v4  ;;  %v1063_v11 = vpop.f32.mrf.mxu0  ;;  %v323_v6 = vld [vmem:[#allocation2 + $0x38] sm:$0xff] }
 0x11f   : > { %v1064_v12 = vadd.f32 %v1063_v11, %v1062_v7  ;;  %v1103_v13 = vpop.f32.mrf.mxu1 }
 0x120   : > { %v806_v14 = vadd.f32 %v776_v10, %v316_v8  ;;  %v1104_v15 = vadd.f32 %v1103_v13, %v1102_v9  ;;  %v1065_v16 = vpop.f32.mrf.mxu0 }
 0x121   : > { %v1105_v18 = vpop.f32.mrf.mxu1 }
 0x122   : > { %814 = vst [vmem:[#allocation2 + $0x30] sm:$0xff] %v806_v14  ;;  %v779_v19 = vadd.f32 %v1104_v15, %v1064_v12  ;;  %v1066_v20 = vpop.f32.mrf.mxu0 }
 0x123   : > { %v1067_v21 = vadd.f32 %v1066_v20, %v1065_v16  ;;  %v1106_v22 = vpop.f32.mrf.mxu1 }
 0x124   : > { %v807_v23 = vadd.f32 %v779_v19, %v317_v17  ;;  %v1107_v24 = vadd.f32 %v1106_v22, %v1105_v18  ;;  %v1068_v25 = vpop.f32.mrf.mxu0 }
 0x125   : > { %v1108_v27 = vpop.f32.mrf.mxu1 }
 0x126   : > { %815 = vst [vmem:[#allocation2] sm:$0xff] %v807_v23  ;;  %v784_v28 = vadd.f32 %v1107_v24, %v1067_v21  ;;  %v1069_v29 = vpop.f32.mrf.mxu0 }
 0x127   : > { %v1070_v30 = vadd.f32 %v1069_v29, %v1068_v25  ;;  %v1109_v31 = vpop.f32.mrf.mxu1 }
 0x128   : > { %v808_v32 = vadd.f32 %v784_v28, %v318_v26  ;;  %v1110_v33 = vadd.f32 %v1109_v31, %v1108_v27  ;;  %v1071_v34 = vpop.f32.mrf.mxu0 }
 0x129   : > { %v1111_v36 = vpop.f32.mrf.mxu1 }
 0x12a   : > { %816 = vst [vmem:[#allocation2 + $0x18] sm:$0xff] %v808_v32  ;;  %v787_v37 = vadd.f32 %v1110_v33, %v1070_v30  ;;  %v1072_v38 = vpop.f32.mrf.mxu0 }
 0x12b   : > { %v1073_v39 = vadd.f32 %v1072_v38, %v1071_v34  ;;  %v1112_v40 = vpop.f32.mrf.mxu1 }
 0x12c   : > { %v809_v41 = vadd.f32 %v787_v37, %v319_v35  ;;  %v1113_v42 = vadd.f32 %v1112_v40, %v1111_v36  ;;  %v1074_v43 = vpop.f32.mrf.mxu0 }
 0x12d   : > { %v1114_v45 = vpop.f32.mrf.mxu1 }
 0x12e   : > { %817 = vst [vmem:[#allocation2 + $0x10] sm:$0xff] %v809_v41  ;;  %v792_v46 = vadd.f32 %v1113_v42, %v1073_v39  ;;  %v1075_v47 = vpop.f32.mrf.mxu0 }
 0x12f   : > { %v1076_v48 = vadd.f32 %v1075_v47, %v1074_v43  ;;  %v1115_v49 = vpop.f32.mrf.mxu1 }
 0x130   : > { %v810_v50 = vadd.f32 %v792_v46, %v320_v44  ;;  %v1116_v51 = vadd.f32 %v1115_v49, %v1114_v45  ;;  %v1077_v52 = vpop.f32.mrf.mxu0 }
 0x131   : > { %v1117_v54 = vpop.f32.mrf.mxu1 }
 0x132   : > { %818 = vst [vmem:[#allocation2 + $0x8] sm:$0xff] %v810_v50  ;;  %v795_v55 = vadd.f32 %v1116_v51, %v1076_v48  ;;  %v1078_v56 = vpop.f32.mrf.mxu0 }
 0x133   : > { %v1079_v57 = vadd.f32 %v1078_v56, %v1077_v52  ;;  %v1118_v58 = vpop.f32.mrf.mxu1 }
 0x134   : > { %v811_v59 = vadd.f32 %v795_v55, %v321_v53  ;;  %v1119_v60 = vadd.f32 %v1118_v58, %v1117_v54  ;;  %v1080_v61 = vpop.f32.mrf.mxu0 }
 0x135   : > { %v1120_v63 = vpop.f32.mrf.mxu1 }
 0x136   : > { %819 = vst [vmem:[#allocation2 + $0x20] sm:$0xff] %v811_v59  ;;  %v800_v0 = vadd.f32 %v1119_v60, %v1079_v57  ;;  %v1081_v1 = vpop.f32.mrf.mxu0 }
 0x137   : > { %v1082_v2 = vadd.f32 %v1081_v1, %v1080_v61  ;;  %v1121_v3 = vpop.f32.mrf.mxu1 }
 0x138   : > { %v812_v4 = vadd.f32 %v800_v0, %v322_v62  ;;  %v1122_v5 = vadd.f32 %v1121_v3, %v1120_v63 }
 0x13a   : > { %820 = vst [vmem:[#allocation2 + $0x28] sm:$0xff] %v812_v4  ;;  %v803_v7 = vadd.f32 %v1122_v5, %v1082_v2  ;;  %825 = sbr.rel (%p1039_p13) target bundleno = 329 (0x149), region = 63 }
 0x13c   : > { %v813_v8 = vadd.f32 %v803_v7, %v323_v6 }
 0x13e   : > { %821 = vst [vmem:[#allocation2 + $0x38] sm:$0xff] %v813_v8 }
 0x13f   : > { %v826_v9 = vld [vmem:[#allocation2 + $0x30] sm:$0xff]  ;;  %v1040_v10 = vld [vmem:[%s1493_s2] ss:$0 sm:$0xff]  ;;  %v828_v14 = vld [vmem:[#allocation2 + $0x18] sm:$0xff] }
 0x140   : > { %v827_v11 = vld [vmem:[#allocation2] sm:$0xff]  ;;  %v841_v12 = vadd.f32 %v1040_v10, %v826_v9  ;;  %v829_v15 = vld [vmem:[#allocation2 + $0x10] sm:$0xff]  ;;  %v830_v16 = vld [vmem:[#allocation2 + $0x8] sm:$0xff]  ;;  %v843_v17 = vadd.f32 %v1040_v10, %v828_v14 }
 0x141   : > { %v842_v13 = vadd.f32 %v1040_v10, %v827_v11  ;;  %v844_v18 = vadd.f32 %v1040_v10, %v829_v15  ;;  %v845_v19 = vadd.f32 %v1040_v10, %v830_v16  ;;  %v831_v20 = vld [vmem:[#allocation2 + $0x20] sm:$0xff]  ;;  %v832_v21 = vld [vmem:[#allocation2 + $0x28] sm:$0xff] }
 0x142   : > { %849 = vst [vmem:[%s1405_s30] sm:$0xff] %v841_v12  ;;  %v846_v23 = vadd.f32 %v1040_v10, %v831_v20  ;;  %v847_v24 = vadd.f32 %v1040_v10, %v832_v21  ;;  %851 = vst [vmem:[%s1405_s30 + $0x10] sm:$0xff] %v843_v17 }
 0x143   : > { %850 = vst [vmem:[%s1405_s30 + $0x8] sm:$0xff] %v842_v13  ;;  %852 = vst [vmem:[%s1405_s30 + $0x18] sm:$0xff] %v844_v18 }
 0x144   : > { %853 = vst [vmem:[%s1405_s30 + $0x20] sm:$0xff] %v845_v19  ;;  %854 = vst [vmem:[%s1405_s30 + $0x28] sm:$0xff] %v846_v23 }
 0x145   : > { %v833_v22 = vld [vmem:[#allocation2 + $0x38] sm:$0xff]  ;;  %855 = vst [vmem:[%s1405_s30 + $0x30] sm:$0xff] %v847_v24 }
 0x146   : > { %v848_v25 = vadd.f32 %v1040_v10, %v833_v22 }
 0x148   : > { %856 = vst [vmem:[%s1405_s30 + $0x38] sm:$0xff] %v848_v25 }
 0x149 PF: > { %s13_s18 = sadd.s32 1, %s1291_s18   ;;  %s1495_s12 = smov %s1271_s13 }
 0x14a   : > { %p10_p0 = scmp.ge.s32.totalorder %s13_s18, 8   ;;  %s1496_s13 = smov %s1365_s25 }
 0x14b   : > { %s1497_s14 = smov %s1283_s16  ;;  %s1498_s15 = smov %s1287_s17 }
 0x14c   : > { %s1499_s16 = smov %s1502_s19  ;;  %s1500_s17 = smov %s1506_s20 }
 0x14d   :  { %12 = sbr.rel (!%p10_p0) target bundleno = 4 (0x4), region = 104 }

// kernel: resunet_plusplus_forward.17
= control target key start
LH: loop header
LB: loop body
LE: loop exit
PB: predicated region body
PF: predicated region fallthrough
CT: control target
= control target key end

     0   :  { %s1011_s12 = smov 0   ;;  %s1013_s13 = smov 0   ;;  %s1146_s0 = inlined_call_operand.vmem [shape: bf16[128,768], index: 0, kind: input, shape index: {}]   ;;  %s1147_s1 = inlined_call_operand.vmem [shape: bf16[768,128], index: 1, kind: input, shape index: {}]   ;;  %s1148_s2 = inlined_call_operand.vmem [shape: f32[1,128], index: 2, kind: input, shape index: {}]   ;;  %s1149_s3 = inlined_call_operand.vmem [shape: f32[128,128], index: 3, kind: output, shape index: {}]  }
   0x1   :  { %s1015_s14 = smov 0   ;;  %s1017_s15 = smov 0  }
   0x2   :  { %s1019_s16 = smov 0   ;;  %s1021_s17 = smov 0  }
   0x3   :  { %s1023_s18 = smov 0  }
   0x4 LB: > { %s25_s19 = sadd.s32 1, %s980_s16  ;;  %s32_s20 = sadd.s32 1, %s984_s17  ;;  %s988_s18 = sphi %s1023_s18, %s13_s18   ;;  %s984_s17 = sphi %s1021_s17, %s1155_s17   ;;  %s980_s16 = sphi %s1019_s16, %s1154_s16   ;;  %s976_s15 = sphi %s1017_s15, %s1153_s15   ;;  %s972_s14 = sphi %s1015_s14, %s1152_s14   ;;  %s968_s13 = sphi %s1013_s13, %s1151_s13   ;;  %s964_s12 = sphi %s1011_s12, %s1150_s12  }
   0x5   : > { %p26_p0 = scmp.ge.s32.totalorder %s25_s19, 3  ;;  %p48_p1 = scmp.ne.s32.totalorder %s968_s13, %s964_s12 }
   0x6   : > { %p49_p2 = scmp.eq.s32.totalorder %s988_s18, 0  ;;  %s41_s24 = sadd.s32 1, %s968_s13 }
   0x7   : > { %s1157_s19 = smov (%p26_p0, %s25_s19), 0  ;;  %s1159_s20 = smov (!%p26_p0, %s32_s20), %s984_s17 }
   0x8   : > { %p50_p3 = por %p49_p2, %p48_p1  ;;  %p34_p4 = scmp.ge.s32.totalorder %s1159_s20, 2 }
   0x9   : > { %s37_s21 = ssub.s32 %s980_s16, %s1157_s19  ;;  %p751_p6 = scmp.ge.s32.totalorder %s988_s18, 6 }
   0xa   : > { %s1161_s20 = smov (%p34_p4, %s1159_s20), 0 }
   0xb   : > { %s36_s22 = ssub.s32 %s984_s17, %s1161_s20  ;;  %162 = sbr.rel (%p751_p6) target bundleno = 28 (0x1c), region = 20 }
   0xc   : > { %s38_s23 = sor.u32 %s37_s21, %s36_s22 }
   0xd   : > { %p39_p5 = scmp.eq.s32.totalorder %s38_s23, 0 }
   0xf   : > { %s1062_s25 = scalar_select %p39_p5, %s968_s13, %s41_s24  }
  0x10   : > { %165 = sbr.rel (!%p50_p3) target bundleno = 28 (0x1c), region = 24  ;;  %s167_s26 = sand.u32 (%p50_p3), 1, %s968_s13  }
  0x11   : > { %s754_s27 = sshll.u32 (%p50_p3), %s980_s16, 1  ;;  %s752_s28 = sshll.u32 (%p50_p3), %s167_s26, 6 }
  0x12   : > { %s848_s29 = smul.u32 (%p50_p3), 48, %s984_s17  ;;  %s169_s8 = scalar_lea.vmem (%p50_p3), [#allocation3], %s752_s28 }
  0x14   : > { %s173_s30 = sadd.s32 (%p50_p3), %s848_s29, %s754_s27 }
  0x15   : > { %s756_s4 = sshll.u32 %s173_s30, 2 }
  0x16   : > { %s175_s7 = scalar_lea.vmem %s1146_s0, %s756_s4 }
  0x17   : > { %v218_v0 = vld [vmem:[%s175_s7] sm:$0xff]  ;;  %v220_v1 = vld [vmem:[%s175_s7 + $0x18] sm:$0xff]  ;;  %v222_v2 = vld [vmem:[%s175_s7 + $0x30] sm:$0xff] }
  0x18   : > { %219 = vst [vmem:[%s169_s8] sm:$0xff] %v218_v0  ;;  %221 = vst [vmem:[%s169_s8 + $0x8] sm:$0xff] %v220_v1  ;;  %v224_v3 = vld [vmem:[%s175_s7 + $0x48] sm:$0xff]  ;;  %v226_v4 = vld [vmem:[%s175_s7 + $0x60] sm:$0xff] }
  0x19   : > { %223 = vst [vmem:[%s169_s8 + $0x10] sm:$0xff] %v222_v2  ;;  %v228_v5 = vld [vmem:[%s175_s7 + $0x78] sm:$0xff]  ;;  %225 = vst [vmem:[%s169_s8 + $0x18] sm:$0xff] %v224_v3  ;;  %v230_v6 = vld [vmem:[%s175_s7 + $0x90] sm:$0xff] }
  0x1a   : > { %227 = vst [vmem:[%s169_s8 + $0x20] sm:$0xff] %v226_v4  ;;  %229 = vst [vmem:[%s169_s8 + $0x28] sm:$0xff] %v228_v5  ;;  %v232_v7 = vld [vmem:[%s175_s7 + $0xa8] sm:$0xff] }
  0x1b   : > { %231 = vst [vmem:[%s169_s8 + $0x30] sm:$0xff] %v230_v6  ;;  %233 = vst [vmem:[%s169_s8 + $0x38] sm:$0xff] %v232_v7 }
  0x1c PF: > { %p757_p7 = scmp.ge.s32.totalorder %s988_s18, 1  ;;  %p250_p8 = scmp.lt.s32.totalorder %s988_s18, 7 }
  0x1e   : > { %p251_p9 = pnand %p757_p7, %p250_p8 }
  0x1f   : > { %s257_s9 = sand.u32 (!%p251_p9), 1, %s964_s12   ;;  %s759_s10 = sshll.u32 (!%p251_p9), %s972_s14, 5 }
  0x20   : > { %254 = sbr.rel (%p251_p9) target bundleno = 305 (0x131), region = 66  ;;  %s758_s11 = sshll.u32 (!%p251_p9), %s257_s9, 6 }
  0x21   : > { %p297_p10 = scmp.lt.s32.totalorder (!%p251_p9), %s759_s10, 95  ;;  %s761_s21 = sshll.u32 (!%p251_p9), %s976_s15, 3 }
  0x22   : > { %p309_p11 = scmp.lt.s32.totalorder (!%p251_p9), %s761_s21, 15  ;;  %s1086_s12 = scalar_lea.vmem (!%p251_p9), [#allocation3], %s758_s11 }
  0x23   : > { %p763_p12 = scmp.ne.s32.totalorder (!%p251_p9), %s972_s14, 0 }
  0x25   : > { %s1163_s10 = smov (!%p297_p10, %s759_s10), 95  ;;  %s1165_s21 = smov (!%p309_p11, %s761_s21), 15 }
  0x26   : > { %s760_s22 = sshll.u32 %s1163_s10, 2  ;;  %s762_s27 = sshll.u32 %s1165_s21, 3 }
  0x27   : > { %s1079_s26 = scalar_lea.vmem %s1147_s1, %s760_s22  ;;  %s1084_s30 = scalar_lea.vmem %s1149_s3, %s762_s27 }
  0x28   : > { %321 = sbr.rel (%p763_p12) target bundleno = 50 (0x32), region = 74 }
  0x2d   : > { %v990_v8 = vmov 0.0  }
  0x2e   : > { %322 = vst [vmem:[#allocation2 + $0x30] sm:$0xff] %v990_v8  ;;  %323 = vst [vmem:[#allocation2] sm:$0xff] %v990_v8 }
  0x2f   : > { %324 = vst [vmem:[#allocation2 + $0x18] sm:$0xff] %v990_v8  ;;  %325 = vst [vmem:[#allocation2 + $0x10] sm:$0xff] %v990_v8 }
  0x30   : > { %326 = vst [vmem:[#allocation2 + $0x8] sm:$0xff] %v990_v8  ;;  %327 = vst [vmem:[#allocation2 + $0x20] sm:$0xff] %v990_v8 }
  0x31   : > { %328 = vst [vmem:[#allocation2 + $0x28] sm:$0xff] %v990_v8  ;;  %329 = vst [vmem:[#allocation2 + $0x38] sm:$0xff] %v990_v8 }
  0x32 PF: > { %v906_v9 = vld [vmem:[%s1079_s26 + $0x78] sm:$0xff]   ;;  %v908_v11 = vld [vmem:[%s1079_s26 + $0x70] sm:$0xff]   ;;  %v910_v13 = vld [vmem:[%s1079_s26 + $0x68] sm:$0xff]   ;;  %p788_p13 = scmp.ne.s32.totalorder %s972_s14, 2 }
  0x33   : > { %v907_v10 = vld [vmem:[%s1079_s26 + $0x38] sm:$0xff]   ;;  %792 = vmatprep.subr.bf16.mxu0 %v906_v9  ;;  %832 = vmatprep.subr.bf16.mxu1 %v906_v9  ;;  %v909_v12 = vld [vmem:[%s1079_s26 + $0x30] sm:$0xff]   ;;  %v911_v14 = vld [vmem:[%s1079_s26 + $0x28] sm:$0xff]  }
  0x34   : > { %793 = vmatpush3.bf16.msra.mxu0 %v907_v10  ;;  %840 = vmatpush3.bf16.msra.mxu1 %v907_v10  ;;  %v912_v15 = vld [vmem:[%s1079_s26 + $0x60] sm:$0xff]   ;;  %v914_v17 = vld [vmem:[%s1079_s26 + $0x58] sm:$0xff]   ;;  %v916_v19 = vld [vmem:[%s1079_s26 + $0x50] sm:$0xff]  }
  0x35   : > { %794 = vmatprep.subr.bf16.mxu0 %v908_v11  ;;  %833 = vmatprep.subr.bf16.mxu1 %v908_v11  ;;  %v913_v16 = vld [vmem:[%s1079_s26 + $0x20] sm:$0xff]   ;;  %v915_v18 = vld [vmem:[%s1079_s26 + $0x18] sm:$0xff]   ;;  %v917_v22 = vld [vmem:[%s1079_s26 + $0x10] sm:$0xff]  }
  0x36   : > { %v924_v20 = vld [vmem:[%s1086_s12 + $0x4] ss:$8 sps:$4 sm:$0xff]   ;;  %v922_v27 = vld [vmem:[%s1086_s12] ss:$8 sps:$4 sm:$0xff]   ;;  %v928_v29 = vld [vmem:[%s1086_s12 + $0x14] ss:$8 sps:$4 sm:$0xff]  }
  0x37   : > { %v927_v21 = vld [vmem:[%s1086_s12 + $0x24] ss:$8 sps:$4 sm:$0xff]   ;;  %546 = vmatprep.mubr.bf16.mxu0 %v924_v20  ;;  %v925_v28 = vld [vmem:[%s1086_s12 + $0x20] ss:$8 sps:$4 sm:$0xff]   ;;  %v930_v30 = vld [vmem:[%s1086_s12 + $0x34] ss:$8 sps:$4 sm:$0xff]  }
  0x38   : > { %795 = vmatpush3.bf16.msra.mxu0 %v909_v12  ;;  %841 = vmatpush3.bf16.msra.mxu1 %v909_v12  ;;  %v918_v23 = vld [vmem:[%s1079_s26 + $0x48] sm:$0xff]   ;;  %v920_v25 = vld [vmem:[%s1079_s26 + $0x40] sm:$0xff]   ;;  %v932_v31 = vld [vmem:[%s1086_s12 + $0x10] ss:$8 sps:$4 sm:$0xff]  }
  0x39   : > { %796 = vmatprep.subr.bf16.mxu0 %v910_v13  ;;  %834 = vmatprep.subr.bf16.mxu1 %v910_v13  ;;  %v919_v24 = vld [vmem:[%s1079_s26 + $0x8] sm:$0xff]   ;;  %v921_v26 = vld [vmem:[%s1079_s26] sm:$0xff]   ;;  %v933_v32 = vld [vmem:[%s1086_s12 + $0x30] ss:$8 sps:$4 sm:$0xff]  }
  0x3a   : > { %562 = vmatprep.mubr.bf16.mxu1 %v927_v21  ;;  %v330_v35 = vld [vmem:[#allocation2 + $0x30] sm:$0xff]  ;;  %v334_v37 = vld [vmem:[#allocation2 + $0x8] sm:$0xff]  ;;  %v331_v45 = vld [vmem:[#allocation2] sm:$0xff] }
  0x3b   : > { %v335_v47 = vld [vmem:[#allocation2 + $0x20] sm:$0xff]  ;;  %v332_v55 = vld [vmem:[#allocation2 + $0x18] sm:$0xff]  ;;  %v336_v57 = vld [vmem:[#allocation2 + $0x28] sm:$0xff] }
  0x3c   : > { %797 = vmatpush3.bf16.msra.mxu0 %v911_v14  ;;  %842 = vmatpush3.bf16.msra.mxu1 %v911_v14  ;;  %v333_v1 = vld [vmem:[#allocation2 + $0x10] sm:$0xff]  ;;  %v337_v3 = vld [vmem:[#allocation2 + $0x38] sm:$0xff] }
  0x3d   : > { %798 = vmatprep.subr.bf16.mxu0 %v912_v15  ;;  %835 = vmatprep.subr.bf16.mxu1 %v912_v15 }
  0x40   : > { %799 = vmatpush3.bf16.msra.mxu0 %v913_v16  ;;  %843 = vmatpush3.bf16.msra.mxu1 %v913_v16 }
  0x41   : > { %800 = vmatprep.subr.bf16.mxu0 %v914_v17  ;;  %836 = vmatprep.subr.bf16.mxu1 %v914_v17 }
  0x44   : > { %801 = vmatpush3.bf16.msra.mxu0 %v915_v18  ;;  %844 = vmatpush3.bf16.msra.mxu1 %v915_v18 }
  0x45   : > { %802 = vmatprep.subr.bf16.mxu0 %v916_v19  ;;  %837 = vmatprep.subr.bf16.mxu1 %v916_v19 }
  0x48   : > { %803 = vmatpush3.bf16.msra.mxu0 %v917_v22  ;;  %845 = vmatpush3.bf16.msra.mxu1 %v917_v22 }
  0x49   : > { %804 = vmatprep.subr.bf16.mxu0 %v918_v23  ;;  %838 = vmatprep.subr.bf16.mxu1 %v918_v23 }
  0x4c   : > { %805 = vmatpush3.bf16.msra.mxu0 %v919_v24  ;;  %846 = vmatpush3.bf16.msra.mxu1 %v919_v24 }
  0x4d   : > { %806 = vmatprep.subr.bf16.mxu0 %v920_v25  ;;  %839 = vmatprep.subr.bf16.mxu1 %v920_v25 }
  0x50   : > { %807 = vmatpush3.bf16.msra.mxu0 %v921_v26  ;;  %847 = vmatpush3.bf16.msra.mxu1 %v921_v26 }
  0x53   : > { %547 = vmatmul.mubr.bf16.vlgmr.msra.gmra.mxu0 %v922_v27  ;;  %563 = vmatmul.mubr.bf16.vlgmr.msra.gmra.mxu1 %v925_v28 }
  0x54   : > { %554 = vmatprep.mubr.bf16.mxu0 %v928_v29  ;;  %570 = vmatprep.mubr.bf16.mxu1 %v930_v30 }
  0x5b   : > { %555 = vmatmul.mubr.bf16.gmra.mxu0 %v932_v31  ;;  %571 = vmatmul.mubr.bf16.gmra.mxu1 %v933_v32 }
 0x113   : > { %v808_v33 = vpop.f32.mrf.mxu0  ;;  %v820_v34 = vpop.f32.mrf.mxu1 }
 0x115   : > { %v809_v36 = vpop.f32.mrf.mxu0  ;;  %v821_v38 = vpop.f32.mrf.mxu1 }
 0x116   : > { %v810_v39 = vadd.f32 %v809_v36, %v808_v33  ;;  %v822_v40 = vadd.f32 %v821_v38, %v820_v34 }
 0x117   : > { %v811_v41 = vpop.f32.mrf.mxu0  ;;  %v823_v42 = vpop.f32.mrf.mxu1 }
 0x118   : > { %v579_v43 = vadd.f32 %v810_v39, %v330_v35  ;;  %v583_v44 = vadd.f32 %v822_v40, %v334_v37 }
 0x119   : > { %v812_v46 = vpop.f32.mrf.mxu0  ;;  %v824_v48 = vpop.f32.mrf.mxu1 }
 0x11a   : > { %587 = vst [vmem:[#allocation2 + $0x30] sm:$0xff] %v579_v43  ;;  %591 = vst [vmem:[#allocation2 + $0x8] sm:$0xff] %v583_v44  ;;  %v813_v49 = vadd.f32 %v812_v46, %v811_v41  ;;  %v825_v50 = vadd.f32 %v824_v48, %v823_v42 }
 0x11b   : > { %v814_v51 = vpop.f32.mrf.mxu0  ;;  %v826_v52 = vpop.f32.mrf.mxu1 }
 0x11c   : > { %v580_v53 = vadd.f32 %v813_v49, %v331_v45  ;;  %v584_v54 = vadd.f32 %v825_v50, %v335_v47 }
 0x11d   : > { %v815_v56 = vpop.f32.mrf.mxu0  ;;  %v827_v58 = vpop.f32.mrf.mxu1 }
 0x11e   : > { %588 = vst [vmem:[#allocation2] sm:$0xff] %v580_v53  ;;  %592 = vst [vmem:[#allocation2 + $0x20] sm:$0xff] %v584_v54  ;;  %v816_v59 = vadd.f32 %v815_v56, %v814_v51  ;;  %v828_v60 = vadd.f32 %v827_v58, %v826_v52 }
 0x11f   : > { %v817_v61 = vpop.f32.mrf.mxu0  ;;  %v829_v62 = vpop.f32.mrf.mxu1 }
 0x120   : > { %v581_v63 = vadd.f32 %v816_v59, %v332_v55  ;;  %v585_v0 = vadd.f32 %v828_v60, %v336_v57 }
 0x121   : > { %v818_v2 = vpop.f32.mrf.mxu0  ;;  %v830_v4 = vpop.f32.mrf.mxu1 }
 0x122   : > { %589 = vst [vmem:[#allocation2 + $0x18] sm:$0xff] %v581_v63  ;;  %593 = vst [vmem:[#allocation2 + $0x28] sm:$0xff] %v585_v0  ;;  %v819_v5 = vadd.f32 %v818_v2, %v817_v61  ;;  %v831_v6 = vadd.f32 %v830_v4, %v829_v62  ;;  %598 = sbr.rel (%p788_p13) target bundleno = 305 (0x131), region = 78 }
 0x124   : > { %v582_v7 = vadd.f32 %v819_v5, %v333_v1  ;;  %v586_v8 = vadd.f32 %v831_v6, %v337_v3 }
 0x126   : > { %590 = vst [vmem:[#allocation2 + $0x10] sm:$0xff] %v582_v7  ;;  %594 = vst [vmem:[#allocation2 + $0x38] sm:$0xff] %v586_v8 }
 0x127   : > { %v599_v9 = vld [vmem:[#allocation2 + $0x30] sm:$0xff]  ;;  %v789_v10 = vld [vmem:[%s1148_s2] ss:$0 sm:$0xff]  ;;  %v603_v16 = vld [vmem:[#allocation2 + $0x8] sm:$0xff] }
 0x128   : > { %v600_v11 = vld [vmem:[#allocation2] sm:$0xff]  ;;  %v614_v12 = vadd.f32 %v789_v10, %v599_v9  ;;  %v618_v19 = vadd.f32 %v789_v10, %v603_v16 }
 0x129   : > { %v615_v13 = vadd.f32 %v789_v10, %v600_v11  ;;  %v601_v14 = vld [vmem:[#allocation2 + $0x18] sm:$0xff]  ;;  %v604_v20 = vld [vmem:[#allocation2 + $0x20] sm:$0xff]  ;;  %v605_v21 = vld [vmem:[#allocation2 + $0x28] sm:$0xff] }
 0x12a   : > { %v616_v17 = vadd.f32 %v789_v10, %v601_v14  ;;  %622 = vst [vmem:[%s1084_s30] sm:$0xff] %v614_v12  ;;  %v619_v23 = vadd.f32 %v789_v10, %v604_v20  ;;  %v620_v24 = vadd.f32 %v789_v10, %v605_v21  ;;  %626 = vst [vmem:[%s1084_s30 + $0x20] sm:$0xff] %v618_v19 }
 0x12b   : > { %623 = vst [vmem:[%s1084_s30 + $0x8] sm:$0xff] %v615_v13 }
 0x12c   : > { %624 = vst [vmem:[%s1084_s30 + $0x10] sm:$0xff] %v616_v17  ;;  %627 = vst [vmem:[%s1084_s30 + $0x28] sm:$0xff] %v619_v23 }
 0x12d   : > { %v602_v15 = vld [vmem:[#allocation2 + $0x10] sm:$0xff]  ;;  %v606_v22 = vld [vmem:[#allocation2 + $0x38] sm:$0xff]  ;;  %628 = vst [vmem:[%s1084_s30 + $0x30] sm:$0xff] %v620_v24 }
 0x12e   : > { %v617_v18 = vadd.f32 %v789_v10, %v602_v15  ;;  %v621_v25 = vadd.f32 %v789_v10, %v606_v22 }
 0x130   : > { %625 = vst [vmem:[%s1084_s30 + $0x18] sm:$0xff] %v617_v18  ;;  %629 = vst [vmem:[%s1084_s30 + $0x38] sm:$0xff] %v621_v25 }
 0x131 PF: > { %s13_s18 = sadd.s32 1, %s988_s18   ;;  %s1150_s12 = smov %s968_s13 }
 0x132   : > { %p10_p0 = scmp.ge.s32.totalorder %s13_s18, 8   ;;  %s1151_s13 = smov %s1062_s25 }
 0x133   : > { %s1152_s14 = smov %s980_s16  ;;  %s1153_s15 = smov %s984_s17 }
 0x134   : > { %s1154_s16 = smov %s1157_s19  ;;  %s1155_s17 = smov %s1161_s20 }
 0x135   :  { %12 = sbr.rel (!%p10_p0) target bundleno = 4 (0x4), region = 119 }

// kernel: resunet_plusplus_forward.21
= control target key start
LH: loop header
LB: loop body
LE: loop exit
PB: predicated region body
PF: predicated region fallthrough
CT: control target
= control target key end

     0   :  { %s1647_s12 = smov 0   ;;  %s1649_s13 = smov 0   ;;  %s1932_s0 = inlined_call_operand.vmem [shape: bf16[512,768], index: 0, kind: input, shape index: {}]   ;;  %s1933_s1 = inlined_call_operand.vmem [shape: bf16[768,128], index: 1, kind: input, shape index: {}]   ;;  %s1934_s2 = inlined_call_operand.vmem [shape: f32[1,128], index: 2, kind: input, shape index: {}]   ;;  %s1935_s3 = inlined_call_operand.vmem [shape: f32[512,128], index: 3, kind: output, shape index: {}]  }
   0x1   :  { %s1651_s14 = smov 0   ;;  %s1653_s15 = smov 0  }
   0x2   :  { %s1655_s16 = smov 0   ;;  %s1657_s17 = smov 0  }
   0x3   :  { %s1659_s18 = smov 0  }
   0x4 LB: > { %s25_s19 = sadd.s32 1, %s1616_s16  ;;  %s32_s20 = sadd.s32 1, %s1620_s17  ;;  %s1624_s18 = sphi %s1659_s18, %s13_s18   ;;  %s1620_s17 = sphi %s1657_s17, %s1941_s17   ;;  %s1616_s16 = sphi %s1655_s16, %s1940_s16   ;;  %s1612_s15 = sphi %s1653_s15, %s1939_s15   ;;  %s1608_s14 = sphi %s1651_s14, %s1938_s14   ;;  %s1604_s13 = sphi %s1649_s13, %s1937_s13   ;;  %s1600_s12 = sphi %s1647_s12, %s1936_s12  }
   0x5   : > { %p26_p0 = scmp.ge.s32.totalorder %s25_s19, 3  ;;  %p48_p1 = scmp.ne.s32.totalorder %s1604_s13, %s1600_s12 }
   0x6   : > { %p49_p2 = scmp.eq.s32.totalorder %s1624_s18, 0  ;;  %s41_s24 = sadd.s32 1, %s1604_s13 }
   0x7   : > { %s1943_s19 = smov (%p26_p0, %s25_s19), 0  ;;  %s1945_s20 = smov (!%p26_p0, %s32_s20), %s1620_s17 }
   0x8   : > { %p50_p3 = por %p49_p2, %p48_p1  ;;  %p34_p4 = scmp.ge.s32.totalorder %s1945_s20, 2 }
   0x9   : > { %s37_s21 = ssub.s32 %s1616_s16, %s1943_s19  ;;  %p1255_p6 = scmp.ge.s32.totalorder %s1624_s18, 6 }
   0xa   : > { %s1947_s20 = smov (%p34_p4, %s1945_s20), 0 }
   0xb   : > { %s36_s22 = ssub.s32 %s1620_s17, %s1947_s20  ;;  %162 = sbr.rel (%p1255_p6) target bundleno = 40 (0x28), region = 20 }
   0xc   : > { %s38_s23 = sor.u32 %s37_s21, %s36_s22 }
   0xd   : > { %p39_p5 = scmp.eq.s32.totalorder %s38_s23, 0 }
   0xf   : > { %s1698_s25 = scalar_select %p39_p5, %s1604_s13, %s41_s24  }
  0x10   : > { %165 = sbr.rel (!%p50_p3) target bundleno = 40 (0x28), region = 24  ;;  %s167_s26 = sand.u32 (%p50_p3), 1, %s1604_s13  }
  0x11   : > { %s1258_s27 = sshll.u32 (%p50_p3), %s1616_s16, 1  ;;  %s1256_s28 = sshll.u32 (%p50_p3), %s167_s26, 8 }
  0x12   : > { %s1448_s29 = smul.u32 (%p50_p3), 192, %s1620_s17  ;;  %s1712_s8 = scalar_lea.vmem (%p50_p3), [#allocation3], %s1256_s28 }
  0x14   : > { %s173_s30 = sadd.s32 (%p50_p3), %s1448_s29, %s1258_s27 }
  0x15   : > { %s1260_s4 = sshll.u32 %s173_s30, 2 }
  0x16   : > { %s1707_s7 = scalar_lea.vmem %s1932_s0, %s1260_s4 }
  0x17   : > { %v266_v0 = vld [vmem:[%s1707_s7] sm:$0xff]  ;;  %v268_v1 = vld [vmem:[%s1707_s7 + $0x18] sm:$0xff]  ;;  %v270_v2 = vld [vmem:[%s1707_s7 + $0x30] sm:$0xff] }
  0x18   : > { %267 = vst [vmem:[%s1712_s8] sm:$0xff] %v266_v0  ;;  %269 = vst [vmem:[%s1712_s8 + $0x8] sm:$0xff] %v268_v1  ;;  %v272_v3 = vld [vmem:[%s1707_s7 + $0x48] sm:$0xff]  ;;  %v274_v4 = vld [vmem:[%s1707_s7 + $0x60] sm:$0xff] }
  0x19   : > { %271 = vst [vmem:[%s1712_s8 + $0x10] sm:$0xff] %v270_v2  ;;  %v276_v5 = vld [vmem:[%s1707_s7 + $0x78] sm:$0xff]  ;;  %273 = vst [vmem:[%s1712_s8 + $0x18] sm:$0xff] %v272_v3  ;;  %v278_v6 = vld [vmem:[%s1707_s7 + $0x90] sm:$0xff] }
  0x1a   : > { %275 = vst [vmem:[%s1712_s8 + $0x20] sm:$0xff] %v274_v4  ;;  %277 = vst [vmem:[%s1712_s8 + $0x28] sm:$0xff] %v276_v5  ;;  %v280_v7 = vld [vmem:[%s1707_s7 + $0xa8] sm:$0xff]  ;;  %v282_v8 = vld [vmem:[%s1707_s7 + $0xc0] sm:$0xff] }
  0x1b   : > { %279 = vst [vmem:[%s1712_s8 + $0x30] sm:$0xff] %v278_v6  ;;  %281 = vst [vmem:[%s1712_s8 + $0x38] sm:$0xff] %v280_v7  ;;  %v284_v9 = vld [vmem:[%s1707_s7 + $0xd8] sm:$0xff]  ;;  %v286_v10 = vld [vmem:[%s1707_s7 + $0xf0] sm:$0xff] }
  0x1c   : > { %283 = vst [vmem:[%s1712_s8 + $0x40] sm:$0xff] %v282_v8  ;;  %v288_v11 = vld [vmem:[%s1707_s7 + $0x108] sm:$0xff]  ;;  %285 = vst [vmem:[%s1712_s8 + $0x48] sm:$0xff] %v284_v9  ;;  %v290_v12 = vld [vmem:[%s1707_s7 + $0x120] sm:$0xff] }
  0x1d   : > { %287 = vst [vmem:[%s1712_s8 + $0x50] sm:$0xff] %v286_v10  ;;  %289 = vst [vmem:[%s1712_s8 + $0x58] sm:$0xff] %v288_v11  ;;  %v292_v13 = vld [vmem:[%s1707_s7 + $0x138] sm:$0xff]  ;;  %v294_v14 = vld [vmem:[%s1707_s7 + $0x150] sm:$0xff] }
  0x1e   : > { %291 = vst [vmem:[%s1712_s8 + $0x60] sm:$0xff] %v290_v12  ;;  %293 = vst [vmem:[%s1712_s8 + $0x68] sm:$0xff] %v292_v13  ;;  %v296_v15 = vld [vmem:[%s1707_s7 + $0x168] sm:$0xff]  ;;  %v298_v16 = vld [vmem:[%s1707_s7 + $0x180] sm:$0xff] }
  0x1f   : > { %295 = vst [vmem:[%s1712_s8 + $0x70] sm:$0xff] %v294_v14  ;;  %v300_v17 = vld [vmem:[%s1707_s7 + $0x198] sm:$0xff]  ;;  %297 = vst [vmem:[%s1712_s8 + $0x78] sm:$0xff] %v296_v15  ;;  %v302_v18 = vld [vmem:[%s1707_s7 + $0x1b0] sm:$0xff] }
  0x20   : > { %299 = vst [vmem:[%s1712_s8 + $0x80] sm:$0xff] %v298_v16  ;;  %301 = vst [vmem:[%s1712_s8 + $0x88] sm:$0xff] %v300_v17  ;;  %v304_v19 = vld [vmem:[%s1707_s7 + $0x1c8] sm:$0xff]  ;;  %v306_v20 = vld [vmem:[%s1707_s7 + $0x1e0] sm:$0xff] }
  0x21   : > { %303 = vst [vmem:[%s1712_s8 + $0x90] sm:$0xff] %v302_v18  ;;  %305 = vst [vmem:[%s1712_s8 + $0x98] sm:$0xff] %v304_v19  ;;  %v308_v21 = vld [vmem:[%s1707_s7 + $0x1f8] sm:$0xff]  ;;  %v310_v22 = vld [vmem:[%s1707_s7 + $0x210] sm:$0xff] }
  0x22   : > { %307 = vst [vmem:[%s1712_s8 + $0xa0] sm:$0xff] %v306_v20  ;;  %v312_v23 = vld [vmem:[%s1707_s7 + $0x228] sm:$0xff]  ;;  %309 = vst [vmem:[%s1712_s8 + $0xa8] sm:$0xff] %v308_v21  ;;  %v314_v24 = vld [vmem:[%s1707_s7 + $0x240] sm:$0xff] }
  0x23   : > { %311 = vst [vmem:[%s1712_s8 + $0xb0] sm:$0xff] %v310_v22  ;;  %313 = vst [vmem:[%s1712_s8 + $0xb8] sm:$0xff] %v312_v23  ;;  %v316_v25 = vld [vmem:[%s1707_s7 + $0x258] sm:$0xff]  ;;  %v318_v26 = vld [vmem:[%s1707_s7 + $0x270] sm:$0xff] }
  0x24   : > { %315 = vst [vmem:[%s1712_s8 + $0xc0] sm:$0xff] %v314_v24  ;;  %317 = vst [vmem:[%s1712_s8 + $0xc8] sm:$0xff] %v316_v25  ;;  %v320_v27 = vld [vmem:[%s1707_s7 + $0x288] sm:$0xff]  ;;  %v322_v28 = vld [vmem:[%s1707_s7 + $0x2a0] sm:$0xff] }
  0x25   : > { %319 = vst [vmem:[%s1712_s8 + $0xd0] sm:$0xff] %v318_v26  ;;  %v324_v29 = vld [vmem:[%s1707_s7 + $0x2b8] sm:$0xff]  ;;  %321 = vst [vmem:[%s1712_s8 + $0xd8] sm:$0xff] %v320_v27  ;;  %v326_v30 = vld [vmem:[%s1707_s7 + $0x2d0] sm:$0xff] }
  0x26   : > { %323 = vst [vmem:[%s1712_s8 + $0xe0] sm:$0xff] %v322_v28  ;;  %325 = vst [vmem:[%s1712_s8 + $0xe8] sm:$0xff] %v324_v29  ;;  %v328_v31 = vld [vmem:[%s1707_s7 + $0x2e8] sm:$0xff] }
  0x27   : > { %327 = vst [vmem:[%s1712_s8 + $0xf0] sm:$0xff] %v326_v30  ;;  %329 = vst [vmem:[%s1712_s8 + $0xf8] sm:$0xff] %v328_v31 }
  0x28 PF: > { %p1261_p7 = scmp.ge.s32.totalorder %s1624_s18, 1  ;;  %p346_p8 = scmp.lt.s32.totalorder %s1624_s18, 7 }
  0x2a   : > { %p347_p9 = pnand %p1261_p7, %p346_p8 }
  0x2b   : > { %s353_s9 = sand.u32 (!%p347_p9), 1, %s1600_s12   ;;  %s1263_s10 = sshll.u32 (!%p347_p9), %s1608_s14, 5 }
  0x2c   : > { %350 = sbr.rel (%p347_p9) target bundleno = 386 (0x182), region = 66  ;;  %s1262_s11 = sshll.u32 (!%p347_p9), %s353_s9, 8 }
  0x2d   : > { %p393_p10 = scmp.lt.s32.totalorder (!%p347_p9), %s1263_s10, 95  ;;  %s1265_s21 = sshll.u32 (!%p347_p9), %s1612_s15, 5 }
  0x2e   : > { %p405_p11 = scmp.lt.s32.totalorder (!%p347_p9), %s1265_s21, 63  ;;  %s1790_s12 = scalar_lea.vmem (!%p347_p9), [#allocation3], %s1262_s11 }
  0x2f   : > { %p1267_p12 = scmp.ne.s32.totalorder (!%p347_p9), %s1608_s14, 0 }
  0x31   : > { %s1949_s10 = smov (!%p393_p10, %s1263_s10), 95  ;;  %s1951_s21 = smov (!%p405_p11, %s1265_s21), 63 }
  0x32   : > { %s1264_s22 = sshll.u32 %s1949_s10, 2  ;;  %s1266_s27 = sshll.u32 %s1951_s21, 3 }
  0x33   : > { %s1783_s26 = scalar_lea.vmem %s1933_s1, %s1264_s22  ;;  %s1788_s30 = scalar_lea.vmem %s1935_s3, %s1266_s27 }
  0x34   : > { %417 = sbr.rel (%p1267_p12) target bundleno = 74 (0x4a), region = 74 }
  0x39   : > { %v1626_v32 = vmov 0.0  }
  0x3a   : > { %418 = vst [vmem:[#allocation2 + $0xb0] sm:$0xff] %v1626_v32  ;;  %419 = vst [vmem:[#allocation2] sm:$0xff] %v1626_v32 }
  0x3b   : > { %420 = vst [vmem:[#allocation2 + $0xd8] sm:$0xff] %v1626_v32  ;;  %421 = vst [vmem:[#allocation2 + $0x18] sm:$0xff] %v1626_v32 }
  0x3c   : > { %422 = vst [vmem:[#allocation2 + $0x50] sm:$0xff] %v1626_v32  ;;  %423 = vst [vmem:[#allocation2 + $0x68] sm:$0xff] %v1626_v32 }
  0x3d   : > { %424 = vst [vmem:[#allocation2 + $0x30] sm:$0xff] %v1626_v32  ;;  %425 = vst [vmem:[#allocation2 + $0x48] sm:$0xff] %v1626_v32 }
  0x3e   : > { %426 = vst [vmem:[#allocation2 + $0x80] sm:$0xff] %v1626_v32  ;;  %427 = vst [vmem:[#allocation2 + $0x88] sm:$0xff] %v1626_v32 }
  0x3f   : > { %428 = vst [vmem:[#allocation2 + $0xe8] sm:$0xff] %v1626_v32  ;;  %429 = vst [vmem:[#allocation2 + $0xb8] sm:$0xff] %v1626_v32 }
  0x40   : > { %430 = vst [vmem:[#allocation2 + $0x60] sm:$0xff] %v1626_v32  ;;  %431 = vst [vmem:[#allocation2 + $0xf0] sm:$0xff] %v1626_v32 }
  0x41   : > { %432 = vst [vmem:[#allocation2 + $0x8] sm:$0xff] %v1626_v32  ;;  %433 = vst [vmem:[#allocation2 + $0x78] sm:$0xff] %v1626_v32 }
  0x42   : > { %434 = vst [vmem:[#allocation2 + $0x38] sm:$0xff] %v1626_v32  ;;  %435 = vst [vmem:[#allocation2 + $0x58] sm:$0xff] %v1626_v32 }
  0x43   : > { %436 = vst [vmem:[#allocation2 + $0x40] sm:$0xff] %v1626_v32  ;;  %437 = vst [vmem:[#allocation2 + $0xc8] sm:$0xff] %v1626_v32 }
  0x44   : > { %438 = vst [vmem:[#allocation2 + $0xe0] sm:$0xff] %v1626_v32  ;;  %439 = vst [vmem:[#allocation2 + $0x90] sm:$0xff] %v1626_v32 }
  0x45   : > { %440 = vst [vmem:[#allocation2 + $0x70] sm:$0xff] %v1626_v32  ;;  %441 = vst [vmem:[#allocation2 + $0xc0] sm:$0xff] %v1626_v32 }
  0x46   : > { %442 = vst [vmem:[#allocation2 + $0xa8] sm:$0xff] %v1626_v32  ;;  %443 = vst [vmem:[#allocation2 + $0xd0] sm:$0xff] %v1626_v32 }
  0x47   : > { %444 = vst [vmem:[#allocation2 + $0x10] sm:$0xff] %v1626_v32  ;;  %445 = vst [vmem:[#allocation2 + $0x28] sm:$0xff] %v1626_v32 }
  0x48   : > { %446 = vst [vmem:[#allocation2 + $0xa0] sm:$0xff] %v1626_v32  ;;  %447 = vst [vmem:[#allocation2 + $0xf8] sm:$0xff] %v1626_v32 }
  0x49   : > { %448 = vst [vmem:[#allocation2 + $0x20] sm:$0xff] %v1626_v32  ;;  %449 = vst [vmem:[#allocation2 + $0x98] sm:$0xff] %v1626_v32 }
  0x4a PF: > { %v1506_v33 = vld [vmem:[%s1783_s26 + $0x78] sm:$0xff]   ;;  %v1508_v35 = vld [vmem:[%s1783_s26 + $0x70] sm:$0xff]   ;;  %v1510_v37 = vld [vmem:[%s1783_s26 + $0x68] sm:$0xff]   ;;  %p1316_p13 = scmp.ne.s32.totalorder %s1608_s14, 2 }
  0x4b   : > { %v1507_v34 = vld [vmem:[%s1783_s26 + $0x38] sm:$0xff]   ;;  %1320 = vmatprep.subr.bf16.mxu0 %v1506_v33  ;;  %1432 = vmatprep.subr.bf16.mxu1 %v1506_v33  ;;  %v1509_v36 = vld [vmem:[%s1783_s26 + $0x30] sm:$0xff]   ;;  %v1511_v38 = vld [vmem:[%s1783_s26 + $0x28] sm:$0xff]  }
  0x4c   : > { %1321 = vmatpush3.bf16.msra.mxu0 %v1507_v34  ;;  %1440 = vmatpush3.bf16.msra.mxu1 %v1507_v34  ;;  %v1512_v39 = vld [vmem:[%s1783_s26 + $0x60] sm:$0xff]   ;;  %v1514_v41 = vld [vmem:[%s1783_s26 + $0x58] sm:$0xff]   ;;  %v1516_v43 = vld [vmem:[%s1783_s26 + $0x50] sm:$0xff]  }
  0x4d   : > { %1322 = vmatprep.subr.bf16.mxu0 %v1508_v35  ;;  %1433 = vmatprep.subr.bf16.mxu1 %v1508_v35  ;;  %v1513_v40 = vld [vmem:[%s1783_s26 + $0x20] sm:$0xff]   ;;  %v1515_v42 = vld [vmem:[%s1783_s26 + $0x18] sm:$0xff]   ;;  %v1517_v46 = vld [vmem:[%s1783_s26 + $0x10] sm:$0xff]  }
  0x4e   : > { %v1524_v44 = vld [vmem:[%s1790_s12 + $0x4] ss:$8 sps:$4 sm:$0xff]   ;;  %v1522_v51 = vld [vmem:[%s1790_s12] ss:$8 sps:$4 sm:$0xff]   ;;  %v1528_v53 = vld [vmem:[%s1790_s12 + $0x14] ss:$8 sps:$4 sm:$0xff]  }
  0x4f   : > { %v1527_v45 = vld [vmem:[%s1790_s12 + $0x84] ss:$8 sps:$4 sm:$0xff]   ;;  %834 = vmatprep.mubr.bf16.mxu0 %v1524_v44  ;;  %v1525_v52 = vld [vmem:[%s1790_s12 + $0x80] ss:$8 sps:$4 sm:$0xff]   ;;  %v1530_v54 = vld [vmem:[%s1790_s12 + $0x94] ss:$8 sps:$4 sm:$0xff]  }
  0x50   : > { %1323 = vmatpush3.bf16.msra.mxu0 %v1509_v36  ;;  %1441 = vmatpush3.bf16.msra.mxu1 %v1509_v36  ;;  %v1518_v47 = vld [vmem:[%s1783_s26 + $0x48] sm:$0xff]   ;;  %v1520_v49 = vld [vmem:[%s1783_s26 + $0x40] sm:$0xff]   ;;  %v1532_v55 = vld [vmem:[%s1790_s12 + $0x10] ss:$8 sps:$4 sm:$0xff]  }
  0x51   : > { %1324 = vmatprep.subr.bf16.mxu0 %v1510_v37  ;;  %1434 = vmatprep.subr.bf16.mxu1 %v1510_v37  ;;  %v1519_v48 = vld [vmem:[%s1783_s26 + $0x8] sm:$0xff]   ;;  %v1521_v50 = vld [vmem:[%s1783_s26] sm:$0xff]   ;;  %v1533_v56 = vld [vmem:[%s1790_s12 + $0x90] ss:$8 sps:$4 sm:$0xff]  }
  0x52   : > { %898 = vmatprep.mubr.bf16.mxu1 %v1527_v45  ;;  %v1534_v57 = vld [vmem:[%s1790_s12 + $0x24] ss:$8 sps:$4 sm:$0xff]   ;;  %v1538_v59 = vld [vmem:[%s1790_s12 + $0x20] ss:$8 sps:$4 sm:$0xff]   ;;  %v1540_v61 = vld [vmem:[%s1790_s12 + $0x34] ss:$8 sps:$4 sm:$0xff]  }
  0x53   : > { %v1536_v58 = vld [vmem:[%s1790_s12 + $0xa4] ss:$8 sps:$4 sm:$0xff]   ;;  %v1539_v60 = vld [vmem:[%s1790_s12 + $0xa0] ss:$8 sps:$4 sm:$0xff]   ;;  %v1542_v62 = vld [vmem:[%s1790_s12 + $0xb4] ss:$8 sps:$4 sm:$0xff]  }
  0x54   : > { %1325 = vmatpush3.bf16.msra.mxu0 %v1511_v38  ;;  %1442 = vmatpush3.bf16.msra.mxu1 %v1511_v38  ;;  %v1544_v63 = vld [vmem:[%s1790_s12 + $0x30] ss:$8 sps:$4 sm:$0xff]   ;;  %v1546_v1 = vld [vmem:[%s1790_s12 + $0x44] ss:$8 sps:$4 sm:$0xff]   ;;  %v1550_v3 = vld [vmem:[%s1790_s12 + $0x40] ss:$8 sps:$4 sm:$0xff]  }
  0x55   : > { %1326 = vmatprep.subr.bf16.mxu0 %v1512_v39  ;;  %1435 = vmatprep.subr.bf16.mxu1 %v1512_v39  ;;  %v1545_v0 = vld [vmem:[%s1790_s12 + $0xb0] ss:$8 sps:$4 sm:$0xff]   ;;  %v1548_v2 = vld [vmem:[%s1790_s12 + $0xc4] ss:$8 sps:$4 sm:$0xff]   ;;  %v1551_v4 = vld [vmem:[%s1790_s12 + $0xc0] ss:$8 sps:$4 sm:$0xff]  }
  0x56   : > { %v1552_v5 = vld [vmem:[%s1790_s12 + $0x54] ss:$8 sps:$4 sm:$0xff]   ;;  %v1556_v7 = vld [vmem:[%s1790_s12 + $0x50] ss:$8 sps:$4 sm:$0xff]   ;;  %v1558_v9 = vld [vmem:[%s1790_s12 + $0x64] ss:$8 sps:$4 sm:$0xff]  }
  0x57   : > { %v1554_v6 = vld [vmem:[%s1790_s12 + $0xd4] ss:$8 sps:$4 sm:$0xff]   ;;  %v1557_v8 = vld [vmem:[%s1790_s12 + $0xd0] ss:$8 sps:$4 sm:$0xff]   ;;  %v1560_v10 = vld [vmem:[%s1790_s12 + $0xe4] ss:$8 sps:$4 sm:$0xff]  }
  0x58   : > { %1327 = vmatpush3.bf16.msra.mxu0 %v1513_v40  ;;  %1443 = vmatpush3.bf16.msra.mxu1 %v1513_v40  ;;  %v1562_v11 = vld [vmem:[%s1790_s12 + $0x60] ss:$8 sps:$4 sm:$0xff]   ;;  %v1564_v13 = vld [vmem:[%s1790_s12 + $0x74] ss:$8 sps:$4 sm:$0xff]   ;;  %v1568_v15 = vld [vmem:[%s1790_s12 + $0x70] ss:$8 sps:$4 sm:$0xff]  }
  0x59   : > { %1328 = vmatprep.subr.bf16.mxu0 %v1514_v41  ;;  %1436 = vmatprep.subr.bf16.mxu1 %v1514_v41  ;;  %v1563_v12 = vld [vmem:[%s1790_s12 + $0xe0] ss:$8 sps:$4 sm:$0xff]   ;;  %v1566_v14 = vld [vmem:[%s1790_s12 + $0xf4] ss:$8 sps:$4 sm:$0xff]   ;;  %v1569_v16 = vld [vmem:[%s1790_s12 + $0xf0] ss:$8 sps:$4 sm:$0xff]  }
  0x5a   : > { %v450_v19 = vld [vmem:[#allocation2 + $0xb0] sm:$0xff]  ;;  %v466_v21 = vld [vmem:[#allocation2 + $0x38] sm:$0xff]  ;;  %v451_v29 = vld [vmem:[#allocation2] sm:$0xff] }
  0x5b   : > { %v467_v31 = vld [vmem:[#allocation2 + $0x58] sm:$0xff]  ;;  %v468_v41 = vld [vmem:[#allocation2 + $0x40] sm:$0xff] }
  0x5c   : > { %1329 = vmatpush3.bf16.msra.mxu0 %v1515_v42  ;;  %1444 = vmatpush3.bf16.msra.mxu1 %v1515_v42  ;;  %v452_v39 = vld [vmem:[#allocation2 + $0xd8] sm:$0xff] }
  0x5d   : > { %1330 = vmatprep.subr.bf16.mxu0 %v1516_v43  ;;  %1437 = vmatprep.subr.bf16.mxu1 %v1516_v43 }
  0x60   : > { %1331 = vmatpush3.bf16.msra.mxu0 %v1517_v46  ;;  %1445 = vmatpush3.bf16.msra.mxu1 %v1517_v46 }
  0x61   : > { %1332 = vmatprep.subr.bf16.mxu0 %v1518_v47  ;;  %1438 = vmatprep.subr.bf16.mxu1 %v1518_v47 }
  0x64   : > { %1333 = vmatpush3.bf16.msra.mxu0 %v1519_v48  ;;  %1446 = vmatpush3.bf16.msra.mxu1 %v1519_v48 }
  0x65   : > { %1334 = vmatprep.subr.bf16.mxu0 %v1520_v49  ;;  %1439 = vmatprep.subr.bf16.mxu1 %v1520_v49  ;;  %v453_v49 = vld [vmem:[#allocation2 + $0x18] sm:$0xff] }
  0x68   : > { %1335 = vmatpush3.bf16.msra.mxu0 %v1521_v50  ;;  %1447 = vmatpush3.bf16.msra.mxu1 %v1521_v50 }
  0x6b   : > { %835 = vmatmul.mubr.bf16.vlgmr.msra.gmra.mxu0 %v1522_v51  ;;  %899 = vmatmul.mubr.bf16.vlgmr.msra.gmra.mxu1 %v1525_v52  ;;  %v469_v51 = vld [vmem:[#allocation2 + $0xc8] sm:$0xff] }
  0x6c   : > { %842 = vmatprep.mubr.bf16.mxu0 %v1528_v53  ;;  %906 = vmatprep.mubr.bf16.mxu1 %v1530_v54 }
  0x73   : > { %843 = vmatmul.mubr.bf16.gmra.mxu0 %v1532_v55  ;;  %907 = vmatmul.mubr.bf16.gmra.mxu1 %v1533_v56 }
  0x74   : > { %850 = vmatprep.mubr.bf16.mxu0 %v1534_v57  ;;  %914 = vmatprep.mubr.bf16.mxu1 %v1536_v58 }
  0x7b   : > { %851 = vmatmul.mubr.bf16.gmra.mxu0 %v1538_v59  ;;  %915 = vmatmul.mubr.bf16.gmra.mxu1 %v1539_v60  ;;  %v454_v59 = vld [vmem:[#allocation2 + $0x50] sm:$0xff] }
  0x7c   : > { %858 = vmatprep.mubr.bf16.mxu0 %v1540_v61  ;;  %922 = vmatprep.mubr.bf16.mxu1 %v1542_v62  ;;  %v470_v61 = vld [vmem:[#allocation2 + $0xe0] sm:$0xff] }
  0x83   : > { %859 = vmatmul.mubr.bf16.gmra.mxu0 %v1544_v63  ;;  %923 = vmatmul.mubr.bf16.gmra.mxu1 %v1545_v0 }
  0x84   : > { %866 = vmatprep.mubr.bf16.mxu0 %v1546_v1  ;;  %930 = vmatprep.mubr.bf16.mxu1 %v1548_v2 }
  0x8b   : > { %867 = vmatmul.mubr.bf16.gmra.mxu0 %v1550_v3  ;;  %931 = vmatmul.mubr.bf16.gmra.mxu1 %v1551_v4 }
  0x8c   : > { %874 = vmatprep.mubr.bf16.mxu0 %v1552_v5  ;;  %938 = vmatprep.mubr.bf16.mxu1 %v1554_v6  ;;  %v455_v5 = vld [vmem:[#allocation2 + $0x68] sm:$0xff] }
  0x93   : > { %875 = vmatmul.mubr.bf16.gmra.mxu0 %v1556_v7  ;;  %939 = vmatmul.mubr.bf16.gmra.mxu1 %v1557_v8  ;;  %v471_v7 = vld [vmem:[#allocation2 + $0x90] sm:$0xff] }
  0x94   : > { %882 = vmatprep.mubr.bf16.mxu0 %v1558_v9  ;;  %946 = vmatprep.mubr.bf16.mxu1 %v1560_v10 }
  0x9b   : > { %883 = vmatmul.mubr.bf16.gmra.mxu0 %v1562_v11  ;;  %947 = vmatmul.mubr.bf16.gmra.mxu1 %v1563_v12 }
  0x9c   : > { %890 = vmatprep.mubr.bf16.mxu0 %v1564_v13  ;;  %954 = vmatprep.mubr.bf16.mxu1 %v1566_v14 }
  0xa3   : > { %891 = vmatmul.mubr.bf16.gmra.mxu0 %v1568_v15  ;;  %955 = vmatmul.mubr.bf16.gmra.mxu1 %v1569_v16  ;;  %v456_v15 = vld [vmem:[#allocation2 + $0x30] sm:$0xff] }
 0x12b   : > { %v1336_v17 = vpop.f32.mrf.mxu0  ;;  %v1384_v18 = vpop.f32.mrf.mxu1 }
 0x12d   : > { %v1337_v20 = vpop.f32.mrf.mxu0  ;;  %v1385_v22 = vpop.f32.mrf.mxu1 }
 0x12e   : > { %v1338_v23 = vadd.f32 %v1337_v20, %v1336_v17  ;;  %v1386_v24 = vadd.f32 %v1385_v22, %v1384_v18  ;;  %v472_v17 = vld [vmem:[#allocation2 + $0x70] sm:$0xff] }
 0x12f   : > { %v1339_v25 = vpop.f32.mrf.mxu0  ;;  %v1387_v26 = vpop.f32.mrf.mxu1 }
 0x130   : > { %v963_v27 = vadd.f32 %v1338_v23, %v450_v19  ;;  %v979_v28 = vadd.f32 %v1386_v24, %v466_v21 }
 0x131   : > { %v1340_v30 = vpop.f32.mrf.mxu0  ;;  %v1388_v32 = vpop.f32.mrf.mxu1 }
 0x132   : > { %995 = vst [vmem:[#allocation2 + $0xb0] sm:$0xff] %v963_v27  ;;  %1011 = vst [vmem:[#allocation2 + $0x38] sm:$0xff] %v979_v28  ;;  %v1341_v33 = vadd.f32 %v1340_v30, %v1339_v25  ;;  %v1389_v34 = vadd.f32 %v1388_v32, %v1387_v26  ;;  %v457_v25 = vld [vmem:[#allocation2 + $0x48] sm:$0xff]  ;;  %v473_v27 = vld [vmem:[#allocation2 + $0xc0] sm:$0xff] }
 0x133   : > { %v1342_v35 = vpop.f32.mrf.mxu0  ;;  %v1390_v36 = vpop.f32.mrf.mxu1 }
 0x134   : > { %v964_v37 = vadd.f32 %v1341_v33, %v451_v29  ;;  %v980_v38 = vadd.f32 %v1389_v34, %v467_v31 }
 0x135   : > { %v1343_v40 = vpop.f32.mrf.mxu0  ;;  %v1391_v42 = vpop.f32.mrf.mxu1 }
 0x136   : > { %996 = vst [vmem:[#allocation2] sm:$0xff] %v964_v37  ;;  %1012 = vst [vmem:[#allocation2 + $0x58] sm:$0xff] %v980_v38  ;;  %v1344_v43 = vadd.f32 %v1343_v40, %v1342_v35  ;;  %v1392_v44 = vadd.f32 %v1391_v42, %v1390_v36  ;;  %v458_v35 = vld [vmem:[#allocation2 + $0x80] sm:$0xff]  ;;  %v474_v37 = vld [vmem:[#allocation2 + $0xa8] sm:$0xff] }
 0x137   : > { %v1345_v45 = vpop.f32.mrf.mxu0  ;;  %v1393_v46 = vpop.f32.mrf.mxu1 }
 0x138   : > { %v965_v47 = vadd.f32 %v1344_v43, %v452_v39  ;;  %v981_v48 = vadd.f32 %v1392_v44, %v468_v41 }
 0x139   : > { %v1346_v50 = vpop.f32.mrf.mxu0  ;;  %v1394_v52 = vpop.f32.mrf.mxu1 }
 0x13a   : > { %997 = vst [vmem:[#allocation2 + $0xd8] sm:$0xff] %v965_v47  ;;  %1013 = vst [vmem:[#allocation2 + $0x40] sm:$0xff] %v981_v48  ;;  %v1347_v53 = vadd.f32 %v1346_v50, %v1345_v45  ;;  %v1395_v54 = vadd.f32 %v1394_v52, %v1393_v46  ;;  %v459_v45 = vld [vmem:[#allocation2 + $0x88] sm:$0xff]  ;;  %v475_v47 = vld [vmem:[#allocation2 + $0xd0] sm:$0xff] }
 0x13b   : > { %v1348_v55 = vpop.f32.mrf.mxu0  ;;  %v1396_v56 = vpop.f32.mrf.mxu1 }
 0x13c   : > { %v966_v57 = vadd.f32 %v1347_v53, %v453_v49  ;;  %v982_v58 = vadd.f32 %v1395_v54, %v469_v51 }
 0x13d   : > { %v1349_v60 = vpop.f32.mrf.mxu0  ;;  %v1397_v62 = vpop.f32.mrf.mxu1 }
 0x13e   : > { %998 = vst [vmem:[#allocation2 + $0x18] sm:$0xff] %v966_v57  ;;  %1014 = vst [vmem:[#allocation2 + $0xc8] sm:$0xff] %v982_v58  ;;  %v1350_v63 = vadd.f32 %v1349_v60, %v1348_v55  ;;  %v1398_v0 = vadd.f32 %v1397_v62, %v1396_v56  ;;  %v460_v55 = vld [vmem:[#allocation2 + $0xe8] sm:$0xff]  ;;  %v476_v57 = vld [vmem:[#allocation2 + $0x10] sm:$0xff] }
 0x13f   : > { %v1351_v1 = vpop.f32.mrf.mxu0  ;;  %v1399_v2 = vpop.f32.mrf.mxu1 }
 0x140   : > { %v967_v3 = vadd.f32 %v1350_v63, %v454_v59  ;;  %v983_v4 = vadd.f32 %v1398_v0, %v470_v61 }
 0x141   : > { %v1352_v6 = vpop.f32.mrf.mxu0  ;;  %v1400_v8 = vpop.f32.mrf.mxu1 }
 0x142   : > { %999 = vst [vmem:[#allocation2 + $0x50] sm:$0xff] %v967_v3  ;;  %1015 = vst [vmem:[#allocation2 + $0xe0] sm:$0xff] %v983_v4  ;;  %v1353_v9 = vadd.f32 %v1352_v6, %v1351_v1  ;;  %v1401_v10 = vadd.f32 %v1400_v8, %v1399_v2  ;;  %v461_v1 = vld [vmem:[#allocation2 + $0xb8] sm:$0xff]  ;;  %v477_v3 = vld [vmem:[#allocation2 + $0x28] sm:$0xff] }
 0x143   : > { %v1354_v11 = vpop.f32.mrf.mxu0  ;;  %v1402_v12 = vpop.f32.mrf.mxu1 }
 0x144   : > { %v968_v13 = vadd.f32 %v1353_v9, %v455_v5  ;;  %v984_v14 = vadd.f32 %v1401_v10, %v471_v7 }
 0x145   : > { %v1355_v16 = vpop.f32.mrf.mxu0  ;;  %v1403_v18 = vpop.f32.mrf.mxu1 }
 0x146   : > { %1000 = vst [vmem:[#allocation2 + $0x68] sm:$0xff] %v968_v13  ;;  %1016 = vst [vmem:[#allocation2 + $0x90] sm:$0xff] %v984_v14  ;;  %v1356_v19 = vadd.f32 %v1355_v16, %v1354_v11  ;;  %v1404_v20 = vadd.f32 %v1403_v18, %v1402_v12  ;;  %v462_v11 = vld [vmem:[#allocation2 + $0x60] sm:$0xff] }
 0x147   : > { %v1357_v21 = vpop.f32.mrf.mxu0  ;;  %v1405_v22 = vpop.f32.mrf.mxu1  ;;  %v478_v13 = vld [vmem:[#allocation2 + $0xa0] sm:$0xff] }
 0x148   : > { %v969_v23 = vadd.f32 %v1356_v19, %v456_v15  ;;  %v985_v24 = vadd.f32 %v1404_v20, %v472_v17 }
 0x149   : > { %v1358_v26 = vpop.f32.mrf.mxu0  ;;  %v1406_v28 = vpop.f32.mrf.mxu1 }
 0x14a   : > { %1001 = vst [vmem:[#allocation2 + $0x30] sm:$0xff] %v969_v23  ;;  %1017 = vst [vmem:[#allocation2 + $0x70] sm:$0xff] %v985_v24  ;;  %v1359_v29 = vadd.f32 %v1358_v26, %v1357_v21  ;;  %v1407_v30 = vadd.f32 %v1406_v28, %v1405_v22  ;;  %v463_v21 = vld [vmem:[#allocation2 + $0xf0] sm:$0xff]  ;;  %v479_v23 = vld [vmem:[#allocation2 + $0xf8] sm:$0xff] }
 0x14b   : > { %v1360_v31 = vpop.f32.mrf.mxu0  ;;  %v1408_v32 = vpop.f32.mrf.mxu1 }
 0x14c   : > { %v970_v33 = vadd.f32 %v1359_v29, %v457_v25  ;;  %v986_v34 = vadd.f32 %v1407_v30, %v473_v27 }
 0x14d   : > { %v1361_v36 = vpop.f32.mrf.mxu0  ;;  %v1409_v38 = vpop.f32.mrf.mxu1 }
 0x14e   : > { %1002 = vst [vmem:[#allocation2 + $0x48] sm:$0xff] %v970_v33  ;;  %1018 = vst [vmem:[#allocation2 + $0xc0] sm:$0xff] %v986_v34  ;;  %v1362_v39 = vadd.f32 %v1361_v36, %v1360_v31  ;;  %v1410_v40 = vadd.f32 %v1409_v38, %v1408_v32  ;;  %v464_v31 = vld [vmem:[#allocation2 + $0x8] sm:$0xff]  ;;  %v480_v33 = vld [vmem:[#allocation2 + $0x20] sm:$0xff] }
 0x14f   : > { %v1363_v41 = vpop.f32.mrf.mxu0  ;;  %v1411_v42 = vpop.f32.mrf.mxu1 }
 0x150   : > { %v971_v43 = vadd.f32 %v1362_v39, %v458_v35  ;;  %v987_v44 = vadd.f32 %v1410_v40, %v474_v37 }
 0x151   : > { %v1364_v46 = vpop.f32.mrf.mxu0  ;;  %v1412_v48 = vpop.f32.mrf.mxu1 }
 0x152   : > { %1003 = vst [vmem:[#allocation2 + $0x80] sm:$0xff] %v971_v43  ;;  %1019 = vst [vmem:[#allocation2 + $0xa8] sm:$0xff] %v987_v44  ;;  %v1365_v49 = vadd.f32 %v1364_v46, %v1363_v41  ;;  %v1413_v50 = vadd.f32 %v1412_v48, %v1411_v42  ;;  %v465_v41 = vld [vmem:[#allocation2 + $0x78] sm:$0xff] }
 0x153   : > { %v1366_v51 = vpop.f32.mrf.mxu0  ;;  %v1414_v52 = vpop.f32.mrf.mxu1  ;;  %v481_v43 = vld [vmem:[#allocation2 + $0x98] sm:$0xff] }
 0x154   : > { %v972_v53 = vadd.f32 %v1365_v49, %v459_v45  ;;  %v988_v54 = vadd.f32 %v1413_v50, %v475_v47 }
 0x155   : > { %v1367_v56 = vpop.f32.mrf.mxu0  ;;  %v1415_v58 = vpop.f32.mrf.mxu1 }
 0x156   : > { %1004 = vst [vmem:[#allocation2 + $0x88] sm:$0xff] %v972_v53  ;;  %1020 = vst [vmem:[#allocation2 + $0xd0] sm:$0xff] %v988_v54  ;;  %v1368_v59 = vadd.f32 %v1367_v56, %v1366_v51  ;;  %v1416_v60 = vadd.f32 %v1415_v58, %v1414_v52 }
 0x157   : > { %v1369_v61 = vpop.f32.mrf.mxu0  ;;  %v1417_v62 = vpop.f32.mrf.mxu1 }
 0x158   : > { %v973_v63 = vadd.f32 %v1368_v59, %v460_v55  ;;  %v989_v0 = vadd.f32 %v1416_v60, %v476_v57 }
 0x159   : > { %v1370_v2 = vpop.f32.mrf.mxu0  ;;  %v1418_v4 = vpop.f32.mrf.mxu1 }
 0x15a   : > { %1005 = vst [vmem:[#allocation2 + $0xe8] sm:$0xff] %v973_v63  ;;  %1021 = vst [vmem:[#allocation2 + $0x10] sm:$0xff] %v989_v0  ;;  %v1371_v5 = vadd.f32 %v1370_v2, %v1369_v61  ;;  %v1419_v6 = vadd.f32 %v1418_v4, %v1417_v62 }
 0x15b   : > { %v1372_v7 = vpop.f32.mrf.mxu0  ;;  %v1420_v8 = vpop.f32.mrf.mxu1 }
 0x15c   : > { %v974_v9 = vadd.f32 %v1371_v5, %v461_v1  ;;  %v990_v10 = vadd.f32 %v1419_v6, %v477_v3 }
 0x15d   : > { %v1373_v12 = vpop.f32.mrf.mxu0  ;;  %v1421_v14 = vpop.f32.mrf.mxu1 }
 0x15e   : > { %1006 = vst [vmem:[#allocation2 + $0xb8] sm:$0xff] %v974_v9  ;;  %1022 = vst [vmem:[#allocation2 + $0x28] sm:$0xff] %v990_v10  ;;  %v1374_v15 = vadd.f32 %v1373_v12, %v1372_v7  ;;  %v1422_v16 = vadd.f32 %v1421_v14, %v1420_v8 }
 0x15f   : > { %v1375_v17 = vpop.f32.mrf.mxu0  ;;  %v1423_v18 = vpop.f32.mrf.mxu1 }
 0x160   : > { %v975_v19 = vadd.f32 %v1374_v15, %v462_v11  ;;  %v991_v20 = vadd.f32 %v1422_v16, %v478_v13 }
 0x161   : > { %v1376_v22 = vpop.f32.mrf.mxu0  ;;  %v1424_v24 = vpop.f32.mrf.mxu1 }
 0x162   : > { %1007 = vst [vmem:[#allocation2 + $0x60] sm:$0xff] %v975_v19  ;;  %1023 = vst [vmem:[#allocation2 + $0xa0] sm:$0xff] %v991_v20  ;;  %v1377_v25 = vadd.f32 %v1376_v22, %v1375_v17  ;;  %v1425_v26 = vadd.f32 %v1424_v24, %v1423_v18 }
 0x163   : > { %v1378_v27 = vpop.f32.mrf.mxu0  ;;  %v1426_v28 = vpop.f32.mrf.mxu1 }
 0x164   : > { %v976_v29 = vadd.f32 %v1377_v25, %v463_v21  ;;  %v992_v30 = vadd.f32 %v1425_v26, %v479_v23 }
 0x165   : > { %v1379_v32 = vpop.f32.mrf.mxu0  ;;  %v1427_v34 = vpop.f32.mrf.mxu1 }
 0x166   : > { %1008 = vst [vmem:[#allocation2 + $0xf0] sm:$0xff] %v976_v29  ;;  %1024 = vst [vmem:[#allocation2 + $0xf8] sm:$0xff] %v992_v30  ;;  %v1380_v35 = vadd.f32 %v1379_v32, %v1378_v27  ;;  %v1428_v36 = vadd.f32 %v1427_v34, %v1426_v28 }
 0x167   : > { %v1381_v37 = vpop.f32.mrf.mxu0  ;;  %v1429_v38 = vpop.f32.mrf.mxu1 }
 0x168   : > { %v977_v39 = vadd.f32 %v1380_v35, %v464_v31  ;;  %v993_v40 = vadd.f32 %v1428_v36, %v480_v33 }
 0x169   : > { %v1382_v42 = vpop.f32.mrf.mxu0  ;;  %v1430_v44 = vpop.f32.mrf.mxu1 }
 0x16a   : > { %1009 = vst [vmem:[#allocation2 + $0x8] sm:$0xff] %v977_v39  ;;  %1025 = vst [vmem:[#allocation2 + $0x20] sm:$0xff] %v993_v40  ;;  %v1383_v45 = vadd.f32 %v1382_v42, %v1381_v37  ;;  %v1431_v46 = vadd.f32 %v1430_v44, %v1429_v38  ;;  %1030 = sbr.rel (%p1316_p13) target bundleno = 386 (0x182), region = 78 }
 0x16c   : > { %v978_v47 = vadd.f32 %v1383_v45, %v465_v41  ;;  %v994_v48 = vadd.f32 %v1431_v46, %v481_v43 }
 0x16e   : > { %1010 = vst [vmem:[#allocation2 + $0x78] sm:$0xff] %v978_v47  ;;  %1026 = vst [vmem:[#allocation2 + $0x98] sm:$0xff] %v994_v48 }
 0x16f   : > { %v1031_v49 = vld [vmem:[#allocation2 + $0xb0] sm:$0xff]  ;;  %v1845_v50 = vld [vmem:[%s1934_s2] ss:$0 sm:$0xff]  ;;  %v1033_v54 = vld [vmem:[#allocation2 + $0xd8] sm:$0xff] }
 0x170   : > { %v1032_v51 = vld [vmem:[#allocation2] sm:$0xff]  ;;  %v1070_v52 = vadd.f32 %v1845_v50, %v1031_v49  ;;  %v1034_v55 = vld [vmem:[#allocation2 + $0x18] sm:$0xff]  ;;  %v1035_v56 = vld [vmem:[#allocation2 + $0x50] sm:$0xff]  ;;  %v1072_v57 = vadd.f32 %v1845_v50, %v1033_v54 }
 0x171   : > { %v1071_v53 = vadd.f32 %v1845_v50, %v1032_v51  ;;  %v1073_v58 = vadd.f32 %v1845_v50, %v1034_v55  ;;  %v1074_v59 = vadd.f32 %v1845_v50, %v1035_v56  ;;  %v1036_v60 = vld [vmem:[#allocation2 + $0x68] sm:$0xff]  ;;  %v1037_v61 = vld [vmem:[#allocation2 + $0x30] sm:$0xff]  ;;  %v1039_v2 = vld [vmem:[#allocation2 + $0x80] sm:$0xff] }
 0x172   : > { %v1038_v62 = vld [vmem:[#allocation2 + $0x48] sm:$0xff]  ;;  %1102 = vst [vmem:[%s1788_s30] sm:$0xff] %v1070_v52  ;;  %v1075_v63 = vadd.f32 %v1845_v50, %v1036_v60  ;;  %v1076_v0 = vadd.f32 %v1845_v50, %v1037_v61  ;;  %1104 = vst [vmem:[%s1788_s30 + $0x10] sm:$0xff] %v1072_v57  ;;  %v1078_v5 = vadd.f32 %v1845_v50, %v1039_v2  ;;  %v1042_v8 = vld [vmem:[#allocation2 + $0xb8] sm:$0xff] }
 0x173   : > { %1103 = vst [vmem:[%s1788_s30 + $0x8] sm:$0xff] %v1071_v53  ;;  %v1077_v1 = vadd.f32 %v1845_v50, %v1038_v62  ;;  %v1040_v3 = vld [vmem:[#allocation2 + $0x88] sm:$0xff]  ;;  %1105 = vst [vmem:[%s1788_s30 + $0x18] sm:$0xff] %v1073_v58  ;;  %v1043_v9 = vld [vmem:[#allocation2 + $0x60] sm:$0xff]  ;;  %v1081_v11 = vadd.f32 %v1845_v50, %v1042_v8 }
 0x174   : > { %v1041_v4 = vld [vmem:[#allocation2 + $0xe8] sm:$0xff]  ;;  %1106 = vst [vmem:[%s1788_s30 + $0x20] sm:$0xff] %v1074_v59  ;;  %v1079_v6 = vadd.f32 %v1845_v50, %v1040_v3  ;;  %v1044_v10 = vld [vmem:[#allocation2 + $0xf0] sm:$0xff]  ;;  %1107 = vst [vmem:[%s1788_s30 + $0x28] sm:$0xff] %v1075_v63  ;;  %v1082_v12 = vadd.f32 %v1845_v50, %v1043_v9 }
 0x175   : > { %v1080_v7 = vadd.f32 %v1845_v50, %v1041_v4  ;;  %1108 = vst [vmem:[%s1788_s30 + $0x30] sm:$0xff] %v1076_v0  ;;  %1109 = vst [vmem:[%s1788_s30 + $0x38] sm:$0xff] %v1077_v1  ;;  %v1083_v13 = vadd.f32 %v1845_v50, %v1044_v10  ;;  %v1045_v14 = vld [vmem:[#allocation2 + $0x8] sm:$0xff]  ;;  %v1046_v15 = vld [vmem:[#allocation2 + $0x78] sm:$0xff] }
 0x176   : > { %v1047_v16 = vld [vmem:[#allocation2 + $0x38] sm:$0xff]  ;;  %1110 = vst [vmem:[%s1788_s30 + $0x40] sm:$0xff] %v1078_v5  ;;  %1111 = vst [vmem:[%s1788_s30 + $0x48] sm:$0xff] %v1079_v6  ;;  %v1084_v17 = vadd.f32 %v1845_v50, %v1045_v14  ;;  %v1085_v18 = vadd.f32 %v1845_v50, %v1046_v15  ;;  %v1049_v21 = vld [vmem:[#allocation2 + $0x40] sm:$0xff] }
 0x177   : > { %1112 = vst [vmem:[%s1788_s30 + $0x50] sm:$0xff] %v1080_v7  ;;  %v1086_v19 = vadd.f32 %v1845_v50, %v1047_v16  ;;  %v1048_v20 = vld [vmem:[#allocation2 + $0x58] sm:$0xff]  ;;  %v1050_v22 = vld [vmem:[#allocation2 + $0xc8] sm:$0xff]  ;;  %1113 = vst [vmem:[%s1788_s30 + $0x58] sm:$0xff] %v1081_v11  ;;  %v1088_v24 = vadd.f32 %v1845_v50, %v1049_v21 }
 0x178   : > { %1114 = vst [vmem:[%s1788_s30 + $0x60] sm:$0xff] %v1082_v12  ;;  %1115 = vst [vmem:[%s1788_s30 + $0x68] sm:$0xff] %v1083_v13  ;;  %v1087_v23 = vadd.f32 %v1845_v50, %v1048_v20  ;;  %v1089_v25 = vadd.f32 %v1845_v50, %v1050_v22  ;;  %v1051_v26 = vld [vmem:[#allocation2 + $0xe0] sm:$0xff]  ;;  %v1052_v27 = vld [vmem:[#allocation2 + $0x90] sm:$0xff] }
 0x179   : > { %v1053_v28 = vld [vmem:[#allocation2 + $0x70] sm:$0xff]  ;;  %1116 = vst [vmem:[%s1788_s30 + $0x70] sm:$0xff] %v1084_v17  ;;  %1117 = vst [vmem:[%s1788_s30 + $0x78] sm:$0xff] %v1085_v18  ;;  %v1090_v29 = vadd.f32 %v1845_v50, %v1051_v26  ;;  %v1091_v30 = vadd.f32 %v1845_v50, %v1052_v27  ;;  %v1054_v32 = vld [vmem:[#allocation2 + $0xc0] sm:$0xff] }
 0x17a   : > { %1118 = vst [vmem:[%s1788_s30 + $0x80] sm:$0xff] %v1086_v19  ;;  %v1092_v31 = vadd.f32 %v1845_v50, %v1053_v28  ;;  %v1055_v33 = vld [vmem:[#allocation2 + $0xa8] sm:$0xff]  ;;  %v1056_v34 = vld [vmem:[#allocation2 + $0xd0] sm:$0xff]  ;;  %1119 = vst [vmem:[%s1788_s30 + $0x88] sm:$0xff] %v1087_v23  ;;  %v1093_v35 = vadd.f32 %v1845_v50, %v1054_v32 }
 0x17b   : > { %1120 = vst [vmem:[%s1788_s30 + $0x90] sm:$0xff] %v1088_v24  ;;  %1121 = vst [vmem:[%s1788_s30 + $0x98] sm:$0xff] %v1089_v25  ;;  %v1094_v36 = vadd.f32 %v1845_v50, %v1055_v33  ;;  %v1095_v37 = vadd.f32 %v1845_v50, %v1056_v34  ;;  %v1057_v38 = vld [vmem:[#allocation2 + $0x10] sm:$0xff]  ;;  %v1058_v39 = vld [vmem:[#allocation2 + $0x28] sm:$0xff] }
 0x17c   : > { %v1059_v40 = vld [vmem:[#allocation2 + $0xa0] sm:$0xff]  ;;  %1122 = vst [vmem:[%s1788_s30 + $0xa0] sm:$0xff] %v1090_v29  ;;  %1123 = vst [vmem:[%s1788_s30 + $0xa8] sm:$0xff] %v1091_v30  ;;  %v1096_v41 = vadd.f32 %v1845_v50, %v1057_v38  ;;  %v1097_v42 = vadd.f32 %v1845_v50, %v1058_v39  ;;  %v1060_v44 = vld [vmem:[#allocation2 + $0xf8] sm:$0xff] }
 0x17d   : > { %1124 = vst [vmem:[%s1788_s30 + $0xb0] sm:$0xff] %v1092_v31  ;;  %v1098_v43 = vadd.f32 %v1845_v50, %v1059_v40  ;;  %v1061_v45 = vld [vmem:[#allocation2 + $0x20] sm:$0xff]  ;;  %v1062_v46 = vld [vmem:[#allocation2 + $0x98] sm:$0xff]  ;;  %1125 = vst [vmem:[%s1788_s30 + $0xb8] sm:$0xff] %v1093_v35  ;;  %v1099_v47 = vadd.f32 %v1845_v50, %v1060_v44 }
 0x17e   : > { %1126 = vst [vmem:[%s1788_s30 + $0xc0] sm:$0xff] %v1094_v36  ;;  %1127 = vst [vmem:[%s1788_s30 + $0xc8] sm:$0xff] %v1095_v37  ;;  %v1100_v48 = vadd.f32 %v1845_v50, %v1061_v45  ;;  %v1101_v49 = vadd.f32 %v1845_v50, %v1062_v46 }
 0x17f   : > { %1128 = vst [vmem:[%s1788_s30 + $0xd0] sm:$0xff] %v1096_v41  ;;  %1129 = vst [vmem:[%s1788_s30 + $0xd8] sm:$0xff] %v1097_v42 }
 0x180   : > { %1130 = vst [vmem:[%s1788_s30 + $0xe0] sm:$0xff] %v1098_v43  ;;  %1131 = vst [vmem:[%s1788_s30 + $0xe8] sm:$0xff] %v1099_v47 }
 0x181   : > { %1132 = vst [vmem:[%s1788_s30 + $0xf0] sm:$0xff] %v1100_v48  ;;  %1133 = vst [vmem:[%s1788_s30 + $0xf8] sm:$0xff] %v1101_v49 }
 0x182 PF: > { %s13_s18 = sadd.s32 1, %s1624_s18   ;;  %s1936_s12 = smov %s1604_s13 }
 0x183   : > { %p10_p0 = scmp.ge.s32.totalorder %s13_s18, 8   ;;  %s1937_s13 = smov %s1698_s25 }
 0x184   : > { %s1938_s14 = smov %s1616_s16  ;;  %s1939_s15 = smov %s1620_s17 }
 0x185   : > { %s1940_s16 = smov %s1943_s19  ;;  %s1941_s17 = smov %s1947_s20 }
 0x186   :  { %12 = sbr.rel (!%p10_p0) target bundleno = 4 (0x4), region = 119 }

// kernel: resunet_plusplus_forward.22
= control target key start
LH: loop header
LB: loop body
LE: loop exit
PB: predicated region body
PF: predicated region fallthrough
CT: control target
= control target key end

     0   :  { %s1897_s12 = smov 0   ;;  %s1899_s13 = smov 0   ;;  %s2160_s0 = inlined_call_operand.vmem [shape: bf16[512,384], index: 0, kind: input, shape index: {}]   ;;  %s2161_s1 = inlined_call_operand.vmem [shape: bf16[384,128], index: 1, kind: input, shape index: {}]   ;;  %s2162_s2 = inlined_call_operand.vmem [shape: f32[1,128], index: 2, kind: input, shape index: {}]   ;;  %s2163_s3 = inlined_call_operand.vmem [shape: f32[512,128], index: 3, kind: output, shape index: {}]  }
   0x1   :  { %s1901_s14 = smov 0  }
   0x2 LB: > { %s32_s15 = sadd.s32 1, %s1871_s13  ;;  %p1460_p0 = scmp.ge.s32.totalorder %s1875_s14, 1  ;;  %s1875_s14 = sphi %s1901_s14, %s13_s14   ;;  %s1871_s13 = sphi %s1899_s13, %s2165_s13   ;;  %s1867_s12 = sphi %s1897_s12, %s2164_s12  }
   0x3   : > { %p34_p1 = scmp.ge.s32.totalorder %s32_s15, 2  ;;  %p191_p2 = scmp.lt.s32.totalorder %s1875_s14, 3 }
   0x5   : > { %s2167_s15 = smov (%p34_p1, %s32_s15), 0  ;;  %p192_p3 = pnand %p1460_p0, %p191_p2 }
   0x6   : > { %s1461_s18 = sshll.u32 (!%p192_p3), %s1867_s12, 5 }
   0x7   : > { %195 = sbr.rel (%p192_p3) target bundleno = 339 (0x153), region = 32  ;;  %p236_p4 = scmp.lt.s32.totalorder (!%p192_p3), %s1461_s18, 63 }
   0xc   : > { %v1765_v0 = vld [vmem:[%s2161_s1 + $0x78] sm:$0xff]   ;;  %v1767_v2 = vld [vmem:[%s2161_s1 + $0x70] sm:$0xff]   ;;  %v1769_v4 = vld [vmem:[%s2161_s1 + $0x68] sm:$0xff]   ;;  %s2169_s18 = smov (!%p236_p4, %s1461_s18), 63 }
   0xd   : > { %v1766_v1 = vld [vmem:[%s2161_s1 + $0x38] sm:$0xff]   ;;  %1540 = vmatprep.subr.bf16.mxu0 %v1765_v0  ;;  %1724 = vmatprep.subr.bf16.mxu1 %v1765_v0  ;;  %v1768_v3 = vld [vmem:[%s2161_s1 + $0x30] sm:$0xff]   ;;  %v1770_v5 = vld [vmem:[%s2161_s1 + $0x28] sm:$0xff]   ;;  %s1740_s4 = smul.u32 12, %s2169_s18 }
   0xe   : > { %1541 = vmatpush3.bf16.msra.mxu0 %v1766_v1  ;;  %1732 = vmatpush3.bf16.msra.mxu1 %v1766_v1  ;;  %v1771_v6 = vld [vmem:[%s2161_s1 + $0x60] sm:$0xff]   ;;  %v1773_v8 = vld [vmem:[%s2161_s1 + $0x58] sm:$0xff]   ;;  %v1775_v10 = vld [vmem:[%s2161_s1 + $0x50] sm:$0xff]  }
   0xf   : > { %1542 = vmatprep.subr.bf16.mxu0 %v1767_v2  ;;  %1725 = vmatprep.subr.bf16.mxu1 %v1767_v2  ;;  %v1772_v7 = vld [vmem:[%s2161_s1 + $0x20] sm:$0xff]   ;;  %s1948_s11 = scalar_lea.vmem %s2160_s0, %s1740_s4  ;;  %v1774_v9 = vld [vmem:[%s2161_s1 + $0x18] sm:$0xff]   ;;  %v1776_v13 = vld [vmem:[%s2161_s1 + $0x10] sm:$0xff]  }
  0x10   : > { %v1783_v11 = vld [vmem:[%s1948_s11 + $0x4] ss:$12 sps:$4 sm:$0xff]   ;;  %v1777_v14 = vld [vmem:[%s2161_s1 + $0x48] sm:$0xff]   ;;  %v1787_v18 = vld [vmem:[%s2161_s1 + $0xb8] sm:$0xff]  }
  0x11   : > { %v1786_v12 = vld [vmem:[%s1948_s11 + $0x124] ss:$12 sps:$4 sm:$0xff]   ;;  %880 = vmatprep.mubr.bf16.mxu0 %v1783_v11  ;;  %v1778_v15 = vld [vmem:[%s2161_s1 + $0x8] sm:$0xff]   ;;  %v1797_v28 = vld [vmem:[%s1948_s11 + $0x34] ss:$12 sps:$4 sm:$0xff]  }
  0x12   : > { %1543 = vmatpush3.bf16.msra.mxu0 %v1768_v3  ;;  %1733 = vmatpush3.bf16.msra.mxu1 %v1768_v3  ;;  %v1779_v16 = vld [vmem:[%s2161_s1 + $0x40] sm:$0xff]   ;;  %v1789_v21 = vld [vmem:[%s1948_s11 + $0x1c] ss:$12 sps:$4 sm:$0xff]   ;;  %v1788_v22 = vld [vmem:[%s2161_s1 + $0xb0] sm:$0xff]  }
  0x13   : > { %1544 = vmatprep.subr.bf16.mxu0 %v1769_v4  ;;  %1726 = vmatprep.subr.bf16.mxu1 %v1769_v4  ;;  %v1780_v17 = vld [vmem:[%s2161_s1] sm:$0xff]   ;;  %v1791_v23 = vld [vmem:[%s1948_s11 + $0x13c] ss:$12 sps:$4 sm:$0xff]   ;;  %v1804_v33 = vld [vmem:[%s2161_s1 + $0x90] sm:$0xff]  }
  0x14   : > { %976 = vmatprep.mubr.bf16.mxu1 %v1786_v12  ;;  %v1781_v19 = vld [vmem:[%s1948_s11] ss:$12 sps:$4 sm:$0xff]   ;;  %v1793_v24 = vld [vmem:[%s1948_s11 + $0x18] ss:$12 sps:$4 sm:$0xff]   ;;  %v1801_v31 = vld [vmem:[%s1948_s11 + $0x30] ss:$12 sps:$4 sm:$0xff]  }
  0x15   : > { %v1784_v20 = vld [vmem:[%s1948_s11 + $0x120] ss:$12 sps:$4 sm:$0xff]   ;;  %v1794_v26 = vld [vmem:[%s1948_s11 + $0x138] ss:$12 sps:$4 sm:$0xff]   ;;  %v1802_v32 = vld [vmem:[%s1948_s11 + $0x150] ss:$12 sps:$4 sm:$0xff]  }
  0x16   : > { %1545 = vmatpush3.bf16.msra.mxu0 %v1770_v5  ;;  %1734 = vmatpush3.bf16.msra.mxu1 %v1770_v5  ;;  %v1795_v25 = vld [vmem:[%s2161_s1 + $0xa8] sm:$0xff]   ;;  %v1796_v27 = vld [vmem:[%s2161_s1 + $0xa0] sm:$0xff]   ;;  %v1803_v30 = vld [vmem:[%s2161_s1 + $0x98] sm:$0xff]  }
  0x17   : > { %1546 = vmatprep.subr.bf16.mxu0 %v1771_v6  ;;  %1727 = vmatprep.subr.bf16.mxu1 %v1771_v6  ;;  %v1799_v29 = vld [vmem:[%s1948_s11 + $0x154] ss:$12 sps:$4 sm:$0xff]   ;;  %v1805_v34 = vld [vmem:[%s1948_s11 + $0x4c] ss:$12 sps:$4 sm:$0xff]   ;;  %v1813_v39 = vld [vmem:[%s1948_s11 + $0x64] ss:$12 sps:$4 sm:$0xff]  }
  0x18   : > { %v1807_v35 = vld [vmem:[%s1948_s11 + $0x16c] ss:$12 sps:$4 sm:$0xff]   ;;  %v1809_v37 = vld [vmem:[%s1948_s11 + $0x48] ss:$12 sps:$4 sm:$0xff]   ;;  %v1812_v40 = vld [vmem:[%s2161_s1 + $0x80] sm:$0xff]  }
  0x19   : > { %v1811_v36 = vld [vmem:[%s2161_s1 + $0x88] sm:$0xff]   ;;  %v1820_v45 = vld [vmem:[%s1948_s11 + $0x38] ss:$12 sps:$4 sm:$0xff]   ;;  %v1822_v47 = vld [vmem:[%s1948_s11 + $0x50] ss:$12 sps:$4 sm:$0xff]  }
  0x1a   : > { %1547 = vmatpush3.bf16.msra.mxu0 %v1772_v7  ;;  %1735 = vmatpush3.bf16.msra.mxu1 %v1772_v7  ;;  %v1810_v38 = vld [vmem:[%s1948_s11 + $0x168] ss:$12 sps:$4 sm:$0xff]   ;;  %v1816_v42 = vld [vmem:[%s1948_s11 + $0x60] ss:$12 sps:$4 sm:$0xff]   ;;  %v1821_v46 = vld [vmem:[%s1948_s11 + $0x78] ss:$12 sps:$4 sm:$0xff]  }
  0x1b   : > { %1548 = vmatprep.subr.bf16.mxu0 %v1773_v8  ;;  %1728 = vmatprep.subr.bf16.mxu1 %v1773_v8  ;;  %v1815_v41 = vld [vmem:[%s1948_s11 + $0x8] ss:$12 sps:$4 sm:$0xff]   ;;  %v1817_v43 = vld [vmem:[%s1948_s11 + $0x20] ss:$12 sps:$4 sm:$0xff]   ;;  %v1826_v50 = vld [vmem:[%s1948_s11 + $0x90] ss:$12 sps:$4 sm:$0xff]  }
  0x1c   : > { %v1818_v44 = vld [vmem:[%s1948_s11 + $0x7c] ss:$12 sps:$4 sm:$0xff]   ;;  %v1823_v48 = vld [vmem:[%s1948_s11 + $0x94] ss:$12 sps:$4 sm:$0xff]   ;;  %v1828_v52 = vld [vmem:[%s1948_s11 + $0xac] ss:$12 sps:$4 sm:$0xff]  }
  0x1d   : > { %v1825_v49 = vld [vmem:[%s1948_s11 + $0x68] ss:$12 sps:$4 sm:$0xff]   ;;  %v1827_v51 = vld [vmem:[%s1948_s11 + $0x80] ss:$12 sps:$4 sm:$0xff]   ;;  %v1830_v53 = vld [vmem:[%s1948_s11 + $0x98] ss:$12 sps:$4 sm:$0xff]  }
  0x1e   : > { %1549 = vmatpush3.bf16.msra.mxu0 %v1774_v9  ;;  %1736 = vmatpush3.bf16.msra.mxu1 %v1774_v9  ;;  %v1831_v54 = vld [vmem:[%s1948_s11 + $0xa8] ss:$12 sps:$4 sm:$0xff]   ;;  %v1832_v55 = vld [vmem:[%s1948_s11 + $0xb0] ss:$12 sps:$4 sm:$0xff]   ;;  %v1836_v58 = vld [vmem:[%s1948_s11 + $0xc0] ss:$12 sps:$4 sm:$0xff]  }
  0x1f   : > { %1550 = vmatprep.subr.bf16.mxu0 %v1775_v10  ;;  %1729 = vmatprep.subr.bf16.mxu1 %v1775_v10  ;;  %v1833_v56 = vld [vmem:[%s1948_s11 + $0xc4] ss:$12 sps:$4 sm:$0xff]   ;;  %v1835_v57 = vld [vmem:[%s1948_s11 + $0xc8] ss:$12 sps:$4 sm:$0xff]   ;;  %v1837_v59 = vld [vmem:[%s1948_s11 + $0xe0] ss:$12 sps:$4 sm:$0xff]  }
  0x20   : > { %v1838_v60 = vld [vmem:[%s1948_s11 + $0xdc] ss:$12 sps:$4 sm:$0xff]   ;;  %v1840_v61 = vld [vmem:[%s1948_s11 + $0xf8] ss:$12 sps:$4 sm:$0xff]   ;;  %v1843_v0 = vld [vmem:[%s1948_s11 + $0xf4] ss:$12 sps:$4 sm:$0xff]  }
  0x21   : > { %v1841_v62 = vld [vmem:[%s1948_s11 + $0xd8] ss:$12 sps:$4 sm:$0xff]   ;;  %v1842_v63 = vld [vmem:[%s1948_s11 + $0x110] ss:$12 sps:$4 sm:$0xff]   ;;  %v1845_v1 = vld [vmem:[%s1948_s11 + $0x128] ss:$12 sps:$4 sm:$0xff]  }
  0x22   : > { %1551 = vmatpush3.bf16.msra.mxu0 %v1776_v13  ;;  %1737 = vmatpush3.bf16.msra.mxu1 %v1776_v13  ;;  %v1846_v2 = vld [vmem:[%s1948_s11 + $0xf0] ss:$12 sps:$4 sm:$0xff]   ;;  %v1847_v3 = vld [vmem:[%s1948_s11 + $0x140] ss:$12 sps:$4 sm:$0xff]   ;;  %v1850_v5 = vld [vmem:[%s1948_s11 + $0x158] ss:$12 sps:$4 sm:$0xff]  }
  0x23   : > { %1552 = vmatprep.subr.bf16.mxu0 %v1777_v14  ;;  %1730 = vmatprep.subr.bf16.mxu1 %v1777_v14  ;;  %v1848_v4 = vld [vmem:[%s1948_s11 + $0x10c] ss:$12 sps:$4 sm:$0xff]   ;;  %v1851_v6 = vld [vmem:[%s1948_s11 + $0x108] ss:$12 sps:$4 sm:$0xff]   ;;  %v1852_v7 = vld [vmem:[%s1948_s11 + $0x170] ss:$12 sps:$4 sm:$0xff]  }
  0x24   : > { %s1464_s11 = sshll.u32 %s2169_s18, 3 }
  0x25   : > { %s2072_s28 = scalar_lea.vmem %s2163_s3, %s1464_s11 }
  0x26   : > { %1553 = vmatpush3.bf16.msra.mxu0 %v1778_v15  ;;  %1738 = vmatpush3.bf16.msra.mxu1 %v1778_v15 }
  0x27   : > { %1554 = vmatprep.subr.bf16.mxu0 %v1779_v16  ;;  %1731 = vmatprep.subr.bf16.mxu1 %v1779_v16 }
  0x2a   : > { %1555 = vmatpush3.bf16.msra.mxu0 %v1780_v17  ;;  %1739 = vmatpush3.bf16.msra.mxu1 %v1780_v17 }
  0x2b   : > { %1676 = vmatprep.subr.bf16.mxu1 %v1787_v18 }
  0x2d   : > { %881 = vmatmul.mubr.bf16.vlgmr.msra.gmra.mxu0 %v1781_v19  ;;  %977 = vmatmul.mubr.bf16.vlgmr.msra.gmra.mxu1 %v1784_v20 }
  0x2e   : > { %1677 = vmatpush3.bf16.msra.mxu1 %v1787_v18  ;;  %888 = vmatprep.mubr.bf16.mxu0 %v1789_v21 }
  0x2f   : > { %1678 = vmatprep.subr.bf16.mxu1 %v1788_v22  ;;  %984 = vmatprep.mubr.bf16.mxu1 %v1791_v23 }
  0x32   : > { %1679 = vmatpush3.bf16.msra.mxu1 %v1788_v22 }
  0x33   : > { %1680 = vmatprep.subr.bf16.mxu1 %v1795_v25 }
  0x35   : > { %889 = vmatmul.mubr.bf16.gmra.mxu0 %v1793_v24  ;;  %985 = vmatmul.mubr.bf16.gmra.mxu1 %v1794_v26 }
  0x36   : > { %1681 = vmatpush3.bf16.msra.mxu1 %v1795_v25  ;;  %896 = vmatprep.mubr.bf16.mxu0 %v1797_v28 }
  0x37   : > { %1682 = vmatprep.subr.bf16.mxu1 %v1796_v27  ;;  %992 = vmatprep.mubr.bf16.mxu1 %v1799_v29 }
  0x3a   : > { %1683 = vmatpush3.bf16.msra.mxu1 %v1796_v27 }
  0x3b   : > { %1684 = vmatprep.subr.bf16.mxu1 %v1803_v30 }
  0x3d   : > { %897 = vmatmul.mubr.bf16.gmra.mxu0 %v1801_v31  ;;  %993 = vmatmul.mubr.bf16.gmra.mxu1 %v1802_v32 }
  0x3e   : > { %1685 = vmatpush3.bf16.msra.mxu1 %v1803_v30  ;;  %904 = vmatprep.mubr.bf16.mxu0 %v1805_v34 }
  0x3f   : > { %1686 = vmatprep.subr.bf16.mxu1 %v1804_v33  ;;  %1000 = vmatprep.mubr.bf16.mxu1 %v1807_v35 }
  0x42   : > { %1687 = vmatpush3.bf16.msra.mxu1 %v1804_v33 }
  0x43   : > { %1688 = vmatprep.subr.bf16.mxu1 %v1811_v36 }
  0x45   : > { %905 = vmatmul.mubr.bf16.gmra.mxu0 %v1809_v37  ;;  %1001 = vmatmul.mubr.bf16.gmra.mxu1 %v1810_v38 }
  0x46   : > { %1689 = vmatpush3.bf16.msra.mxu1 %v1811_v36  ;;  %912 = vmatprep.mubr.bf16.mxu0 %v1813_v39 }
  0x47   : > { %1690 = vmatprep.subr.bf16.mxu1 %v1812_v40  ;;  %1692 = vmatprep.mubr.bf16.mxu1 %v1815_v41 }
  0x4a   : > { %1691 = vmatpush3.bf16.msra.mxu1 %v1812_v40 }
  0x4d   : > { %913 = vmatmul.mubr.bf16.gmra.mxu0 %v1816_v42  ;;  %1693 = vmatmul.mubr.bf16.vlgmr.msra.gmra.mxu1 %v1817_v43 }
  0x4e   : > { %920 = vmatprep.mubr.bf16.mxu0 %v1818_v44  ;;  %1696 = vmatprep.mubr.bf16.mxu1 %v1820_v45 }
  0x55   : > { %921 = vmatmul.mubr.bf16.gmra.mxu0 %v1821_v46  ;;  %1697 = vmatmul.mubr.bf16.gmra.mxu1 %v1822_v47 }
  0x56   : > { %928 = vmatprep.mubr.bf16.mxu0 %v1823_v48  ;;  %1700 = vmatprep.mubr.bf16.mxu1 %v1825_v49  ;;  %v2067_v49 = vld [vmem:[%s2162_s2] ss:$0 sm:$0xff] }
  0x5d   : > { %929 = vmatmul.mubr.bf16.gmra.mxu0 %v1826_v50  ;;  %1701 = vmatmul.mubr.bf16.gmra.mxu1 %v1827_v51 }
  0x5e   : > { %936 = vmatprep.mubr.bf16.mxu0 %v1828_v52  ;;  %1704 = vmatprep.mubr.bf16.mxu1 %v1830_v53 }
  0x65   : > { %937 = vmatmul.mubr.bf16.gmra.mxu0 %v1831_v54  ;;  %1705 = vmatmul.mubr.bf16.gmra.mxu1 %v1832_v55 }
  0x66   : > { %944 = vmatprep.mubr.bf16.mxu0 %v1833_v56  ;;  %1708 = vmatprep.mubr.bf16.mxu1 %v1835_v57 }
  0x6d   : > { %945 = vmatmul.mubr.bf16.gmra.mxu0 %v1836_v58  ;;  %1709 = vmatmul.mubr.bf16.gmra.mxu1 %v1837_v59 }
  0x6e   : > { %952 = vmatprep.mubr.bf16.mxu0 %v1838_v60  ;;  %1712 = vmatprep.mubr.bf16.mxu1 %v1840_v61 }
  0x75   : > { %953 = vmatmul.mubr.bf16.gmra.mxu0 %v1841_v62  ;;  %1713 = vmatmul.mubr.bf16.gmra.mxu1 %v1842_v63 }
  0x76   : > { %960 = vmatprep.mubr.bf16.mxu0 %v1843_v0  ;;  %1716 = vmatprep.mubr.bf16.mxu1 %v1845_v1 }
  0x7d   : > { %961 = vmatmul.mubr.bf16.gmra.mxu0 %v1846_v2  ;;  %1717 = vmatmul.mubr.bf16.gmra.mxu1 %v1847_v3 }
  0x7e   : > { %968 = vmatprep.mubr.bf16.mxu0 %v1848_v4  ;;  %1720 = vmatprep.mubr.bf16.mxu1 %v1850_v5 }
  0x85   : > { %969 = vmatmul.mubr.bf16.gmra.mxu0 %v1851_v6  ;;  %1721 = vmatmul.mubr.bf16.gmra.mxu1 %v1852_v7 }
  0xed   : > { %v1556_v8 = vpop.f32.mrf.mxu0  ;;  %v1628_v9 = vpop.f32.mrf.mxu1 }
  0xef   : > { %v1557_v10 = vpop.f32.mrf.mxu0  ;;  %v1629_v11 = vpop.f32.mrf.mxu1 }
  0xf0   : > { %v2043_v12 = vadd.f32 %v1629_v11, %v1628_v9  ;;  %v1558_v50 = vadd.f32 %v1557_v10, %v1556_v8 }
  0xf1   : > { %v1559_v13 = vpop.f32.mrf.mxu0  ;;  %v1631_v14 = vpop.f32.mrf.mxu1 }
  0xf3   : > { %v1560_v15 = vpop.f32.mrf.mxu0  ;;  %v1632_v16 = vpop.f32.mrf.mxu1 }
  0xf4   : > { %v2045_v17 = vadd.f32 %v1632_v16, %v1631_v14  ;;  %v1561_v59 = vadd.f32 %v1560_v15, %v1559_v13 }
  0xf5   : > { %v1562_v18 = vpop.f32.mrf.mxu0  ;;  %v1634_v19 = vpop.f32.mrf.mxu1 }
  0xf7   : > { %v1563_v20 = vpop.f32.mrf.mxu0  ;;  %v1635_v21 = vpop.f32.mrf.mxu1 }
  0xf8   : > { %v2047_v22 = vadd.f32 %v1635_v21, %v1634_v19  ;;  %v1564_v46 = vadd.f32 %v1563_v20, %v1562_v18 }
  0xf9   : > { %v1565_v23 = vpop.f32.mrf.mxu0  ;;  %v1637_v24 = vpop.f32.mrf.mxu1 }
  0xfb   : > { %v1566_v25 = vpop.f32.mrf.mxu0  ;;  %v1638_v26 = vpop.f32.mrf.mxu1 }
  0xfc   : > { %v2049_v27 = vadd.f32 %v1638_v26, %v1637_v24  ;;  %v1567_v54 = vadd.f32 %v1566_v25, %v1565_v23 }
  0xfd   : > { %v1568_v28 = vpop.f32.mrf.mxu0  ;;  %v1640_v29 = vpop.f32.mrf.mxu1 }
  0xff   : > { %v1569_v30 = vpop.f32.mrf.mxu0  ;;  %v1641_v31 = vpop.f32.mrf.mxu1 }
 0x100   : > { %v2051_v32 = vadd.f32 %v1641_v31, %v1640_v29  ;;  %v1570_v5 = vadd.f32 %v1569_v30, %v1568_v28 }
 0x101   : > { %v1571_v33 = vpop.f32.mrf.mxu0  ;;  %v1643_v34 = vpop.f32.mrf.mxu1 }
 0x103   : > { %v1572_v35 = vpop.f32.mrf.mxu0  ;;  %v1644_v36 = vpop.f32.mrf.mxu1 }
 0x104   : > { %v2053_v37 = vadd.f32 %v1644_v36, %v1643_v34  ;;  %v1573_v16 = vadd.f32 %v1572_v35, %v1571_v33 }
 0x105   : > { %v1574_v38 = vpop.f32.mrf.mxu0  ;;  %v2055_v39 = vpop.f32.mrf.mxu1 }
 0x107   : > { %v1575_v40 = vpop.f32.mrf.mxu0  ;;  %v2057_v41 = vpop.f32.mrf.mxu1 }
 0x108   : > { %v1576_v0 = vadd.f32 %v1575_v40, %v1574_v38 }
 0x109   : > { %v1577_v42 = vpop.f32.mrf.mxu0  ;;  %v2059_v43 = vpop.f32.mrf.mxu1 }
 0x10b   : > { %v1578_v44 = vpop.f32.mrf.mxu0  ;;  %v2061_v45 = vpop.f32.mrf.mxu1 }
 0x10c   : > { %v1579_v10 = vadd.f32 %v1578_v44, %v1577_v42 }
 0x10d   : > { %v1580_v47 = vpop.f32.mrf.mxu0  ;;  %v1694_v48 = vpop.f32.mrf.mxu1 }
 0x10e   : > { %v1052_v51 = vadd.f32 %v1694_v48, %v1564_v46 }
 0x10f   : > { %v1581_v52 = vpop.f32.mrf.mxu0  ;;  %v1043_v53 = vpop.f32.mrf.mxu1 }
 0x110   : > { %v1278_v55 = vadd.f32 %v2067_v49, %v1052_v51  ;;  %v1044_v56 = vadd.f32 %v1558_v50, %v1043_v53  ;;  %v1582_v29 = vadd.f32 %v1581_v52, %v1580_v47 }
 0x111   : > { %v1583_v57 = vpop.f32.mrf.mxu0  ;;  %v1695_v58 = vpop.f32.mrf.mxu1 }
 0x112   : > { %1310 = vst [vmem:[%s2072_s28 + $0x10] sm:$0xff] %v1278_v55  ;;  %v1276_v60 = vadd.f32 %v2067_v49, %v1044_v56  ;;  %v1055_v61 = vadd.f32 %v1695_v58, %v1567_v54 }
 0x113   : > { %v1584_v62 = vpop.f32.mrf.mxu0  ;;  %v1046_v63 = vpop.f32.mrf.mxu1 }
 0x114   : > { %1308 = vst [vmem:[%s2072_s28] sm:$0xff] %v1276_v60  ;;  %v1279_v1 = vadd.f32 %v2067_v49, %v1055_v61  ;;  %v1047_v2 = vadd.f32 %v1561_v59, %v1046_v63  ;;  %v1585_v44 = vadd.f32 %v1584_v62, %v1583_v57 }
 0x115   : > { %v1586_v3 = vpop.f32.mrf.mxu0  ;;  %v1698_v4 = vpop.f32.mrf.mxu1 }
 0x116   : > { %1311 = vst [vmem:[%s2072_s28 + $0x18] sm:$0xff] %v1279_v1  ;;  %v1277_v6 = vadd.f32 %v2067_v49, %v1047_v2  ;;  %v1068_v7 = vadd.f32 %v1698_v4, %v1576_v0 }
 0x117   : > { %v1587_v8 = vpop.f32.mrf.mxu0  ;;  %v1059_v9 = vpop.f32.mrf.mxu1 }
 0x118   : > { %1309 = vst [vmem:[%s2072_s28 + $0x8] sm:$0xff] %v1277_v6  ;;  %v1282_v11 = vadd.f32 %v2067_v49, %v1068_v7  ;;  %v1060_v13 = vadd.f32 %v1570_v5, %v1059_v9  ;;  %v1588_v23 = vadd.f32 %v1587_v8, %v1586_v3 }
 0x119   : > { %v1589_v14 = vpop.f32.mrf.mxu0  ;;  %v1699_v15 = vpop.f32.mrf.mxu1 }
 0x11a   : > { %1314 = vst [vmem:[%s2072_s28 + $0x30] sm:$0xff] %v1282_v11  ;;  %v1280_v18 = vadd.f32 %v2067_v49, %v1060_v13  ;;  %v1071_v19 = vadd.f32 %v1699_v15, %v1579_v10 }
 0x11b   : > { %v1590_v20 = vpop.f32.mrf.mxu0  ;;  %v1062_v21 = vpop.f32.mrf.mxu1 }
 0x11c   : > { %1312 = vst [vmem:[%s2072_s28 + $0x20] sm:$0xff] %v1280_v18  ;;  %v1283_v24 = vadd.f32 %v2067_v49, %v1071_v19  ;;  %v1063_v25 = vadd.f32 %v1573_v16, %v1062_v21  ;;  %v1591_v35 = vadd.f32 %v1590_v20, %v1589_v14 }
 0x11d   : > { %v1592_v26 = vpop.f32.mrf.mxu0  ;;  %v1702_v28 = vpop.f32.mrf.mxu1 }
 0x11e   : > { %1315 = vst [vmem:[%s2072_s28 + $0x38] sm:$0xff] %v1283_v24  ;;  %v1281_v30 = vadd.f32 %v2067_v49, %v1063_v25  ;;  %v1084_v31 = vadd.f32 %v1702_v28, %v1588_v23 }
 0x11f   : > { %v1593_v33 = vpop.f32.mrf.mxu0  ;;  %v1075_v34 = vpop.f32.mrf.mxu1 }
 0x120   : > { %1313 = vst [vmem:[%s2072_s28 + $0x28] sm:$0xff] %v1281_v30  ;;  %v1286_v36 = vadd.f32 %v2067_v49, %v1084_v31  ;;  %v1076_v38 = vadd.f32 %v1582_v29, %v1075_v34  ;;  %v1594_v55 = vadd.f32 %v1593_v33, %v1592_v26 }
 0x121   : > { %v1595_v40 = vpop.f32.mrf.mxu0  ;;  %v1703_v42 = vpop.f32.mrf.mxu1 }
 0x122   : > { %1318 = vst [vmem:[%s2072_s28 + $0x50] sm:$0xff] %v1286_v36  ;;  %v1284_v46 = vadd.f32 %v2067_v49, %v1076_v38  ;;  %v1087_v47 = vadd.f32 %v1703_v42, %v1591_v35 }
 0x123   : > { %v1596_v48 = vpop.f32.mrf.mxu0  ;;  %v1078_v50 = vpop.f32.mrf.mxu1 }
 0x124   : > { %1316 = vst [vmem:[%s2072_s28 + $0x40] sm:$0xff] %v1284_v46  ;;  %v1287_v51 = vadd.f32 %v2067_v49, %v1087_v47  ;;  %v1079_v52 = vadd.f32 %v1585_v44, %v1078_v50  ;;  %v1597_v63 = vadd.f32 %v1596_v48, %v1595_v40 }
 0x125   : > { %v1598_v53 = vpop.f32.mrf.mxu0  ;;  %v1706_v54 = vpop.f32.mrf.mxu1 }
 0x126   : > { %1319 = vst [vmem:[%s2072_s28 + $0x58] sm:$0xff] %v1287_v51  ;;  %v1285_v56 = vadd.f32 %v2067_v49, %v1079_v52 }
 0x127   : > { %v1599_v58 = vpop.f32.mrf.mxu0  ;;  %v1091_v57 = vpop.f32.mrf.mxu1 }
 0x128   : > { %1317 = vst [vmem:[%s2072_s28 + $0x48] sm:$0xff] %v1285_v56  ;;  %v1600_v59 = vadd.f32 %v1599_v58, %v1598_v53  ;;  %v1092_v60 = vadd.f32 %v1594_v55, %v1091_v57 }
 0x129   : > { %v1601_v61 = vpop.f32.mrf.mxu0  ;;  %v1707_v62 = vpop.f32.mrf.mxu1 }
 0x12a   : > { %v1100_v0 = vadd.f32 %v1706_v54, %v1600_v59  ;;  %v1288_v1 = vadd.f32 %v2067_v49, %v1092_v60 }
 0x12b   : > { %v1602_v2 = vpop.f32.mrf.mxu0  ;;  %v1094_v3 = vpop.f32.mrf.mxu1 }
 0x12c   : > { %v1290_v4 = vadd.f32 %v2067_v49, %v1100_v0  ;;  %1320 = vst [vmem:[%s2072_s28 + $0x60] sm:$0xff] %v1288_v1  ;;  %v1603_v5 = vadd.f32 %v1602_v2, %v1601_v61  ;;  %v1095_v6 = vadd.f32 %v1597_v63, %v1094_v3  ;;  %v1648_v61 = vadd.f32 %v2057_v41, %v2055_v39 }
 0x12d   : > { %v1604_v7 = vpop.f32.mrf.mxu0  ;;  %v1710_v8 = vpop.f32.mrf.mxu1 }
 0x12e   : > { %1322 = vst [vmem:[%s2072_s28 + $0x70] sm:$0xff] %v1290_v4  ;;  %v1103_v9 = vadd.f32 %v1707_v62, %v1603_v5  ;;  %v1289_v10 = vadd.f32 %v2067_v49, %v1095_v6  ;;  %v1651_v5 = vadd.f32 %v2061_v45, %v2059_v43 }
 0x12f   : > { %v1605_v11 = vpop.f32.mrf.mxu0  ;;  %v1107_v13 = vpop.f32.mrf.mxu1 }
 0x130   : > { %v1291_v14 = vadd.f32 %v2067_v49, %v1103_v9  ;;  %1321 = vst [vmem:[%s2072_s28 + $0x68] sm:$0xff] %v1289_v10  ;;  %v1606_v15 = vadd.f32 %v1605_v11, %v1604_v7 }
 0x131   : > { %v1607_v16 = vpop.f32.mrf.mxu0  ;;  %v1711_v18 = vpop.f32.mrf.mxu1 }
 0x132   : > { %1323 = vst [vmem:[%s2072_s28 + $0x78] sm:$0xff] %v1291_v14  ;;  %v1108_v19 = vadd.f32 %v1606_v15, %v1107_v13 }
 0x133   : > { %v1608_v20 = vpop.f32.mrf.mxu0  ;;  %v1110_v21 = vpop.f32.mrf.mxu1 }
 0x134   : > { %v1292_v23 = vadd.f32 %v2067_v49, %v1108_v19  ;;  %v1609_v24 = vadd.f32 %v1608_v20, %v1607_v16 }
 0x135   : > { %v1610_v25 = vpop.f32.mrf.mxu0  ;;  %v1714_v26 = vpop.f32.mrf.mxu1 }
 0x136   : > { %1324 = vst [vmem:[%s2072_s28 + $0x80] sm:$0xff] %v1292_v23  ;;  %v1111_v28 = vadd.f32 %v1609_v24, %v1110_v21 }
 0x137   : > { %v1611_v29 = vpop.f32.mrf.mxu0  ;;  %v1123_v30 = vpop.f32.mrf.mxu1 }
 0x138   : > { %v1293_v31 = vadd.f32 %v2067_v49, %v1111_v28  ;;  %v1612_v33 = vadd.f32 %v1611_v29, %v1610_v25 }
 0x139   : > { %v1613_v34 = vpop.f32.mrf.mxu0  ;;  %v2109_v35 = vpop.f32.mrf.mxu1 }
 0x13a   : > { %1325 = vst [vmem:[%s2072_s28 + $0x88] sm:$0xff] %v1293_v31  ;;  %v1116_v36 = vadd.f32 %v1710_v8, %v1612_v33 }
 0x13b   : > { %v1614_v38 = vpop.f32.mrf.mxu0  ;;  %v1126_v40 = vpop.f32.mrf.mxu1 }
 0x13c   : > { %v1294_v42 = vadd.f32 %v2067_v49, %v1116_v36  ;;  %v1615_v44 = vadd.f32 %v1614_v38, %v1613_v34 }
 0x13d   : > { %v1616_v46 = vpop.f32.mrf.mxu0  ;;  %v1718_v47 = vpop.f32.mrf.mxu1 }
 0x13e   : > { %1326 = vst [vmem:[%s2072_s28 + $0x90] sm:$0xff] %v1294_v42  ;;  %v1119_v48 = vadd.f32 %v1711_v18, %v1615_v44  ;;  %v1148_v50 = vadd.f32 %v1718_v47, %v2047_v22 }
 0x13f   : > { %v1617_v51 = vpop.f32.mrf.mxu0  ;;  %v1139_v52 = vpop.f32.mrf.mxu1 }
 0x140   : > { %v1295_v53 = vadd.f32 %v2067_v49, %v1119_v48  ;;  %v1302_v54 = vadd.f32 %v2067_v49, %v1148_v50  ;;  %v1618_v55 = vadd.f32 %v1617_v51, %v1616_v46  ;;  %v1140_v56 = vadd.f32 %v2043_v12, %v1139_v52 }
 0x141   : > { %v1619_v58 = vpop.f32.mrf.mxu0  ;;  %v1719_v57 = vpop.f32.mrf.mxu1 }
 0x142   : > { %1327 = vst [vmem:[%s2072_s28 + $0x98] sm:$0xff] %v1295_v53  ;;  %1334 = vst [vmem:[%s2072_s28 + $0xd0] sm:$0xff] %v1302_v54  ;;  %v1124_v59 = vadd.f32 %v1618_v55, %v1123_v30  ;;  %v1300_v60 = vadd.f32 %v2067_v49, %v1140_v56  ;;  %v1151_v22 = vadd.f32 %v1719_v57, %v2049_v27 }
 0x143   : > { %v1620_v62 = vpop.f32.mrf.mxu0  ;;  %v1142_v63 = vpop.f32.mrf.mxu1 }
 0x144   : > { %v1296_v0 = vadd.f32 %v2067_v49, %v1124_v59  ;;  %1332 = vst [vmem:[%s2072_s28 + $0xc0] sm:$0xff] %v1300_v60  ;;  %v1303_v12 = vadd.f32 %v2067_v49, %v1151_v22  ;;  %v1621_v1 = vadd.f32 %v1620_v62, %v1619_v58  ;;  %v1143_v2 = vadd.f32 %v2045_v17, %v1142_v63 }
 0x145   : > { %v1622_v3 = vpop.f32.mrf.mxu0  ;;  %v1722_v4 = vpop.f32.mrf.mxu1 }
 0x146   : > { %1328 = vst [vmem:[%s2072_s28 + $0xa0] sm:$0xff] %v1296_v0  ;;  %1335 = vst [vmem:[%s2072_s28 + $0xd8] sm:$0xff] %v1303_v12  ;;  %v1127_v27 = vadd.f32 %v1621_v1, %v1126_v40  ;;  %v1301_v39 = vadd.f32 %v2067_v49, %v1143_v2  ;;  %v1164_v41 = vadd.f32 %v1722_v4, %v1648_v61 }
 0x147   : > { %v1623_v6 = vpop.f32.mrf.mxu0  ;;  %v1155_v7 = vpop.f32.mrf.mxu1 }
 0x148   : > { %v1297_v8 = vadd.f32 %v2067_v49, %v1127_v27  ;;  %1333 = vst [vmem:[%s2072_s28 + $0xc8] sm:$0xff] %v1301_v39  ;;  %v1306_v17 = vadd.f32 %v2067_v49, %v1164_v41  ;;  %v1624_v9 = vadd.f32 %v1623_v6, %v1622_v3  ;;  %v1156_v10 = vadd.f32 %v2051_v32, %v1155_v7 }
 0x149   : > { %v1625_v11 = vpop.f32.mrf.mxu0  ;;  %v1723_v13 = vpop.f32.mrf.mxu1 }
 0x14a   : > { %1329 = vst [vmem:[%s2072_s28 + $0xa8] sm:$0xff] %v1297_v8  ;;  %1338 = vst [vmem:[%s2072_s28 + $0xf0] sm:$0xff] %v1306_v17  ;;  %v1132_v14 = vadd.f32 %v1714_v26, %v1624_v9  ;;  %v1304_v43 = vadd.f32 %v2067_v49, %v1156_v10  ;;  %v1167_v45 = vadd.f32 %v1723_v13, %v1651_v5 }
 0x14b   : > { %v1626_v15 = vpop.f32.mrf.mxu0  ;;  %v1158_v16 = vpop.f32.mrf.mxu1 }
 0x14c   : > { %v1298_v18 = vadd.f32 %v2067_v49, %v1132_v14  ;;  %1336 = vst [vmem:[%s2072_s28 + $0xe0] sm:$0xff] %v1304_v43  ;;  %v1307_v19 = vadd.f32 %v2067_v49, %v1167_v45  ;;  %v1627_v20 = vadd.f32 %v1626_v15, %v1625_v11  ;;  %v1159_v32 = vadd.f32 %v2053_v37, %v1158_v16 }
 0x14e   : > { %1330 = vst [vmem:[%s2072_s28 + $0xb0] sm:$0xff] %v1298_v18  ;;  %1339 = vst [vmem:[%s2072_s28 + $0xf8] sm:$0xff] %v1307_v19  ;;  %v1135_v21 = vadd.f32 %v2109_v35, %v1627_v20  ;;  %v1305_v23 = vadd.f32 %v2067_v49, %v1159_v32 }
 0x150   : > { %v1299_v24 = vadd.f32 %v2067_v49, %v1135_v21  ;;  %1337 = vst [vmem:[%s2072_s28 + $0xe8] sm:$0xff] %v1305_v23 }
 0x152   : > { %1331 = vst [vmem:[%s2072_s28 + $0xb8] sm:$0xff] %v1299_v24 }
 0x153 PF: > { %s13_s14 = sadd.s32 1, %s1875_s14   ;;  %s2164_s12 = smov %s1871_s13 }
 0x154   : > { %p10_p5 = scmp.ge.s32.totalorder %s13_s14, 4   ;;  %s2165_s13 = smov %s2167_s15 }
 0x156   :  { %12 = sbr.rel (!%p10_p5) target bundleno = 2 (0x2), region = 76 }

</bundles_post_ra>
